<compile_context>
chip_gen: v6e
topology: v6e:2x2x1
jax: 0.10.0
libtpu: 0.0.40
codegen_flags: <defaults>
</compile_context>

<pallas_src>
import functools

import jax
import jax.numpy as jnp
from jax.experimental import pallas as pl
from jax.experimental.pallas import tpu as pltpu


def _round_up(x, m):
    return (x + m - 1) // m * m


# --------------------------- Fused forward kernel ----------------------------
def _fused_kernel(x_ref, te_ref, wt_ref, slab_ref, o_ref, *, H, offs):
    """Whole ImprovedFCNet forward (all layers, full batch) in one grid step.

    Activation layout: (1, NC) rows (or (H, NC) inside residual blocks) whose
    lane index is  b*seg + i  (batch-major, zero padded to NC).  The fc
    weights are block-diagonal over batch so every layer is one MXU dot.
    """
    f32 = jnp.float32
    HI = jax.lax.Precision.HIGHEST
    NC = x_ref.shape[1]          # lane width (multiple of 128)
    L = H                        # conv spatial length == hidden size

    # ---- hoisted constants: per-segment edge masks for the conv taps --------
    col = jax.lax.broadcasted_iota(jnp.int32, (1, NC), 1)
    is_first = functools.reduce(jnp.logical_or,
                                [col == s for s in range(0, NC, L)])
    is_last = functools.reduce(jnp.logical_or,
                               [col == s + L - 1 for s in range(0, NC, L)])

    def taps(a):
        # a: (C, NC) -> (x[l-1], x[l], x[l+1]) per batch segment, zero at edges.
        # Lane roll (XLU slot) + edge mask; wraparound / cross-batch leakage
        # lands only on masked or padding columns.
        prev = jnp.where(is_first, 0.0, pltpu.roll(a, 1, axis=1))
        nxt = jnp.where(is_last, 0.0, pltpu.roll(a, NC - 1, axis=1))
        return prev, a, nxt

    # ---- weights: static slices of the single resident slab (one DMA) -------
    def rows(name, n):
        r = offs[name]
        return slab_ref[r:r + n, :]

    wx1 = rows("wx1", NC)        # (NC, NC) block-diagonal over batch
    wx2 = rows("wx2", NC)
    wx3 = rows("wx3", NC)

    # ---- time-embedding projection (+ folded fc biases): ONE dot ------------
    # te_ref = [temb(b=0)..., temb(b=1)..., 1.0, 0...] so the bias rows of
    # wt_ref are picked up by the trailing 1.0.
    te_all = jnp.dot(te_ref[...], wt_ref[...],
                     preferred_element_type=f32, precision=HI)       # (1, 3*NC)
    te1 = te_all[:, 0:NC]
    te2 = te_all[:, NC:2 * NC]
    te3 = te_all[:, 2 * NC:3 * NC]

    def fc(h_row, wx_bd, te_k):
        # torch.cat((h, t_embed), 1) @ W.T + b, batched over B via block-diag wx.
        return jnp.dot(h_row, wx_bd, preferred_element_type=f32, precision=HI) + te_k

    def rb_wide(row, name):
        # ResidualBlock(1 -> H).  row: (1, NC) -> (H, NC).
        wv = rows(name + "_wv", H)                     # (H, 128): packed columns
        c1w0, c1w1, c1w2 = wv[:, 0:1], wv[:, 1:2], wv[:, 2:3]
        c1b, ws, bs, c2b = wv[:, 3:4], wv[:, 4:5], wv[:, 5:6], wv[:, 6:7]
        c2w = rows(name + "_c2w", H)[:, 0:3 * H]       # (H, 3H) im2col weight

        prev, cur, nxt = taps(row)
        identity = ws * cur + bs                                        # 1x1 shortcut
        o1 = jnp.maximum(c1w0 * prev + c1w1 * cur + c1w2 * nxt + c1b, 0.0)
        p1, c1, n1 = taps(o1)
        col3 = jnp.concatenate([p1, c1, n1], axis=0)                    # (3H, NC)
        o2 = jnp.dot(c2w, col3, preferred_element_type=f32, precision=HI) + c2b
        return jnp.maximum(o2 + identity, 0.0)                          # (H, NC)

    def rb_narrow(a, name):
        # ResidualBlock(H -> 1).  a: (H, NC) -> (1, NC).
        wn = rows(name + "_wn", 8)[0:2, 0:3 * H]       # row0: conv1, row1: shortcut
        sc = rows(name + "_sc", 8)                     # scalar pack in row 0
        b1, bs = sc[0:1, 0:1], sc[0:1, 1:2]
        w20, w21, w22, b2 = sc[0:1, 2:3], sc[0:1, 3:4], sc[0:1, 4:5], sc[0:1, 5:6]

        prev, cur, nxt = taps(a)
        col3 = jnp.concatenate([prev, cur, nxt], axis=0)                # (3H, NC)
        # One dot gives both the Cout=1 conv1 (row 0) and the 1x1 shortcut (row 1).
        two = jnp.dot(wn, col3, preferred_element_type=f32, precision=HI)  # (2, NC)
        o1 = jnp.maximum(two[0:1, :] + b1, 0.0)
        identity = two[1:2, :] + bs
        p1, c1, n1 = taps(o1)
        o2 = w20 * p1 + w21 * c1 + w22 * n1 + b2                        # 1->1 conv2
        return jnp.maximum(o2 + identity, 0.0)                          # (1, NC)

    # --------------------------- the network ---------------------------------
    h = jnp.maximum(fc(x_ref[...], wx1, te1), 0.0)      # fc1 + relu
    h = rb_narrow(rb_wide(h, "rb1"), "rb2")             # res_block1, res_block2
    h = jnp.maximum(fc(h, wx2, te2), 0.0)               # fc2 + relu
    h = rb_narrow(rb_wide(h, "rb3"), "rb4")             # res_block3, res_block4
    o_ref[...] = fc(h, wx3, te3).astype(o_ref.dtype)    # fc3


def _fused_forward_pallas(x_row, te_row, wt_all, slab, *, H, offs):
    NC = x_row.shape[1]
    args = (x_row, te_row, wt_all, slab)
    return pl.pallas_call(
        functools.partial(_fused_kernel, H=H, offs=offs),
        out_shape=jax.ShapeDtypeStruct((1, NC), jnp.float32),
        grid=(1,),
        in_specs=[pl.BlockSpec(a.shape, lambda i: (0, 0)) for a in args],
        out_specs=pl.BlockSpec((1, NC), lambda i: (0, 0)),
        compiler_params=pltpu.CompilerParams(dimension_semantics=("arbitrary",)),
    )(*args)


# ------------------------------ Parameters -----------------------------------
def init_params(key, seq_length, vocab_size, embedding_size, hidden_size, timesteps):
    keys = iter(jax.random.split(key, 64))

    def dense(fin, fout):
        w = jax.random.normal(next(keys), (fout, fin), jnp.float32) / jnp.sqrt(float(fin))
        b = jax.random.normal(next(keys), (fout,), jnp.float32) * 0.01
        return (w, b)

    def conv(cin, cout, k):
        w = jax.random.normal(next(keys), (cout, cin, k), jnp.float32) / jnp.sqrt(float(cin * k))
        b = jax.random.normal(next(keys), (cout,), jnp.float32) * 0.01
        return (w, b)

    def resblock(cin, cout):
        p = {}
        p["w1"], p["b1"] = conv(cin, cout, 3)
        p["w2"], p["b2"] = conv(cout, cout, 3)
        if cin != cout:
            p["ws"], p["bs"] = conv(cin, cout, 1)
        return p

    flat = seq_length * vocab_size
    return {
        "emb": jax.random.normal(next(keys), (timesteps, embedding_size), jnp.float32),
        "fc1": dense(flat + embedding_size, hidden_size),
        "rb1": resblock(1, hidden_size),
        "rb2": resblock(hidden_size, 1),
        "fc2": dense(hidden_size + embedding_size, hidden_size),
        "rb3": resblock(1, hidden_size),
        "rb4": resblock(hidden_size, 1),
        "fc3": dense(hidden_size + embedding_size, flat),
    }


def pack_params(params, *, batch, seq_length, vocab_size, embedding_size, hidden_size):
    """One-time repack of PyTorch-layout weights into the fused kernel layout.

    Returns (arrays, meta): arrays = {"slab", "wt_all"} (the only weight
    operands of the kernel => two contiguous DMAs), meta = static Python ints
    (layout offsets, sizes) bound into the kernel at trace time.
    The batch size is baked into the block-diagonal fc weights.
    """
    B, E, H = batch, embedding_size, hidden_size
    flat = seq_length * vocab_size
    NC = _round_up(B * max(flat, H), 128)       # lane width of all activations
    f32 = jnp.float32

    # ---- block-diagonal (over batch) fc "x-part" weights ---------------------
    def blockdiag_wx(w):
        fout, fin_tot = w.shape
        fin = fin_tot - E
        assert B * fin <= NC and B * fout <= NC
        wx_t = jnp.transpose(w[:, :fin])                     # (fin, fout)
        bd = jnp.zeros((NC, NC), f32)
        for b in range(B):
            bd = bd.at[b * fin:(b + 1) * fin, b * fout:(b + 1) * fout].set(wx_t)
        return bd

    # ---- fused time-embedding (+bias) weight for all three fc layers ---------
    te_rows = _round_up(B * E + 1, 8)
    wt_all = jnp.zeros((te_rows, 3 * NC), f32)
    for k, name in enumerate(("fc1", "fc2", "fc3")):
        w, bvec = params[name]
        fout, fin_tot = w.shape
        fin = fin_tot - E
        wt_t = jnp.transpose(w[:, fin:])                     # (E, fout)
        for b in range(B):
            c0 = k * NC + b * fout
            wt_all = wt_all.at[b * E:(b + 1) * E, c0:c0 + fout].set(wt_t)
            wt_all = wt_all.at[B * E, c0:c0 + fout].set(bvec)   # bias (te row ends in 1.0)

    # ---- residual-block packs -------------------------------------------------
    def pack_wide(p):                      # ResidualBlock(1 -> H)
        wv = jnp.stack([p["w1"][:, 0, 0], p["w1"][:, 0, 1], p["w1"][:, 0, 2],
                        p["b1"], p["ws"][:, 0, 0], p["bs"], p["b2"]], axis=1)   # (H, 7)
        c2w = jnp.transpose(p["w2"], (0, 2, 1)).reshape(H, 3 * H)               # [co, k*H + ci]
        return wv, c2w

    def pack_narrow(p):                    # ResidualBlock(H -> 1)
        wn = jnp.zeros((2, 3 * H), f32)
        wn = wn.at[0, 0:H].set(p["w1"][0, :, 0])          # k=0 (prev) taps
        wn = wn.at[0, H:2 * H].set(p["w1"][0, :, 1])      # k=1 (cur)  taps
        wn = wn.at[0, 2 * H:3 * H].set(p["w1"][0, :, 2])  # k=2 (next) taps
        wn = wn.at[1, H:2 * H].set(p["ws"][0, :, 0])      # 1x1 shortcut acts on cur
        sc = jnp.stack([p["b1"][0], p["bs"][0],
                        p["w2"][0, 0, 0], p["w2"][0, 0, 1], p["w2"][0, 0, 2],
                        p["b2"][0]]).reshape(1, 6)
        return wn, sc

    # ---- assemble ONE contiguous (rows, NC) weight slab -----------------------
    blocks, offs, row = [], {}, 0

    def add(name, arr):
        nonlocal row
        nr = _round_up(arr.shape[0], 8)                   # 8-row aligned blocks
        blk = jnp.zeros((nr, NC), f32).at[:arr.shape[0], :arr.shape[1]].set(arr)
        blocks.append(blk)
        offs[name] = row
        row += nr

    add("wx1", blockdiag_wx(params["fc1"][0]))
    add("wx2", blockdiag_wx(params["fc2"][0]))
    add("wx3", blockdiag_wx(params["fc3"][0]))
    for name in ("rb1", "rb3"):
        wv, c2w = pack_wide(params[name])
        add(name + "_wv", wv)
        add(name + "_c2w", c2w)
    for name in ("rb2", "rb4"):
        wn, sc = pack_narrow(params[name])
        add(name + "_wn", wn)
        add(name + "_sc", sc)
    slab = jnp.concatenate(blocks, axis=0)

    arrays = {"slab": slab, "wt_all": wt_all}
    meta = {"B": B, "E": E, "H": H, "flat": flat, "NC": NC,
            "te_rows": te_rows, "offs": offs}
    return arrays, meta


# -------------------------------- Forward -------------------------------------
def improved_fc_net_forward(packed, emb, x, t, *, meta, seq_length, vocab_size):
    B, E, H, flat, NC = meta["B"], meta["E"], meta["H"], meta["flat"], meta["NC"]
    assert x.shape[0] == B and flat == seq_length * vocab_size

    x_flat = x.reshape(B, flat).astype(jnp.float32)               # nn.Flatten
    temb = jnp.take(emb, t, axis=0)                               # nn.Embedding gather (glue)

    # Batch -> lanes layout: column b*seg + i (zero padded to NC lanes).
    x_row = jnp.zeros((1, NC), jnp.float32).at[0, :B * flat].set(x_flat.reshape(-1))
    te_row = (jnp.zeros((1, meta["te_rows"]), jnp.float32)
              .at[0, :B * E].set(temb.reshape(-1))
              .at[0, B * E].set(1.0))                             # trailing 1.0 folds fc biases in

    out_row = _fused_forward_pallas(x_row, te_row, packed["wt_all"], packed["slab"],
                                    H=H, offs=meta["offs"])       # single fused Pallas kernel
    out = out_row[0, :B * flat].reshape(B, flat)
    return out.reshape(B, 1, vocab_size, seq_length)              # nn.Unflatten


# -------------------------- Pure-JAX reference check ---------------------------
def forward_reference(params, x, t, *, seq_length, vocab_size):
    B = x.shape[0]
    x_flat = x.reshape(B, -1)
    temb = jnp.take(params["emb"], t, axis=0)

    def linear(h, w, b):
        return h @ w.T + b

    def conv1d(a, w, b):                  # 'same' conv, odd K
        K = w.shape[2]
        pad = (K - 1) // 2
        L = a.shape[-1]
        ap = jnp.pad(a, ((0, 0), (0, 0), (pad, pad)))
        out = jnp.zeros((B, w.shape[0], L), jnp.float32)
        for k in range(K):
            out = out + jnp.einsum("oi,bil->bol", w[:, :, k], ap[:, :, k:k + L])
        return out + b[None, :, None]

    def resblock(a, p):
        identity = conv1d(a, p["ws"], p["bs"]) if "ws" in p else a
        out = jnp.maximum(conv1d(a, p["w1"], p["b1"]), 0.0)
        out = conv1d(out, p["w2"], p["b2"]) + identity
        return jnp.maximum(out, 0.0)

    h = jnp.maximum(linear(jnp.concatenate([x_flat, temb], 1), *params["fc1"]), 0.0)
    h = resblock(h[:, None, :], params["rb1"])
    h = resblock(h, params["rb2"])[:, 0, :]
    h = jnp.maximum(linear(jnp.concatenate([h, temb], 1), *params["fc2"]), 0.0)
    h = resblock(h[:, None, :], params["rb3"])
    h = resblock(h, params["rb4"])[:, 0, :]
    out = linear(jnp.concatenate([h, temb], 1), *params["fc3"])
    return out.reshape(B, 1, vocab_size, seq_length)


# ---------------------------------- Main ---------------------------------------
if __name__ == "__main__":
    # Make the (XLA) reference use full f32 matmuls too, so the tolerance can be tight.
    jax.config.update("jax_default_matmul_precision", "highest")

    seq_length, vocab_size, embedding_size, hidden_size, timesteps = 8, 4, 8, 32, 1000
    B = 2

    key = jax.random.PRNGKey(0)
    kp, kx, kt = jax.random.split(key, 3)
    params = init_params(kp, seq_length, vocab_size, embedding_size, hidden_size, timesteps)
    arrays, meta = pack_params(params, batch=B, seq_length=seq_length, vocab_size=vocab_size,
                               embedding_size=embedding_size, hidden_size=hidden_size)

    x = jax.random.normal(kx, (B, 1, vocab_size, seq_length), jnp.float32)
    t = jax.random.randint(kt, (B,), 0, timesteps)

    fwd = jax.jit(functools.partial(improved_fc_net_forward, meta=meta,
                                    seq_length=seq_length, vocab_size=vocab_size))
    out = jax.block_until_ready(fwd(arrays, params["emb"], x, t))

    assert out.shape == (B, 1, vocab_size, seq_length), out.shape
    assert bool(jnp.all(jnp.isfinite(out)))

    ref = forward_reference(params, x, t, seq_length=seq_length, vocab_size=vocab_size)
    max_err = float(jnp.max(jnp.abs(out - ref)))
    assert max_err < 1e-3, f"max abs diff vs reference: {max_err}"

    print("KERNEL_OK")
</pallas_src>

<mosaic_0001>
module attributes {stable_mosaic.version = 11 : i64} {
  func.func @_fused_kernel(%arg0: i32, %arg1: memref<1x128xf32, #tpu.memory_space<vmem>>, %arg2: memref<1x24xf32, #tpu.memory_space<vmem>>, %arg3: memref<24x384xf32, #tpu.memory_space<vmem>>, %arg4: memref<544x128xf32, #tpu.memory_space<vmem>>, %arg5: memref<1x128xf32, #tpu.memory_space<vmem>>) attributes {dimension_semantics = [#tpu.dimension_semantics<arbitrary>], iteration_bounds = array<i64: 1>, scalar_prefetch = 0 : i64, scratch_operands = 0 : i64, tpu.core_type = #tpu.core_type<tc>, window_params = [{pipeline_mode = #tpu.pipeline_mode<synchronous>, transform_indices = @transform_0, window_bounds = array<i64: 1, 128>}, {pipeline_mode = #tpu.pipeline_mode<synchronous>, transform_indices = @transform_1, window_bounds = array<i64: 1, 24>}, {pipeline_mode = #tpu.pipeline_mode<synchronous>, transform_indices = @transform_2, window_bounds = array<i64: 24, 384>}, {pipeline_mode = #tpu.pipeline_mode<synchronous>, transform_indices = @transform_3, window_bounds = array<i64: 544, 128>}, {pipeline_mode = #tpu.pipeline_mode<synchronous>, transform_indices = @transform_4, window_bounds = array<i64: 1, 128>}]} {
    %0 = tpu.iota {dimensions = array<i32: 1>} : vector<1x128xi32>
    %c0_i32 = arith.constant 0 : i32
    %1 = vector.broadcast %c0_i32 : i32 to vector<1x128xi32>
    %2 = arith.cmpi eq, %0, %1 : vector<1x128xi32>
    %c32_i32 = arith.constant 32 : i32
    %3 = vector.broadcast %c32_i32 : i32 to vector<1x128xi32>
    %4 = arith.cmpi eq, %0, %3 : vector<1x128xi32>
    %c64_i32 = arith.constant 64 : i32
    %5 = vector.broadcast %c64_i32 : i32 to vector<1x128xi32>
    %6 = arith.cmpi eq, %0, %5 : vector<1x128xi32>
    %c96_i32 = arith.constant 96 : i32
    %7 = vector.broadcast %c96_i32 : i32 to vector<1x128xi32>
    %8 = arith.cmpi eq, %0, %7 : vector<1x128xi32>
    %9 = arith.ori %2, %4 : vector<1x128xi1>
    %10 = arith.ori %9, %6 : vector<1x128xi1>
    %11 = arith.ori %10, %8 : vector<1x128xi1>
    %c31_i32 = arith.constant 31 : i32
    %12 = vector.broadcast %c31_i32 : i32 to vector<1x128xi32>
    %13 = arith.cmpi eq, %0, %12 : vector<1x128xi32>
    %c63_i32 = arith.constant 63 : i32
    %14 = vector.broadcast %c63_i32 : i32 to vector<1x128xi32>
    %15 = arith.cmpi eq, %0, %14 : vector<1x128xi32>
    %c95_i32 = arith.constant 95 : i32
    %16 = vector.broadcast %c95_i32 : i32 to vector<1x128xi32>
    %17 = arith.cmpi eq, %0, %16 : vector<1x128xi32>
    %c127_i32 = arith.constant 127 : i32
    %18 = vector.broadcast %c127_i32 : i32 to vector<1x128xi32>
    %19 = arith.cmpi eq, %0, %18 : vector<1x128xi32>
    %20 = arith.ori %13, %15 : vector<1x128xi1>
    %21 = arith.ori %20, %17 : vector<1x128xi1>
    %22 = arith.ori %21, %19 : vector<1x128xi1>
    %c0 = arith.constant 0 : index
    %c0_0 = arith.constant 0 : index
    %23 = vector.load %arg4[%c0, %c0_0] : memref<544x128xf32, #tpu.memory_space<vmem>>, vector<128x128xf32>
    %c128 = arith.constant 128 : index
    %c0_1 = arith.constant 0 : index
    %24 = vector.load %arg4[%c128, %c0_1] : memref<544x128xf32, #tpu.memory_space<vmem>>, vector<128x128xf32>
    %c256 = arith.constant 256 : index
    %c0_2 = arith.constant 0 : index
    %25 = vector.load %arg4[%c256, %c0_2] : memref<544x128xf32, #tpu.memory_space<vmem>>, vector<128x128xf32>
    %c0_3 = arith.constant 0 : index
    %c0_4 = arith.constant 0 : index
    %26 = vector.load %arg2[%c0_3, %c0_4] : memref<1x24xf32, #tpu.memory_space<vmem>>, vector<1x24xf32>
    %c0_5 = arith.constant 0 : index
    %c0_6 = arith.constant 0 : index
    %27 = vector.load %arg3[%c0_5, %c0_6] : memref<24x384xf32, #tpu.memory_space<vmem>>, vector<24x384xf32>
    %cst = arith.constant dense<0.000000e+00> : vector<1x384xf32>
    %28 = tpu.matmul %26, %27, %cst {dimension_numbers = #tpu.dot_dimension_numbers<[1], [0], [0], [1], [0, 0, 1, 1], [], []>, precision = #tpu.contract_precision<fp32>} : vector<1x24xf32>, vector<24x384xf32>, vector<1x384xf32> -> vector<1x384xf32>
    %29 = vector.extract_strided_slice %28 {offsets = [0, 0], sizes = [1, 128], strides = [1, 1]} : vector<1x384xf32> to vector<1x128xf32>
    %30 = vector.extract_strided_slice %28 {offsets = [0, 128], sizes = [1, 128], strides = [1, 1]} : vector<1x384xf32> to vector<1x128xf32>
    %31 = vector.extract_strided_slice %28 {offsets = [0, 256], sizes = [1, 128], strides = [1, 1]} : vector<1x384xf32> to vector<1x128xf32>
    %c0_7 = arith.constant 0 : index
    %c0_8 = arith.constant 0 : index
    %32 = vector.load %arg1[%c0_7, %c0_8] : memref<1x128xf32, #tpu.memory_space<vmem>>, vector<1x128xf32>
    %cst_9 = arith.constant dense<0.000000e+00> : vector<1x128xf32>
    %33 = tpu.matmul %32, %23, %cst_9 {dimension_numbers = #tpu.dot_dimension_numbers<[1], [0], [0], [1], [0, 0, 1, 1], [], []>, precision = #tpu.contract_precision<fp32>} : vector<1x128xf32>, vector<128x128xf32>, vector<1x128xf32> -> vector<1x128xf32>
    %34 = arith.addf %33, %29 : vector<1x128xf32>
    %cst_10 = arith.constant 0.000000e+00 : f32
    %35 = vector.broadcast %cst_10 : f32 to vector<1x128xf32>
    %36 = arith.maximumf %34, %35 : vector<1x128xf32>
    %c384 = arith.constant 384 : index
    %c0_11 = arith.constant 0 : index
    %37 = vector.load %arg4[%c384, %c0_11] : memref<544x128xf32, #tpu.memory_space<vmem>>, vector<32x128xf32>
    %38 = vector.extract_strided_slice %37 {offsets = [0, 0], sizes = [32, 1], strides = [1, 1]} : vector<32x128xf32> to vector<32x1xf32>
    %39 = vector.extract_strided_slice %37 {offsets = [0, 1], sizes = [32, 1], strides = [1, 1]} : vector<32x128xf32> to vector<32x1xf32>
    %40 = vector.extract_strided_slice %37 {offsets = [0, 2], sizes = [32, 1], strides = [1, 1]} : vector<32x128xf32> to vector<32x1xf32>
    %41 = vector.extract_strided_slice %37 {offsets = [0, 3], sizes = [32, 1], strides = [1, 1]} : vector<32x128xf32> to vector<32x1xf32>
    %42 = vector.extract_strided_slice %37 {offsets = [0, 4], sizes = [32, 1], strides = [1, 1]} : vector<32x128xf32> to vector<32x1xf32>
    %43 = vector.extract_strided_slice %37 {offsets = [0, 5], sizes = [32, 1], strides = [1, 1]} : vector<32x128xf32> to vector<32x1xf32>
    %44 = vector.extract_strided_slice %37 {offsets = [0, 6], sizes = [32, 1], strides = [1, 1]} : vector<32x128xf32> to vector<32x1xf32>
    %c416 = arith.constant 416 : index
    %c0_12 = arith.constant 0 : index
    %45 = vector.load %arg4[%c416, %c0_12] : memref<544x128xf32, #tpu.memory_space<vmem>>, vector<32x128xf32>
    %46 = vector.extract_strided_slice %45 {offsets = [0, 0], sizes = [32, 96], strides = [1, 1]} : vector<32x128xf32> to vector<32x96xf32>
    %c1_i32 = arith.constant 1 : i32
    %47 = tpu.dynamic_rotate %36 by %c1_i32 dim 1 : vector<1x128xf32>, i32 -> vector<1x128xf32>
    %cst_13 = arith.constant 0.000000e+00 : f32
    %48 = vector.broadcast %cst_13 : f32 to vector<1x128xf32>
    %49 = arith.select %11, %48, %47 : vector<1x128xi1>, vector<1x128xf32>
    %c127_i32_14 = arith.constant 127 : i32
    %50 = tpu.dynamic_rotate %36 by %c127_i32_14 dim 1 : vector<1x128xf32>, i32 -> vector<1x128xf32>
    %cst_15 = arith.constant 0.000000e+00 : f32
    %51 = vector.broadcast %cst_15 : f32 to vector<1x128xf32>
    %52 = arith.select %22, %51, %50 : vector<1x128xi1>, vector<1x128xf32>
    %53 = vector.broadcast %42 : vector<32x1xf32> to vector<32x128xf32>
    %54 = vector.broadcast %36 : vector<1x128xf32> to vector<32x128xf32>
    %55 = arith.mulf %53, %54 : vector<32x128xf32>
    %56 = vector.broadcast %43 : vector<32x1xf32> to vector<32x128xf32>
    %57 = arith.addf %55, %56 : vector<32x128xf32>
    %58 = vector.broadcast %38 : vector<32x1xf32> to vector<32x128xf32>
    %59 = vector.broadcast %49 : vector<1x128xf32> to vector<32x128xf32>
    %60 = arith.mulf %58, %59 : vector<32x128xf32>
    %61 = vector.broadcast %39 : vector<32x1xf32> to vector<32x128xf32>
    %62 = vector.broadcast %36 : vector<1x128xf32> to vector<32x128xf32>
    %63 = arith.mulf %61, %62 : vector<32x128xf32>
    %64 = arith.addf %60, %63 : vector<32x128xf32>
    %65 = vector.broadcast %40 : vector<32x1xf32> to vector<32x128xf32>
    %66 = vector.broadcast %52 : vector<1x128xf32> to vector<32x128xf32>
    %67 = arith.mulf %65, %66 : vector<32x128xf32>
    %68 = arith.addf %64, %67 : vector<32x128xf32>
    %69 = vector.broadcast %41 : vector<32x1xf32> to vector<32x128xf32>
    %70 = arith.addf %68, %69 : vector<32x128xf32>
    %cst_16 = arith.constant 0.000000e+00 : f32
    %71 = vector.broadcast %cst_16 : f32 to vector<32x128xf32>
    %72 = arith.maximumf %70, %71 : vector<32x128xf32>
    %c1_i32_17 = arith.constant 1 : i32
    %73 = tpu.dynamic_rotate %72 by %c1_i32_17 dim 1 : vector<32x128xf32>, i32 -> vector<32x128xf32>
    %cst_18 = arith.constant 0.000000e+00 : f32
    %74 = vector.shape_cast %11 : vector<1x128xi1> to vector<1x128xi1>
    %75 = vector.broadcast %74 : vector<1x128xi1> to vector<32x128xi1>
    %76 = vector.broadcast %cst_18 : f32 to vector<32x128xf32>
    %77 = arith.select %75, %76, %73 : vector<32x128xi1>, vector<32x128xf32>
    %c127_i32_19 = arith.constant 127 : i32
    %78 = tpu.dynamic_rotate %72 by %c127_i32_19 dim 1 : vector<32x128xf32>, i32 -> vector<32x128xf32>
    %cst_20 = arith.constant 0.000000e+00 : f32
    %79 = vector.shape_cast %22 : vector<1x128xi1> to vector<1x128xi1>
    %80 = vector.broadcast %79 : vector<1x128xi1> to vector<32x128xi1>
    %81 = vector.broadcast %cst_20 : f32 to vector<32x128xf32>
    %82 = arith.select %80, %81, %78 : vector<32x128xi1>, vector<32x128xf32>
    %83 = tpu.concatenate %77, %72, %82 in 0 : vector<32x128xf32>, vector<32x128xf32>, vector<32x128xf32> -> vector<96x128xf32>
    %cst_21 = arith.constant dense<0.000000e+00> : vector<32x128xf32>
    %84 = tpu.matmul %46, %83, %cst_21 {dimension_numbers = #tpu.dot_dimension_numbers<[1], [0], [0], [1], [0, 0, 1, 1], [], []>, precision = #tpu.contract_precision<fp32>} : vector<32x96xf32>, vector<96x128xf32>, vector<32x128xf32> -> vector<32x128xf32>
    %85 = vector.broadcast %44 : vector<32x1xf32> to vector<32x128xf32>
    %86 = arith.addf %84, %85 : vector<32x128xf32>
    %87 = arith.addf %86, %57 : vector<32x128xf32>
    %cst_22 = arith.constant 0.000000e+00 : f32
    %88 = vector.broadcast %cst_22 : f32 to vector<32x128xf32>
    %89 = arith.maximumf %87, %88 : vector<32x128xf32>
    %c512 = arith.constant 512 : index
    %c0_23 = arith.constant 0 : index
    %90 = vector.load %arg4[%c512, %c0_23] : memref<544x128xf32, #tpu.memory_space<vmem>>, vector<8x128xf32>
    %91 = vector.extract_strided_slice %90 {offsets = [0, 0], sizes = [2, 96], strides = [1, 1]} : vector<8x128xf32> to vector<2x96xf32>
    %c520 = arith.constant 520 : index
    %c0_24 = arith.constant 0 : index
    %92 = vector.load %arg4[%c520, %c0_24] : memref<544x128xf32, #tpu.memory_space<vmem>>, vector<8x128xf32>
    %93 = vector.extract_strided_slice %92 {offsets = [0, 0], sizes = [1, 1], strides = [1, 1]} : vector<8x128xf32> to vector<1x1xf32>
    %94 = vector.extract_strided_slice %92 {offsets = [0, 1], sizes = [1, 1], strides = [1, 1]} : vector<8x128xf32> to vector<1x1xf32>
    %95 = vector.extract_strided_slice %92 {offsets = [0, 2], sizes = [1, 1], strides = [1, 1]} : vector<8x128xf32> to vector<1x1xf32>
    %96 = vector.extract_strided_slice %92 {offsets = [0, 3], sizes = [1, 1], strides = [1, 1]} : vector<8x128xf32> to vector<1x1xf32>
    %97 = vector.extract_strided_slice %92 {offsets = [0, 4], sizes = [1, 1], strides = [1, 1]} : vector<8x128xf32> to vector<1x1xf32>
    %98 = vector.extract_strided_slice %92 {offsets = [0, 5], sizes = [1, 1], strides = [1, 1]} : vector<8x128xf32> to vector<1x1xf32>
    %c1_i32_25 = arith.constant 1 : i32
    %99 = tpu.dynamic_rotate %89 by %c1_i32_25 dim 1 : vector<32x128xf32>, i32 -> vector<32x128xf32>
    %cst_26 = arith.constant 0.000000e+00 : f32
    %100 = vector.shape_cast %11 : vector<1x128xi1> to vector<1x128xi1>
    %101 = vector.broadcast %100 : vector<1x128xi1> to vector<32x128xi1>
    %102 = vector.broadcast %cst_26 : f32 to vector<32x128xf32>
    %103 = arith.select %101, %102, %99 : vector<32x128xi1>, vector<32x128xf32>
    %c127_i32_27 = arith.constant 127 : i32
    %104 = tpu.dynamic_rotate %89 by %c127_i32_27 dim 1 : vector<32x128xf32>, i32 -> vector<32x128xf32>
    %cst_28 = arith.constant 0.000000e+00 : f32
    %105 = vector.shape_cast %22 : vector<1x128xi1> to vector<1x128xi1>
    %106 = vector.broadcast %105 : vector<1x128xi1> to vector<32x128xi1>
    %107 = vector.broadcast %cst_28 : f32 to vector<32x128xf32>
    %108 = arith.select %106, %107, %104 : vector<32x128xi1>, vector<32x128xf32>
    %109 = tpu.concatenate %103, %89, %108 in 0 : vector<32x128xf32>, vector<32x128xf32>, vector<32x128xf32> -> vector<96x128xf32>
    %cst_29 = arith.constant dense<0.000000e+00> : vector<2x128xf32>
    %110 = tpu.matmul %91, %109, %cst_29 {dimension_numbers = #tpu.dot_dimension_numbers<[1], [0], [0], [1], [0, 0, 1, 1], [], []>, precision = #tpu.contract_precision<fp32>} : vector<2x96xf32>, vector<96x128xf32>, vector<2x128xf32> -> vector<2x128xf32>
    %111 = vector.extract_strided_slice %110 {offsets = [0, 0], sizes = [1, 128], strides = [1, 1]} : vector<2x128xf32> to vector<1x128xf32>
    %112 = vector.broadcast %93 : vector<1x1xf32> to vector<1x128xf32>
    %113 = arith.addf %111, %112 : vector<1x128xf32>
    %cst_30 = arith.constant 0.000000e+00 : f32
    %114 = vector.broadcast %cst_30 : f32 to vector<1x128xf32>
    %115 = arith.maximumf %113, %114 : vector<1x128xf32>
    %116 = vector.extract_strided_slice %110 {offsets = [1, 0], sizes = [1, 128], strides = [1, 1]} : vector<2x128xf32> to vector<1x128xf32>
    %117 = vector.broadcast %94 : vector<1x1xf32> to vector<1x128xf32>
    %118 = arith.addf %116, %117 : vector<1x128xf32>
    %c1_i32_31 = arith.constant 1 : i32
    %119 = tpu.dynamic_rotate %115 by %c1_i32_31 dim 1 : vector<1x128xf32>, i32 -> vector<1x128xf32>
    %cst_32 = arith.constant 0.000000e+00 : f32
    %120 = vector.broadcast %cst_32 : f32 to vector<1x128xf32>
    %121 = arith.select %11, %120, %119 : vector<1x128xi1>, vector<1x128xf32>
    %c127_i32_33 = arith.constant 127 : i32
    %122 = tpu.dynamic_rotate %115 by %c127_i32_33 dim 1 : vector<1x128xf32>, i32 -> vector<1x128xf32>
    %cst_34 = arith.constant 0.000000e+00 : f32
    %123 = vector.broadcast %cst_34 : f32 to vector<1x128xf32>
    %124 = arith.select %22, %123, %122 : vector<1x128xi1>, vector<1x128xf32>
    %125 = vector.broadcast %95 : vector<1x1xf32> to vector<1x128xf32>
    %126 = arith.mulf %125, %121 : vector<1x128xf32>
    %127 = vector.broadcast %96 : vector<1x1xf32> to vector<1x128xf32>
    %128 = arith.mulf %127, %115 : vector<1x128xf32>
    %129 = arith.addf %126, %128 : vector<1x128xf32>
    %130 = vector.broadcast %97 : vector<1x1xf32> to vector<1x128xf32>
    %131 = arith.mulf %130, %124 : vector<1x128xf32>
    %132 = arith.addf %129, %131 : vector<1x128xf32>
    %133 = vector.broadcast %98 : vector<1x1xf32> to vector<1x128xf32>
    %134 = arith.addf %132, %133 : vector<1x128xf32>
    %135 = arith.addf %134, %118 : vector<1x128xf32>
    %cst_35 = arith.constant 0.000000e+00 : f32
    %136 = vector.broadcast %cst_35 : f32 to vector<1x128xf32>
    %137 = arith.maximumf %135, %136 : vector<1x128xf32>
    %cst_36 = arith.constant dense<0.000000e+00> : vector<1x128xf32>
    %138 = tpu.matmul %137, %24, %cst_36 {dimension_numbers = #tpu.dot_dimension_numbers<[1], [0], [0], [1], [0, 0, 1, 1], [], []>, precision = #tpu.contract_precision<fp32>} : vector<1x128xf32>, vector<128x128xf32>, vector<1x128xf32> -> vector<1x128xf32>
    %139 = arith.addf %138, %30 : vector<1x128xf32>
    %cst_37 = arith.constant 0.000000e+00 : f32
    %140 = vector.broadcast %cst_37 : f32 to vector<1x128xf32>
    %141 = arith.maximumf %139, %140 : vector<1x128xf32>
    %c448 = arith.constant 448 : index
    %c0_38 = arith.constant 0 : index
    %142 = vector.load %arg4[%c448, %c0_38] : memref<544x128xf32, #tpu.memory_space<vmem>>, vector<32x128xf32>
    %143 = vector.extract_strided_slice %142 {offsets = [0, 0], sizes = [32, 1], strides = [1, 1]} : vector<32x128xf32> to vector<32x1xf32>
    %144 = vector.extract_strided_slice %142 {offsets = [0, 1], sizes = [32, 1], strides = [1, 1]} : vector<32x128xf32> to vector<32x1xf32>
    %145 = vector.extract_strided_slice %142 {offsets = [0, 2], sizes = [32, 1], strides = [1, 1]} : vector<32x128xf32> to vector<32x1xf32>
    %146 = vector.extract_strided_slice %142 {offsets = [0, 3], sizes = [32, 1], strides = [1, 1]} : vector<32x128xf32> to vector<32x1xf32>
    %147 = vector.extract_strided_slice %142 {offsets = [0, 4], sizes = [32, 1], strides = [1, 1]} : vector<32x128xf32> to vector<32x1xf32>
    %148 = vector.extract_strided_slice %142 {offsets = [0, 5], sizes = [32, 1], strides = [1, 1]} : vector<32x128xf32> to vector<32x1xf32>
    %149 = vector.extract_strided_slice %142 {offsets = [0, 6], sizes = [32, 1], strides = [1, 1]} : vector<32x128xf32> to vector<32x1xf32>
    %c480 = arith.constant 480 : index
    %c0_39 = arith.constant 0 : index
    %150 = vector.load %arg4[%c480, %c0_39] : memref<544x128xf32, #tpu.memory_space<vmem>>, vector<32x128xf32>
    %151 = vector.extract_strided_slice %150 {offsets = [0, 0], sizes = [32, 96], strides = [1, 1]} : vector<32x128xf32> to vector<32x96xf32>
    %c1_i32_40 = arith.constant 1 : i32
    %152 = tpu.dynamic_rotate %141 by %c1_i32_40 dim 1 : vector<1x128xf32>, i32 -> vector<1x128xf32>
    %cst_41 = arith.constant 0.000000e+00 : f32
    %153 = vector.broadcast %cst_41 : f32 to vector<1x128xf32>
    %154 = arith.select %11, %153, %152 : vector<1x128xi1>, vector<1x128xf32>
    %c127_i32_42 = arith.constant 127 : i32
    %155 = tpu.dynamic_rotate %141 by %c127_i32_42 dim 1 : vector<1x128xf32>, i32 -> vector<1x128xf32>
    %cst_43 = arith.constant 0.000000e+00 : f32
    %156 = vector.broadcast %cst_43 : f32 to vector<1x128xf32>
    %157 = arith.select %22, %156, %155 : vector<1x128xi1>, vector<1x128xf32>
    %158 = vector.broadcast %147 : vector<32x1xf32> to vector<32x128xf32>
    %159 = vector.broadcast %141 : vector<1x128xf32> to vector<32x128xf32>
    %160 = arith.mulf %158, %159 : vector<32x128xf32>
    %161 = vector.broadcast %148 : vector<32x1xf32> to vector<32x128xf32>
    %162 = arith.addf %160, %161 : vector<32x128xf32>
    %163 = vector.broadcast %143 : vector<32x1xf32> to vector<32x128xf32>
    %164 = vector.broadcast %154 : vector<1x128xf32> to vector<32x128xf32>
    %165 = arith.mulf %163, %164 : vector<32x128xf32>
    %166 = vector.broadcast %144 : vector<32x1xf32> to vector<32x128xf32>
    %167 = vector.broadcast %141 : vector<1x128xf32> to vector<32x128xf32>
    %168 = arith.mulf %166, %167 : vector<32x128xf32>
    %169 = arith.addf %165, %168 : vector<32x128xf32>
    %170 = vector.broadcast %145 : vector<32x1xf32> to vector<32x128xf32>
    %171 = vector.broadcast %157 : vector<1x128xf32> to vector<32x128xf32>
    %172 = arith.mulf %170, %171 : vector<32x128xf32>
    %173 = arith.addf %169, %172 : vector<32x128xf32>
    %174 = vector.broadcast %146 : vector<32x1xf32> to vector<32x128xf32>
    %175 = arith.addf %173, %174 : vector<32x128xf32>
    %cst_44 = arith.constant 0.000000e+00 : f32
    %176 = vector.broadcast %cst_44 : f32 to vector<32x128xf32>
    %177 = arith.maximumf %175, %176 : vector<32x128xf32>
    %c1_i32_45 = arith.constant 1 : i32
    %178 = tpu.dynamic_rotate %177 by %c1_i32_45 dim 1 : vector<32x128xf32>, i32 -> vector<32x128xf32>
    %cst_46 = arith.constant 0.000000e+00 : f32
    %179 = vector.shape_cast %11 : vector<1x128xi1> to vector<1x128xi1>
    %180 = vector.broadcast %179 : vector<1x128xi1> to vector<32x128xi1>
    %181 = vector.broadcast %cst_46 : f32 to vector<32x128xf32>
    %182 = arith.select %180, %181, %178 : vector<32x128xi1>, vector<32x128xf32>
    %c127_i32_47 = arith.constant 127 : i32
    %183 = tpu.dynamic_rotate %177 by %c127_i32_47 dim 1 : vector<32x128xf32>, i32 -> vector<32x128xf32>
    %cst_48 = arith.constant 0.000000e+00 : f32
    %184 = vector.shape_cast %22 : vector<1x128xi1> to vector<1x128xi1>
    %185 = vector.broadcast %184 : vector<1x128xi1> to vector<32x128xi1>
    %186 = vector.broadcast %cst_48 : f32 to vector<32x128xf32>
    %187 = arith.select %185, %186, %183 : vector<32x128xi1>, vector<32x128xf32>
    %188 = tpu.concatenate %182, %177, %187 in 0 : vector<32x128xf32>, vector<32x128xf32>, vector<32x128xf32> -> vector<96x128xf32>
    %cst_49 = arith.constant dense<0.000000e+00> : vector<32x128xf32>
    %189 = tpu.matmul %151, %188, %cst_49 {dimension_numbers = #tpu.dot_dimension_numbers<[1], [0], [0], [1], [0, 0, 1, 1], [], []>, precision = #tpu.contract_precision<fp32>} : vector<32x96xf32>, vector<96x128xf32>, vector<32x128xf32> -> vector<32x128xf32>
    %190 = vector.broadcast %149 : vector<32x1xf32> to vector<32x128xf32>
    %191 = arith.addf %189, %190 : vector<32x128xf32>
    %192 = arith.addf %191, %162 : vector<32x128xf32>
    %cst_50 = arith.constant 0.000000e+00 : f32
    %193 = vector.broadcast %cst_50 : f32 to vector<32x128xf32>
    %194 = arith.maximumf %192, %193 : vector<32x128xf32>
    %c528 = arith.constant 528 : index
    %c0_51 = arith.constant 0 : index
    %195 = vector.load %arg4[%c528, %c0_51] : memref<544x128xf32, #tpu.memory_space<vmem>>, vector<8x128xf32>
    %196 = vector.extract_strided_slice %195 {offsets = [0, 0], sizes = [2, 96], strides = [1, 1]} : vector<8x128xf32> to vector<2x96xf32>
    %c536 = arith.constant 536 : index
    %c0_52 = arith.constant 0 : index
    %197 = vector.load %arg4[%c536, %c0_52] : memref<544x128xf32, #tpu.memory_space<vmem>>, vector<8x128xf32>
    %198 = vector.extract_strided_slice %197 {offsets = [0, 0], sizes = [1, 1], strides = [1, 1]} : vector<8x128xf32> to vector<1x1xf32>
    %199 = vector.extract_strided_slice %197 {offsets = [0, 1], sizes = [1, 1], strides = [1, 1]} : vector<8x128xf32> to vector<1x1xf32>
    %200 = vector.extract_strided_slice %197 {offsets = [0, 2], sizes = [1, 1], strides = [1, 1]} : vector<8x128xf32> to vector<1x1xf32>
    %201 = vector.extract_strided_slice %197 {offsets = [0, 3], sizes = [1, 1], strides = [1, 1]} : vector<8x128xf32> to vector<1x1xf32>
    %202 = vector.extract_strided_slice %197 {offsets = [0, 4], sizes = [1, 1], strides = [1, 1]} : vector<8x128xf32> to vector<1x1xf32>
    %203 = vector.extract_strided_slice %197 {offsets = [0, 5], sizes = [1, 1], strides = [1, 1]} : vector<8x128xf32> to vector<1x1xf32>
    %c1_i32_53 = arith.constant 1 : i32
    %204 = tpu.dynamic_rotate %194 by %c1_i32_53 dim 1 : vector<32x128xf32>, i32 -> vector<32x128xf32>
    %cst_54 = arith.constant 0.000000e+00 : f32
    %205 = vector.shape_cast %11 : vector<1x128xi1> to vector<1x128xi1>
    %206 = vector.broadcast %205 : vector<1x128xi1> to vector<32x128xi1>
    %207 = vector.broadcast %cst_54 : f32 to vector<32x128xf32>
    %208 = arith.select %206, %207, %204 : vector<32x128xi1>, vector<32x128xf32>
    %c127_i32_55 = arith.constant 127 : i32
    %209 = tpu.dynamic_rotate %194 by %c127_i32_55 dim 1 : vector<32x128xf32>, i32 -> vector<32x128xf32>
    %cst_56 = arith.constant 0.000000e+00 : f32
    %210 = vector.shape_cast %22 : vector<1x128xi1> to vector<1x128xi1>
    %211 = vector.broadcast %210 : vector<1x128xi1> to vector<32x128xi1>
    %212 = vector.broadcast %cst_56 : f32 to vector<32x128xf32>
    %213 = arith.select %211, %212, %209 : vector<32x128xi1>, vector<32x128xf32>
    %214 = tpu.concatenate %208, %194, %213 in 0 : vector<32x128xf32>, vector<32x128xf32>, vector<32x128xf32> -> vector<96x128xf32>
    %cst_57 = arith.constant dense<0.000000e+00> : vector<2x128xf32>
    %215 = tpu.matmul %196, %214, %cst_57 {dimension_numbers = #tpu.dot_dimension_numbers<[1], [0], [0], [1], [0, 0, 1, 1], [], []>, precision = #tpu.contract_precision<fp32>} : vector<2x96xf32>, vector<96x128xf32>, vector<2x128xf32> -> vector<2x128xf32>
    %216 = vector.extract_strided_slice %215 {offsets = [0, 0], sizes = [1, 128], strides = [1, 1]} : vector<2x128xf32> to vector<1x128xf32>
    %217 = vector.broadcast %198 : vector<1x1xf32> to vector<1x128xf32>
    %218 = arith.addf %216, %217 : vector<1x128xf32>
    %cst_58 = arith.constant 0.000000e+00 : f32
    %219 = vector.broadcast %cst_58 : f32 to vector<1x128xf32>
    %220 = arith.maximumf %218, %219 : vector<1x128xf32>
    %221 = vector.extract_strided_slice %215 {offsets = [1, 0], sizes = [1, 128], strides = [1, 1]} : vector<2x128xf32> to vector<1x128xf32>
    %222 = vector.broadcast %199 : vector<1x1xf32> to vector<1x128xf32>
    %223 = arith.addf %221, %222 : vector<1x128xf32>
    %c1_i32_59 = arith.constant 1 : i32
    %224 = tpu.dynamic_rotate %220 by %c1_i32_59 dim 1 : vector<1x128xf32>, i32 -> vector<1x128xf32>
    %cst_60 = arith.constant 0.000000e+00 : f32
    %225 = vector.broadcast %cst_60 : f32 to vector<1x128xf32>
    %226 = arith.select %11, %225, %224 : vector<1x128xi1>, vector<1x128xf32>
    %c127_i32_61 = arith.constant 127 : i32
    %227 = tpu.dynamic_rotate %220 by %c127_i32_61 dim 1 : vector<1x128xf32>, i32 -> vector<1x128xf32>
    %cst_62 = arith.constant 0.000000e+00 : f32
    %228 = vector.broadcast %cst_62 : f32 to vector<1x128xf32>
    %229 = arith.select %22, %228, %227 : vector<1x128xi1>, vector<1x128xf32>
    %230 = vector.broadcast %200 : vector<1x1xf32> to vector<1x128xf32>
    %231 = arith.mulf %230, %226 : vector<1x128xf32>
    %232 = vector.broadcast %201 : vector<1x1xf32> to vector<1x128xf32>
    %233 = arith.mulf %232, %220 : vector<1x128xf32>
    %234 = arith.addf %231, %233 : vector<1x128xf32>
    %235 = vector.broadcast %202 : vector<1x1xf32> to vector<1x128xf32>
    %236 = arith.mulf %235, %229 : vector<1x128xf32>
    %237 = arith.addf %234, %236 : vector<1x128xf32>
    %238 = vector.broadcast %203 : vector<1x1xf32> to vector<1x128xf32>
    %239 = arith.addf %237, %238 : vector<1x128xf32>
    %240 = arith.addf %239, %223 : vector<1x128xf32>
    %cst_63 = arith.constant 0.000000e+00 : f32
    %241 = vector.broadcast %cst_63 : f32 to vector<1x128xf32>
    %242 = arith.maximumf %240, %241 : vector<1x128xf32>
    %cst_64 = arith.constant dense<0.000000e+00> : vector<1x128xf32>
    %243 = tpu.matmul %242, %25, %cst_64 {dimension_numbers = #tpu.dot_dimension_numbers<[1], [0], [0], [1], [0, 0, 1, 1], [], []>, precision = #tpu.contract_precision<fp32>} : vector<1x128xf32>, vector<128x128xf32>, vector<1x128xf32> -> vector<1x128xf32>
    %244 = arith.addf %243, %31 : vector<1x128xf32>
    %c0_65 = arith.constant 0 : index
    %c0_66 = arith.constant 0 : index
    %245 = vector.load %arg5[%c0_65, %c0_66] : memref<1x128xf32, #tpu.memory_space<vmem>>, vector<1x128xf32>
    tpu.vector_store %arg5[%c0_65, %c0_66], %244 {strides = array<i32>} : memref<1x128xf32, #tpu.memory_space<vmem>>, vector<1x128xf32>,
    return
  }
  func.func @transform_0(%arg0: i32) -> (i32, i32) {
    %c0_i32 = arith.constant 0 : i32
    %c0_i32_0 = arith.constant 0 : i32
    %c0_i32_1 = arith.constant 0 : i32
    return %c0_i32, %c0_i32_0 : i32, i32
  }
  func.func @transform_1(%arg0: i32) -> (i32, i32) {
    %c0_i32 = arith.constant 0 : i32
    %c0_i32_0 = arith.constant 0 : i32
    %c0_i32_1 = arith.constant 0 : i32
    return %c0_i32, %c0_i32_0 : i32, i32
  }
  func.func @transform_2(%arg0: i32) -> (i32, i32) {
    %c0_i32 = arith.constant 0 : i32
    %c0_i32_0 = arith.constant 0 : i32
    %c0_i32_1 = arith.constant 0 : i32
    return %c0_i32, %c0_i32_0 : i32, i32
  }
  func.func @transform_3(%arg0: i32) -> (i32, i32) {
    %c0_i32 = arith.constant 0 : i32
    %c0_i32_0 = arith.constant 0 : i32
    %c0_i32_1 = arith.constant 0 : i32
    return %c0_i32, %c0_i32_0 : i32, i32
  }
  func.func @transform_4(%arg0: i32) -> (i32, i32) {
    %c0_i32 = arith.constant 0 : i32
    %c0_i32_0 = arith.constant 0 : i32
    %c0_i32_1 = arith.constant 0 : i32
    return %c0_i32, %c0_i32_0 : i32, i32
  }
}

</mosaic_0001>

<bundles_post_ra>
// kernel: squeeze.1
= control target key start
LH: loop header
LB: loop body
LE: loop exit
PB: predicated region body
PF: predicated region fallthrough
CT: control target
= control target key end

     0   :  { %s139_s0 = inlined_call_operand.vmem [shape: f32[64], index: 0, kind: input, shape index: {}]   ;;  %s140_s1 = inlined_call_operand.hbm [shape: f32[2,1,4,8], index: 1, kind: output, shape index: {}]  }
   0x1   :  { %v6_v0 = vld [vmem:[%s139_s0] sm:$0x1] }
   0x2   :  { %7 = vst [vmem:[#allocation3] sm:$0x1] %v6_v0 }
   0x3   :  { %2 = vsyncpa [#allocation1], 0  ;;  %s107_s0 = smov 120   ;;  %s108_s8 = smov 104   ;;  %vm9_vm0 = vcmask 64512  }
   0x4   :  { %s109_s9 = smov 112   ;;  %s110_s10 = smov 96  }
   0x5   :  { %s111_s11 = smov 88   ;;  %s112_s12 = smov 80  }
   0x6   :  { %s113_s13 = smov 72   ;;  %s114_s14 = smov [#allocation0]  }
   0x7   :  { %s71_s15 = sshll.u32 %s114_s14, 4  ;;  %s72_s15 = int_to_ptr.vmem [resolvable:$true] %s71_s15 }
   0x8   :  { %s85_s16 = scalar_lea.vmem %s72_s15, 128  ;;  %p90_p1 = scmp.lt.s32.totalorder %s72_s15, %s72_s15 }
   0x9   :  { %v11_v1 = vld [vmem:[#allocation3] sm:$0x1]   ;;  %p86_p0 = scmp.ne.s32.totalorder %s72_s15, %s85_s16  ;;  %p91_p2 = scmp.lt.s32.totalorder %s85_s16, %s85_s16 }
   0xa   :  { %v23_v2 = vld [vmem:[#allocation3] sm:$0x1]   ;;  %12 = vrot.lane.b32.xlu0 %v11_v1, %s107_s0 }
   0xb   :  { %24 = vrot.lane.b32.xlu1 %v23_v2, %s108_s8  ;;  %v17_v3 = vld [vmem:[#allocation3] sm:$0x1]   ;;  %p92_p3 = por %p91_p2, %p90_p1 }
   0xc   :  { %v29_v4 = vld [vmem:[#allocation3] sm:$0x1]  }
   0xd   :  { %v8_v5 = vld [vmem:[#allocation3] sm:$0x1]   ;;  %p93_p4 = pnand %p92_p3, %p86_p0 }
   0xe   :  { %10 = vst.msk [vmem:[#allocation2] sm:$0x1] %vm9_vm0, %v8_v5   ;;  %18 = vrot.lane.b32.xlu0 %v17_v3, %s109_s9  ;;  %v35_v6 = vld [vmem:[#allocation3] sm:$0x1]  }
   0xf   :  { %30 = vrot.lane.b32.xlu1 %v29_v4, %s110_s10  ;;  %v41_v7 = vld [vmem:[#allocation3] sm:$0x1]  }
  0x10   :  { %v47_v8 = vld [vmem:[#allocation3] sm:$0x1]  }
  0x12   :  { %36 = vrot.lane.b32.xlu0 %v35_v6, %s111_s11 }
  0x13   :  { %42 = vrot.lane.b32.xlu1 %v41_v7, %s112_s12 }
  0x16   :  { %48 = vrot.lane.b32.xlu0 %v47_v8, %s113_s13 }
  0x7c   :  { %v13_v9 = vpop.permute.xlu0 %12  }
  0x7d   :  { %v25_v10 = vpop.permute.xlu1 %24   ;;  %16 = vst.msk [vmem:[#allocation2 + $0x1] sm:$0x1] %vm9_vm0, %v13_v9  }
  0x7e   :  { %28 = vst.msk [vmem:[#allocation2 + $0x3] sm:$0x1] %vm9_vm0, %v25_v10  }
  0x80   :  { %v19_v11 = vpop.permute.xlu0 %18  }
  0x81   :  { %v31_v12 = vpop.permute.xlu1 %30   ;;  %22 = vst.msk [vmem:[#allocation2 + $0x2] sm:$0x1] %vm9_vm0, %v19_v11  }
  0x82   :  { %34 = vst.msk [vmem:[#allocation2 + $0x8] sm:$0x1] %vm9_vm0, %v31_v12  }
  0x84   :  { %v37_v13 = vpop.permute.xlu0 %36  }
  0x85   :  { %v43_v14 = vpop.permute.xlu1 %42   ;;  %40 = vst.msk [vmem:[#allocation2 + $0x9] sm:$0x1] %vm9_vm0, %v37_v13  }
  0x86   :  { %46 = vst.msk [vmem:[#allocation2 + $0xa] sm:$0x1] %vm9_vm0, %v43_v14  }
  0x88   :  { %v49_v15 = vpop.permute.xlu0 %48   ;;  %v57_v16 = vld [vmem:[#allocation2] sm:$0xf] }
  0x89   :  { %52 = vst.msk [vmem:[#allocation2 + $0xb] sm:$0x1] %vm9_vm0, %v49_v15   ;;  %60 = vst [vmem:[#allocation0] sm:$0xf] %v57_v16 }
  0x90   :  { %v62_v17 = vld [vmem:[#allocation2 + $0x8] sm:$0xf] }
  0x91   :  { %66 = vst [vmem:[#allocation0 + $0x4] sm:$0xf] %v62_v17 }
  0x92   :  { %96 = shalt.err (!%p93_p4)
}
  0x93   :  { %74 = dma.vmem_to_hbm [thread:$0]  %s72_s15, 128, %s140_s1, [#allocation1]  }
  0x94   :  { %105 = dma.done.wait [#allocation1], 128  }
  0x95   :  { %106 = vsyncadd [#allocation1], 4294967168 }
  0x96   :  { %76 = vsyncpa [#allocation1], 1 }

// kernel: improved_fc_net_forward.1
= control target key start
LH: loop header
LB: loop body
LE: loop exit
PB: predicated region body
PF: predicated region fallthrough
CT: control target
= control target key end

     0   :  { %v11373_v3 = vmov 0.0   ;;  %vm91_vm0 = vcmask 195584   ;;  %vm8339_vm1 = vmmov 0   ;;  %s8344_s20 = smov 1   ;;  %s8345_s21 = smov 127   ;;  %s11340_s2 = inlined_call_operand.vmem [shape: f32[24,384], index: 2, kind: input, shape index: {}]   ;;  %s11341_s1 = inlined_call_operand.vmem [shape: f32[1,24], index: 1, kind: input, shape index: {}]   ;;  %s11342_s3 = inlined_call_operand.vmem [shape: f32[544,128], index: 3, kind: input, shape index: {}]   ;;  %s11343_s0 = inlined_call_operand.vmem [shape: f32[1,128], index: 0, kind: input, shape index: {}]   ;;  %s11344_s4 = inlined_call_operand.vmem [shape: f32[1,128], index: 4, kind: output, shape index: {}]  }
   0x1   :  { %v89_v0 = vld [vmem:[%s11340_s2 + $0x38] sm:$0xff]  ;;  %v88_v1 = vld [vmem:[%s11340_s2 + $0x30] sm:$0xff]  ;;  %v86_v2 = vld [vmem:[%s11340_s2 + $0x20] sm:$0xff]  ;;  %165 = vmatprep.mubr.f32.mxu0 %v11373_v3  ;;  %271 = vmatprep.mubr.f32.mxu1 %v11373_v3 }
   0x2   :  { %v8385_v4 = vand.u32 4294901760, %v89_v0  ;;  %v8387_v5 = vand.u32 4294901760, %v88_v1  ;;  %v8389_v6 = vand.u32 4294901760, %v86_v2  ;;  %v85_v7 = vld [vmem:[%s11340_s2 + $0x18] sm:$0xff]  ;;  %v83_v8 = vld [vmem:[%s11340_s2 + $0x8] sm:$0xff]  ;;  %v82_v9 = vld [vmem:[%s11340_s2] sm:$0xff] }
   0x3   :  { %v8400_v10 = vand.u32 4294901760, %v85_v7  ;;  %v8402_v11 = vand.u32 4294901760, %v83_v8  ;;  %v8404_v12 = vand.u32 4294901760, %v82_v9  ;;  %v81_v13 = vld [vmem:[%s11341_s1] sm:$0x1]  ;;  %v87_v45 = vld [vmem:[%s11340_s2 + $0x28] sm:$0xff] }
   0x4   :  { %122 = vmatprep.subr.mxu0 %v8385_v4  ;;  %v204_v14 = vsub.f32 %v89_v0, %v8385_v4  ;;  %v93_v15 = vsel %vm91_vm0, %v81_v13, 0  ;;  %v210_v16 = vsub.f32 %v88_v1, %v8387_v5  ;;  %v216_v17 = vsub.f32 %v86_v2, %v8389_v6  ;;  %v90_v44 = vld [vmem:[%s11340_s2 + $0x40] sm:$0xff]  ;;  %v84_v47 = vld [vmem:[%s11340_s2 + $0x10] sm:$0xff]  ;;  %v48_v62 = vld [vmem:[%s11342_s3 + $0x78] sm:$0xff] }
   0x5   :  { %124 = vmatpush1.msra.mxu0 %v8387_v5  ;;  %v8414_v18 = vand.u32 4294901760, %v93_v15  ;;  %v222_v19 = vsub.f32 %v85_v7, %v8400_v10  ;;  %v228_v20 = vsub.f32 %v83_v8, %v8402_v11  ;;  %v8419_v21 = vsub.f32 %v82_v9, %v8404_v12  ;;  %v47_v63 = vld [vmem:[%s11342_s3 + $0x70] sm:$0xff]  ;;  %v46_v1 = vld [vmem:[%s11342_s3 + $0x68] sm:$0xff]  ;;  %v44_v8 = vld [vmem:[%s11342_s3 + $0x58] sm:$0xff] }
   0x6   :  { %126 = vmatprep.subr.mxu0 %v8389_v6  ;;  %v205_v22 = vand.u32 4294901760, %v204_v14  ;;  %v211_v23 = vand.u32 4294901760, %v210_v16  ;;  %v217_v24 = vand.u32 4294901760, %v216_v17  ;;  %v8445_v46 = vand.u32 4294901760, %v90_v44 }
   0x7   :  { %128 = vmatpush1.msra.mxu0 %v8400_v10  ;;  %v8424_v25 = vsub.f32 %v93_v15, %v8414_v18  ;;  %v223_v26 = vand.u32 4294901760, %v222_v19  ;;  %v229_v27 = vand.u32 4294901760, %v228_v20  ;;  %v235_v28 = vand.u32 4294901760, %v8419_v21  ;;  %v42_v15 = vld [vmem:[%s11342_s3 + $0x48] sm:$0xff] }
   0x8   :  { %130 = vmatprep.subr.mxu0 %v8402_v11  ;;  %v206_v29 = vsub.f32 %v204_v14, %v205_v22  ;;  %v212_v30 = vsub.f32 %v210_v16, %v211_v23  ;;  %v218_v31 = vsub.f32 %v216_v17, %v217_v24  ;;  %v8453_v48 = vand.u32 4294901760, %v87_v45 }
   0x9   :  { %132 = vmatpush1.msra.mxu0 %v8404_v12  ;;  %v8430_v32 = vand.u32 4294901760, %v8424_v25  ;;  %v224_v33 = vsub.f32 %v222_v19, %v223_v26  ;;  %v230_v34 = vsub.f32 %v228_v20, %v229_v27  ;;  %v236_v35 = vsub.f32 %v8419_v21, %v235_v28 }
   0xa   :  { %v207_v36 = vand.u32 4294901760, %v206_v29  ;;  %307 = vmatprep.subr.mxu0 %v204_v14  ;;  %v213_v37 = vand.u32 4294901760, %v212_v30  ;;  %v219_v38 = vand.u32 4294901760, %v218_v31  ;;  %v8458_v49 = vsub.f32 %v90_v44, %v8445_v46  ;;  %v39_v30 = vld [vmem:[%s11342_s3 + $0x30] sm:$0xff] }
   0xb   :  { %v169_v39 = vsub.f32 %v8424_v25, %v8430_v32  ;;  %v225_v40 = vand.u32 4294901760, %v224_v33  ;;  %v231_v41 = vand.u32 4294901760, %v230_v34  ;;  %v237_v43 = vand.u32 4294901760, %v236_v35 }
   0xc   :  { %208 = vmatprep.subr.mxu1 %v207_v36  ;;  %v8460_v50 = vand.u32 4294901760, %v84_v47  ;;  %v8465_v51 = vsub.f32 %v87_v45, %v8453_v48  ;;  %v719_v53 = vand.u32 4294901760, %v8458_v49  ;;  %v8515_v0 = vand.u32 4294901760, %v48_v62  ;;  %v38_v36 = vld [vmem:[%s11342_s3 + $0x28] sm:$0xff] }
   0xd   :  { %v8435_v42 = vand.u32 4294901760, %v169_v39  ;;  %214 = vmatpush1.msra.mxu1 %v213_v37  ;;  %v8524_v2 = vand.u32 4294901760, %v47_v63  ;;  %v8560_v13 = vand.u32 4294901760, %v44_v8  ;;  %v8656_v45 = vand.u32 4294901760, %v38_v36 }
   0xe   :  { %220 = vmatprep.subr.mxu1 %v219_v38  ;;  %v8471_v52 = vsub.f32 %v84_v47, %v8460_v50  ;;  %v726_v54 = vand.u32 4294901760, %v8465_v51  ;;  %v720_v55 = vsub.f32 %v8458_v49, %v719_v53  ;;  %vm1933_vm0 = vcmask 785408  }
   0xf   :  { %171 = vmatmul.mubr.f32.vlgmr.msra.gmra.mxu0 %v8435_v42  ;;  %226 = vmatpush1.msra.mxu1 %v225_v40  ;;  %v8548_v9 = vsub.f32 %v47_v63, %v8524_v2  ;;  %v8641_v40 = vand.u32 4294901760, %v39_v30 }
  0x10   :  { %310 = vmatpush1.msra.mxu0 %v210_v16  ;;  %232 = vmatprep.subr.mxu1 %v231_v41  ;;  %v733_v56 = vand.u32 4294901760, %v8471_v52  ;;  %v727_v57 = vsub.f32 %v8465_v51, %v726_v54  ;;  %v721_v58 = vand.u32 4294901760, %v720_v55  ;;  %v8683_v55 = vsub.f32 %v38_v36, %v8656_v45 }
  0x11   :  { %313 = vmatprep.subr.mxu0 %v216_v17  ;;  %238 = vmatpush1.msra.mxu1 %v237_v43  ;;  %v1186_v16 = vand.u32 4294901760, %v8548_v9 }
  0x12   :  { %316 = vmatpush1.msra.mxu0 %v222_v19  ;;  %273 = vmatmul.mubr.f32.vlgmr.msra.gmra.mxu1 %v8414_v18  ;;  %v734_v59 = vsub.f32 %v8471_v52, %v733_v56  ;;  %v728_v60 = vand.u32 4294901760, %v727_v57  ;;  %v35_v57 = vld [vmem:[%s11342_s3 + $0x10] sm:$0xff] }
  0x13   :  { %319 = vmatprep.subr.mxu0 %v228_v20  ;;  %355 = vmatprep.mubr.f32.mxu0 %v11373_v3  ;;  %v41_v20 = vld [vmem:[%s11342_s3 + $0x40] sm:$0xff] }
  0x14   :  { %322 = vmatpush1.msra.mxu0 %v8419_v21  ;;  %391 = vmatprep.subr.mxu1 %v8385_v4  ;;  %v735_v61 = vand.u32 4294901760, %v734_v59 }
  0x15   :  { %473 = vmatprep.subr.mxu0 %v205_v22  ;;  %358 = vmatmul.mubr.f32.vlgmr.msra.gmra.mxu0 %v8424_v25  ;;  %v8590_v22 = vsub.f32 %v44_v8, %v8560_v13 }
  0x16   :  { %393 = vmatpush1.msra.mxu1 %v8387_v5  ;;  %477 = vmatpush1.msra.mxu0 %v211_v23  ;;  %v8592_v23 = vand.u32 4294901760, %v42_v15 }
  0x17   :  { %395 = vmatprep.subr.mxu1 %v8389_v6  ;;  %481 = vmatprep.subr.mxu0 %v217_v24  ;;  %v1207_v33 = vand.u32 4294901760, %v8590_v22 }
  0x18   :  { %397 = vmatpush1.msra.mxu1 %v8400_v10  ;;  %485 = vmatpush1.msra.mxu0 %v223_v26  ;;  %v1187_v26 = vsub.f32 %v8548_v9, %v1186_v16 }
  0x19   :  { %399 = vmatprep.subr.mxu1 %v8402_v11  ;;  %489 = vmatprep.subr.mxu0 %v229_v27 }
  0x1a   :  { %401 = vmatpush1.msra.mxu1 %v8404_v12  ;;  %434 = vmatprep.mubr.f32.mxu1 %v11373_v3  ;;  %v1188_v37 = vand.u32 4294901760, %v1187_v26 }
  0x1b   :  { %493 = vmatpush1.msra.mxu0 %v235_v28  ;;  %438 = vmatmul.mubr.f32.vlgmr.msra.gmra.mxu1 %v8430_v32  ;;  %v8608_v28 = vand.u32 4294901760, %v41_v20 }
  0x1c   :  { %526 = vmatprep.mubr.f32.mxu0 %v11373_v3  ;;  %561 = vmatprep.subr.mxu1 %v8385_v4  ;;  %v45_v4 = vld [vmem:[%s11342_s3 + $0x60] sm:$0xff] }
  0x1d   :  { %6906 = vmatprep.subr.mxu0 %v11373_v3  ;;  %528 = vmatmul.mubr.f32.vlgmr.msra.gmra.mxu0 %v8414_v18  ;;  %v8540_v7 = vand.u32 4294901760, %v45_v4  ;;  %v8638_v38 = vsub.f32 %v41_v20, %v8608_v28  ;;  %v33_v20 = vld [vmem:[%s11342_s3] sm:$0xff] }
  0x1e   :  { %563 = vmatpush1.msra.mxu1 %v8387_v5  ;;  %6907 = vmatpush3.msra.mxu0 %v8445_v46  ;;  %v8532_v5 = vand.u32 4294901760, %v46_v1  ;;  %v8738_v36 = vand.u32 4294901760, %v33_v20 }
  0x1f   :  { %565 = vmatprep.subr.mxu1 %v8389_v6  ;;  %6908 = vmatprep.subr.mxu0 %v11373_v3  ;;  %v8537_v6 = vsub.f32 %v48_v62, %v8515_v0  ;;  %v8566_v14 = vsub.f32 %v45_v4, %v8540_v7  ;;  %v8708_v4 = vand.u32 4294901760, %v35_v57 }
  0x20   :  { %567 = vmatpush1.msra.mxu1 %v8400_v10  ;;  %6909 = vmatpush3.msra.mxu0 %v8453_v48  ;;  %v8552_v10 = vsub.f32 %v46_v1, %v8532_v5  ;;  %v34_v1 = vld [vmem:[%s11342_s3 + $0x8] sm:$0xff] }
  0x21   :  { %569 = vmatprep.subr.mxu1 %v8402_v11  ;;  %6910 = vmatprep.subr.mxu0 %v11373_v3  ;;  %v43_v11 = vld [vmem:[%s11342_s3 + $0x50] sm:$0xff]  ;;  %v1200_v24 = vand.u32 4294901760, %v8566_v14 }
  0x22   :  { %571 = vmatpush1.msra.mxu1 %v8404_v12  ;;  %604 = vmatprep.mubr.f32.mxu1 %v11373_v3  ;;  %v1179_v12 = vand.u32 4294901760, %v8537_v6  ;;  %v8575_v17 = vand.u32 4294901760, %v43_v11  ;;  %v1193_v19 = vand.u32 4294901760, %v8552_v10 }
  0x23   :  { %6911 = vmatpush3.msra.mxu0 %v8460_v50  ;;  %606 = vmatmul.mubr.f32.vlgmr.msra.gmra.mxu1 %v8414_v18  ;;  %v1201_v35 = vsub.f32 %v8566_v14, %v1200_v24 }
  0x24   :  { %6912 = vmatprep.mubr.msk.f32.mxu0 %vm8339_vm1, %v11373_v3  ;;  %6915 = vmatprep.subr.mxu1 %v11373_v3  ;;  %v1180_v21 = vsub.f32 %v8537_v6, %v1179_v12  ;;  %v8606_v27 = vsub.f32 %v43_v11, %v8575_v17  ;;  %v1194_v29 = vsub.f32 %v8552_v10, %v1193_v19 }
  0x25   :  { %6924 = vmatprep.subr.mxu0 %v11373_v3  ;;  %6913 = vmatmul.mubr.f32.vlgmr.msra.gmra.mxu0 %v8435_v42  ;;  %v37_v42 = vld [vmem:[%s11342_s3 + $0x20] sm:$0xff] }
  0x26   :  { %6916 = vmatpush3.msra.mxu1 %v721_v58  ;;  %6925 = vmatpush3.msra.mxu0 %v8458_v49  ;;  %v1181_v31 = vand.u32 4294901760, %v1180_v21  ;;  %v1214_v39 = vand.u32 4294901760, %v8606_v27  ;;  %v1195_v41 = vand.u32 4294901760, %v1194_v29  ;;  %v1228_v49 = vand.u32 4294901760, %v8638_v38 }
  0x27   :  { %6917 = vmatprep.subr.mxu1 %v11373_v3  ;;  %6926 = vmatprep.subr.mxu0 %v11373_v3 }
  0x28   :  { %6918 = vmatpush3.msra.mxu1 %v728_v60  ;;  %6927 = vmatpush3.msra.mxu0 %v8465_v51  ;;  %v1215_v47 = vsub.f32 %v8606_v27, %v1214_v39  ;;  %v36_v51 = vld [vmem:[%s11342_s3 + $0x18] sm:$0xff] }
  0x29   :  { %6919 = vmatprep.subr.mxu1 %v11373_v3  ;;  %6928 = vmatprep.subr.mxu0 %v11373_v3  ;;  %v8691_v58 = vand.u32 4294901760, %v36_v51 }
  0x2a   :  { %6920 = vmatpush3.msra.mxu1 %v735_v61  ;;  %6921 = vmatprep.mubr.msk.f32.mxu1 %vm8339_vm1, %v11373_v3  ;;  %v1216_v60 = vand.u32 4294901760, %v1215_v47  ;;  %v1229_v61 = vsub.f32 %v8638_v38, %v1228_v49 }
  0x2b   :  { %6929 = vmatpush3.msra.mxu0 %v8471_v52  ;;  %6922 = vmatmul.mubr.f32.vlgmr.msra.gmra.mxu1 %v8414_v18  ;;  %v1084_v52 = vld [vmem:[%s11343_s0] sm:$0x1]  ;;  %v8721_v21 = vsub.f32 %v36_v51, %v8691_v58 }
  0x2c   :  { %6930 = vmatprep.mubr.msk.f32.mxu0 %vm8339_vm1, %v11373_v3  ;;  %6933 = vmatprep.subr.mxu1 %v11373_v3  ;;  %v8693_v59 = vand.u32 4294901760, %v1084_v52  ;;  %v1230_v29 = vand.u32 4294901760, %v1229_v61 }
  0x2d   :  { %6942 = vmatprep.subr.mxu0 %v11373_v3  ;;  %6931 = vmatmul.mubr.f32.vlgmr.msra.gmra.mxu0 %v8424_v25  ;;  %v40_v25 = vld [vmem:[%s11342_s3 + $0x38] sm:$0xff] }
  0x2e   :  { %6934 = vmatpush3.msra.mxu1 %v8445_v46  ;;  %6943 = vmatpush3.msra.mxu0 %v719_v53  ;;  %v8624_v34 = vand.u32 4294901760, %v40_v25  ;;  %v8726_v26 = vsub.f32 %v1084_v52, %v8693_v59  ;;  %v8758_v52 = vsub.f32 %v33_v20, %v8738_v36 }
  0x2f   :  { %6935 = vmatprep.subr.mxu1 %v11373_v3  ;;  %6944 = vmatprep.subr.mxu0 %v11373_v3 }
  0x30   :  { %6936 = vmatpush3.msra.mxu1 %v8453_v48  ;;  %6945 = vmatpush3.msra.mxu0 %v726_v54  ;;  %v8653_v43 = vsub.f32 %v40_v25, %v8624_v34  ;;  %v8723_v25 = vand.u32 4294901760, %v34_v1 }
  0x31   :  { %6937 = vmatprep.subr.mxu1 %v11373_v3  ;;  %6946 = vmatprep.subr.mxu0 %v11373_v3 }
  0x32   :  { %6938 = vmatpush3.msra.mxu1 %v8460_v50  ;;  %6939 = vmatprep.mubr.msk.f32.mxu1 %vm8339_vm1, %v11373_v3 }
  0x33   :  { %6947 = vmatpush3.msra.mxu0 %v733_v56  ;;  %6940 = vmatmul.mubr.f32.vlgmr.msra.gmra.mxu1 %v8430_v32  ;;  %v8621_v32 = vsub.f32 %v42_v15, %v8592_v23  ;;  %v1235_v56 = vand.u32 4294901760, %v8653_v43  ;;  %v1249_v15 = vand.u32 4294901760, %v8683_v55 }
  0x34   :  { %6948 = vmatprep.mubr.msk.f32.mxu0 %vm8339_vm1, %v11373_v3  ;;  %6951 = vmatprep.subr.mxu1 %v11373_v3 }
  0x35   :  { %6960 = vmatprep.subr.mxu0 %v11373_v3  ;;  %6949 = vmatmul.mubr.f32.vlgmr.msra.gmra.mxu0 %v8414_v18  ;;  %v1221_v44 = vand.u32 4294901760, %v8621_v32  ;;  %v1236_v11 = vsub.f32 %v8653_v43, %v1235_v56 }
  0x36   :  { %6952 = vmatpush3.msra.mxu1 %v8445_v46  ;;  %6961 = vmatpush3.msra.mxu0 %v8515_v0  ;;  %v1202_v46 = vand.u32 4294901760, %v1201_v35  ;;  %v8736_v35 = vsub.f32 %v35_v57, %v8708_v4 }
  0x37   :  { %6953 = vmatprep.subr.mxu1 %v11373_v3  ;;  %6962 = vmatprep.subr.mxu0 %v11373_v3  ;;  %v1222_v54 = vsub.f32 %v8621_v32, %v1221_v44 }
  0x38   :  { %6954 = vmatpush3.msra.mxu1 %v8453_v48  ;;  %6963 = vmatpush3.msra.mxu0 %v8524_v2  ;;  %v8665_v48 = vsub.f32 %v39_v30, %v8641_v40 }
  0x39   :  { %6955 = vmatprep.subr.mxu1 %v11373_v3  ;;  %6964 = vmatprep.subr.mxu0 %v11373_v3  ;;  %v1223_v8 = vand.u32 4294901760, %v1222_v54 }
  0x3a   :  { %6956 = vmatpush3.msra.mxu1 %v8460_v50  ;;  %6957 = vmatprep.mubr.msk.f32.mxu1 %vm8339_vm1, %v11373_v3  ;;  %v8668_v50 = vand.u32 4294901760, %v37_v42  ;;  %v1242_v63 = vand.u32 4294901760, %v8665_v48 }
  0x3b   :  { %6965 = vmatpush3.msra.mxu0 %v8532_v5  ;;  %6958 = vmatmul.mubr.f32.vlgmr.msra.gmra.mxu1 %v8414_v18  ;;  %v1208_v18 = vsub.f32 %v8590_v22, %v1207_v33 }
  0x3c   :  { %6966 = vmatprep.subr.mxu0 %v11373_v3  ;;  %6995 = vmatprep.subr.mxu1 %v11373_v3  ;;  %v8700_v62 = vsub.f32 %v37_v42, %v8668_v50  ;;  %v1243_v30 = vsub.f32 %v8665_v48, %v1242_v63  ;;  %v8747_v42 = vsub.f32 %v34_v1, %v8723_v25 }
  0x3d   :  { %6967 = vmatpush3.msra.mxu0 %v8540_v7  ;;  %6996 = vmatpush3.msra.mxu1 %v1181_v31  ;;  %v1209_v53 = vand.u32 4294901760, %v1208_v18  ;;  %v1263_v18 = vand.u32 4294901760, %v8721_v21 }
  0x3e   :  { %6968 = vmatprep.subr.mxu0 %v11373_v3  ;;  %6997 = vmatprep.subr.mxu1 %v11373_v3  ;;  %v1256_v31 = vand.u32 4294901760, %v8700_v62  ;;  %v1244_v47 = vand.u32 4294901760, %v1243_v30  ;;  %v1277_v61 = vand.u32 4294901760, %v8747_v42 }
  0x3f   :  { %6969 = vmatpush3.msra.mxu0 %v8560_v13  ;;  %6998 = vmatpush3.msra.mxu1 %v1188_v37  ;;  %v1237_v37 = vand.u32 4294901760, %v1236_v11  ;;  %v1264_v57 = vsub.f32 %v8721_v21, %v1263_v18  ;;  %v1284_v11 = vand.u32 4294901760, %v8758_v52 }
  0x40   :  { %6970 = vmatprep.subr.mxu0 %v11373_v3  ;;  %6999 = vmatprep.subr.mxu1 %v11373_v3  ;;  %v1257_v51 = vsub.f32 %v8700_v62, %v1256_v31  ;;  %v1278_v30 = vsub.f32 %v8747_v42, %v1277_v61 }
  0x41   :  { %6971 = vmatpush3.msra.mxu0 %v8575_v17  ;;  %7000 = vmatpush3.msra.mxu1 %v1195_v41  ;;  %v1250_v41 = vsub.f32 %v8683_v55, %v1249_v15  ;;  %v1265_v20 = vand.u32 4294901760, %v1264_v57 }
  0x42   :  { %6972 = vmatprep.subr.mxu0 %v11373_v3  ;;  %7001 = vmatprep.subr.mxu1 %v11373_v3  ;;  %v1258_v1 = vand.u32 4294901760, %v1257_v51 }
  0x43   :  { %6973 = vmatpush3.msra.mxu0 %v8592_v23  ;;  %7002 = vmatpush3.msra.mxu1 %v1202_v46  ;;  %v1168_v46 = vand.u32 4294901760, %v8726_v26  ;;  %v1251_v54 = vand.u32 4294901760, %v1250_v41  ;;  %v1285_v41 = vsub.f32 %v8758_v52, %v1284_v11 }
  0x44   :  { %6974 = vmatprep.subr.mxu0 %v11373_v3  ;;  %7003 = vmatprep.subr.mxu1 %v11373_v3 }
  0x45   :  { %6975 = vmatpush3.msra.mxu0 %v8608_v28  ;;  %7004 = vmatpush3.msra.mxu1 %v1209_v53  ;;  %v1270_v53 = vand.u32 4294901760, %v8736_v35  ;;  %v1286_v51 = vand.u32 4294901760, %v1285_v41 }
  0x46   :  { %6976 = vmatprep.subr.mxu0 %v11373_v3  ;;  %7005 = vmatprep.subr.mxu1 %v11373_v3 }
  0x47   :  { %6977 = vmatpush3.msra.mxu0 %v8624_v34  ;;  %7006 = vmatpush3.msra.mxu1 %v1216_v60  ;;  %v1169_v60 = vsub.f32 %v8726_v26, %v1168_v46 }
  0x48   :  { %6978 = vmatprep.subr.mxu0 %v11373_v3  ;;  %7007 = vmatprep.subr.mxu1 %v11373_v3 }
  0x49   :  { %6979 = vmatpush3.msra.mxu0 %v8641_v40  ;;  %7008 = vmatpush3.msra.mxu1 %v1223_v8  ;;  %v1271_v8 = vsub.f32 %v8736_v35, %v1270_v53 }
  0x4a   :  { %6980 = vmatprep.subr.mxu0 %v11373_v3  ;;  %7009 = vmatprep.subr.mxu1 %v11373_v3 }
  0x4b   :  { %6981 = vmatpush3.msra.mxu0 %v8656_v45  ;;  %7010 = vmatpush3.msra.mxu1 %v1230_v29  ;;  %v1170_v29 = vand.u32 4294901760, %v1169_v60 }
  0x4c   :  { %6982 = vmatprep.subr.mxu0 %v11373_v3  ;;  %7011 = vmatprep.subr.mxu1 %v11373_v3 }
  0x4d   :  { %6983 = vmatpush3.msra.mxu0 %v8668_v50  ;;  %7012 = vmatpush3.msra.mxu1 %v1237_v37  ;;  %v1272_v37 = vand.u32 4294901760, %v1271_v8 }
  0x4e   :  { %6984 = vmatprep.subr.mxu0 %v11373_v3  ;;  %7013 = vmatprep.subr.mxu1 %v11373_v3 }
  0x4f   :  { %6985 = vmatpush3.msra.mxu0 %v8691_v58  ;;  %7014 = vmatpush3.msra.mxu1 %v1244_v47  ;;  %v1279_v47 = vand.u32 4294901760, %v1278_v30 }
  0x50   :  { %6986 = vmatprep.subr.mxu0 %v11373_v3  ;;  %7015 = vmatprep.subr.mxu1 %v11373_v3 }
  0x51   :  { %6987 = vmatpush3.msra.mxu0 %v8708_v4  ;;  %7016 = vmatpush3.msra.mxu1 %v1251_v54 }
  0x52   :  { %6988 = vmatprep.subr.mxu0 %v11373_v3  ;;  %7017 = vmatprep.subr.mxu1 %v11373_v3 }
  0x53   :  { %6989 = vmatpush3.msra.mxu0 %v8723_v25  ;;  %7018 = vmatpush3.msra.mxu1 %v1258_v1 }
  0x54   :  { %6990 = vmatprep.subr.mxu0 %v11373_v3  ;;  %7019 = vmatprep.subr.mxu1 %v11373_v3 }
  0x55   :  { %6991 = vmatpush3.msra.mxu0 %v8738_v36  ;;  %6992 = vmatprep.mubr.msk.f32.mxu0 %vm8339_vm1, %v11373_v3 }
  0x56   :  { %7020 = vmatpush3.msra.mxu1 %v1265_v20  ;;  %6993 = vmatmul.mubr.f32.vlgmr.msra.gmra.mxu0 %v1170_v29 }
  0x57   :  { %7021 = vmatprep.subr.mxu1 %v11373_v3  ;;  %7030 = vmatprep.subr.mxu0 %v11373_v3 }
  0x58   :  { %7022 = vmatpush3.msra.mxu1 %v1272_v37  ;;  %7031 = vmatpush3.msra.mxu0 %v8537_v6  ;;  %v11347_v6 = vmov 2  }
  0x59   :  { %7023 = vmatprep.subr.mxu1 %v11373_v3  ;;  %7032 = vmatprep.subr.mxu0 %v11373_v3 }
  0x5a   :  { %7024 = vmatpush3.msra.mxu1 %v1279_v47  ;;  %7033 = vmatpush3.msra.mxu0 %v8548_v9  ;;  %v8979_v9 = vld [vmem:[%s11342_s3 + $0x188] sm:$0xff] }
  0x5b   :  { %7025 = vmatprep.subr.mxu1 %v11373_v3  ;;  %7034 = vmatprep.subr.mxu0 %v11373_v3 }
  0x5c   :  { %7026 = vmatpush3.msra.mxu1 %v1286_v51  ;;  %7027 = vmatprep.mubr.msk.f32.mxu1 %vm8339_vm1, %v11373_v3 }
  0x5d   :  { %7035 = vmatpush3.msra.mxu0 %v8552_v10  ;;  %7028 = vmatmul.mubr.f32.vlgmr.msra.gmra.mxu1 %v8693_v59  ;;  %v8987_v10 = vld [vmem:[%s11342_s3 + $0x180] sm:$0xff] }
  0x5e   :  { %7036 = vmatprep.subr.mxu0 %v11373_v3  ;;  %7065 = vmatprep.subr.mxu1 %v11373_v3 }
  0x5f   :  { %7037 = vmatpush3.msra.mxu0 %v8566_v14  ;;  %7066 = vmatpush3.msra.mxu1 %v8515_v0 }
  0x60   :  { %7038 = vmatprep.subr.mxu0 %v11373_v3  ;;  %7067 = vmatprep.subr.mxu1 %v11373_v3 }
  0x61   :  { %7039 = vmatpush3.msra.mxu0 %v8590_v22  ;;  %7068 = vmatpush3.msra.mxu1 %v8524_v2 }
  0x62   :  { %7040 = vmatprep.subr.mxu0 %v11373_v3  ;;  %7069 = vmatprep.subr.mxu1 %v11373_v3 }
  0x63   :  { %7041 = vmatpush3.msra.mxu0 %v8606_v27  ;;  %7070 = vmatpush3.msra.mxu1 %v8532_v5 }
  0x64   :  { %7042 = vmatprep.subr.mxu0 %v11373_v3  ;;  %7071 = vmatprep.subr.mxu1 %v11373_v3 }
  0x65   :  { %7043 = vmatpush3.msra.mxu0 %v8621_v32  ;;  %7072 = vmatpush3.msra.mxu1 %v8540_v7 }
  0x66   :  { %7044 = vmatprep.subr.mxu0 %v11373_v3  ;;  %7073 = vmatprep.subr.mxu1 %v11373_v3 }
  0x67   :  { %7045 = vmatpush3.msra.mxu0 %v8638_v38  ;;  %7074 = vmatpush3.msra.mxu1 %v8560_v13 }
  0x68   :  { %7046 = vmatprep.subr.mxu0 %v11373_v3  ;;  %7075 = vmatprep.subr.mxu1 %v11373_v3 }
  0x69   :  { %7047 = vmatpush3.msra.mxu0 %v8653_v43  ;;  %7076 = vmatpush3.msra.mxu1 %v8575_v17 }
  0x6a   :  { %7048 = vmatprep.subr.mxu0 %v11373_v3  ;;  %7077 = vmatprep.subr.mxu1 %v11373_v3 }
  0x6b   :  { %7049 = vmatpush3.msra.mxu0 %v8665_v48  ;;  %7078 = vmatpush3.msra.mxu1 %v8592_v23 }
  0x6c   :  { %7050 = vmatprep.subr.mxu0 %v11373_v3  ;;  %7079 = vmatprep.subr.mxu1 %v11373_v3 }
  0x6d   :  { %7051 = vmatpush3.msra.mxu0 %v8683_v55  ;;  %7080 = vmatpush3.msra.mxu1 %v8608_v28 }
  0x6e   :  { %7052 = vmatprep.subr.mxu0 %v11373_v3  ;;  %7081 = vmatprep.subr.mxu1 %v11373_v3 }
  0x6f   :  { %7053 = vmatpush3.msra.mxu0 %v8700_v62  ;;  %7082 = vmatpush3.msra.mxu1 %v8624_v34 }
  0x70   :  { %7054 = vmatprep.subr.mxu0 %v11373_v3  ;;  %7083 = vmatprep.subr.mxu1 %v11373_v3 }
  0x71   :  { %7055 = vmatpush3.msra.mxu0 %v8721_v21  ;;  %7084 = vmatpush3.msra.mxu1 %v8641_v40 }
  0x72   :  { %7056 = vmatprep.subr.mxu0 %v11373_v3  ;;  %7085 = vmatprep.subr.mxu1 %v11373_v3 }
  0x73   :  { %7057 = vmatpush3.msra.mxu0 %v8736_v35  ;;  %7086 = vmatpush3.msra.mxu1 %v8656_v45 }
  0x74   :  { %7058 = vmatprep.subr.mxu0 %v11373_v3  ;;  %7087 = vmatprep.subr.mxu1 %v11373_v3 }
  0x75   :  { %7059 = vmatpush3.msra.mxu0 %v8747_v42  ;;  %7088 = vmatpush3.msra.mxu1 %v8668_v50 }
  0x76   :  { %7060 = vmatprep.subr.mxu0 %v11373_v3  ;;  %7089 = vmatprep.subr.mxu1 %v11373_v3 }
  0x77   :  { %7061 = vmatpush3.msra.mxu0 %v8758_v52  ;;  %7062 = vmatprep.mubr.msk.f32.mxu0 %vm8339_vm1, %v11373_v3 }
  0x78   :  { %7090 = vmatpush3.msra.mxu1 %v8691_v58  ;;  %7063 = vmatmul.mubr.f32.vlgmr.msra.gmra.mxu0 %v8726_v26 }
  0x79   :  { %7091 = vmatprep.subr.mxu1 %v11373_v3  ;;  %7100 = vmatprep.subr.mxu0 %v11373_v3 }
  0x7a   :  { %7092 = vmatpush3.msra.mxu1 %v8708_v4  ;;  %7101 = vmatpush3.msra.mxu0 %v1179_v12 }
  0x7b   :  { %7093 = vmatprep.subr.mxu1 %v11373_v3  ;;  %7102 = vmatprep.subr.mxu0 %v11373_v3 }
  0x7c   :  { %7094 = vmatpush3.msra.mxu1 %v8723_v25  ;;  %7103 = vmatpush3.msra.mxu0 %v1186_v16 }
  0x7d   :  { %7095 = vmatprep.subr.mxu1 %v11373_v3  ;;  %7104 = vmatprep.subr.mxu0 %v11373_v3 }
  0x7e   :  { %7096 = vmatpush3.msra.mxu1 %v8738_v36  ;;  %7097 = vmatprep.mubr.msk.f32.mxu1 %vm8339_vm1, %v11373_v3 }
  0x7f   :  { %7105 = vmatpush3.msra.mxu0 %v1193_v19  ;;  %7098 = vmatmul.mubr.f32.vlgmr.msra.gmra.mxu1 %v1168_v46 }
  0x80   :  { %7106 = vmatprep.subr.mxu0 %v11373_v3  ;;  %7135 = vmatprep.subr.mxu1 %v11373_v3 }
  0x81   :  { %7107 = vmatpush3.msra.mxu0 %v1200_v24  ;;  %7136 = vmatpush3.msra.mxu1 %v8515_v0  ;;  %v8950_v0 = vld [vmem:[%s11342_s3 + $0x198] sm:$0xff] }
  0x82   :  { %7108 = vmatprep.subr.mxu0 %v11373_v3  ;;  %7137 = vmatprep.subr.mxu1 %v11373_v3 }
  0x83   :  { %7109 = vmatpush3.msra.mxu0 %v1207_v33  ;;  %7138 = vmatpush3.msra.mxu1 %v8524_v2  ;;  %v11349_v2 = vmov 0  }
  0x84   :  { %7110 = vmatprep.subr.mxu0 %v11373_v3  ;;  %7139 = vmatprep.subr.mxu1 %v11373_v3 }
  0x85   :  { %7111 = vmatpush3.msra.mxu0 %v1214_v39  ;;  %7140 = vmatpush3.msra.mxu1 %v8532_v5  ;;  %v8960_v5 = vld [vmem:[%s11342_s3 + $0x190] sm:$0xff] }
  0x86   :  { %7112 = vmatprep.subr.mxu0 %v11373_v3  ;;  %7141 = vmatprep.subr.mxu1 %v11373_v3 }
  0x87   :  { %7113 = vmatpush3.msra.mxu0 %v1221_v44  ;;  %7142 = vmatpush3.msra.mxu1 %v8540_v7  ;;  %v11353_v7 = vmov 1  }
  0x88   :  { %7114 = vmatprep.subr.mxu0 %v11373_v3  ;;  %7143 = vmatprep.subr.mxu1 %v11373_v3 }
  0x89   :  { %7115 = vmatpush3.msra.mxu0 %v1228_v49  ;;  %7144 = vmatpush3.msra.mxu1 %v8560_v13 }
  0x8a   :  { %7116 = vmatprep.subr.mxu0 %v11373_v3  ;;  %7145 = vmatprep.subr.mxu1 %v11373_v3 }
  0x8b   :  { %7117 = vmatpush3.msra.mxu0 %v1235_v56  ;;  %7146 = vmatpush3.msra.mxu1 %v8575_v17 }
  0x8c   :  { %7118 = vmatprep.subr.mxu0 %v11373_v3  ;;  %7147 = vmatprep.subr.mxu1 %v11373_v3 }
  0x8d   :  { %7119 = vmatpush3.msra.mxu0 %v1242_v63  ;;  %7148 = vmatpush3.msra.mxu1 %v8592_v23 }
  0x8e   :  { %7120 = vmatprep.subr.mxu0 %v11373_v3  ;;  %7149 = vmatprep.subr.mxu1 %v11373_v3 }
  0x8f   :  { %7121 = vmatpush3.msra.mxu0 %v1249_v15  ;;  %7150 = vmatpush3.msra.mxu1 %v8608_v28 }
  0x90   :  { %7122 = vmatprep.subr.mxu0 %v11373_v3  ;;  %7151 = vmatprep.subr.mxu1 %v11373_v3 }
  0x91   :  { %7123 = vmatpush3.msra.mxu0 %v1256_v31  ;;  %7152 = vmatpush3.msra.mxu1 %v8624_v34 }
  0x92   :  { %7124 = vmatprep.subr.mxu0 %v11373_v3  ;;  %7153 = vmatprep.subr.mxu1 %v11373_v3 }
  0x93   :  { %7125 = vmatpush3.msra.mxu0 %v1263_v18  ;;  %7154 = vmatpush3.msra.mxu1 %v8641_v40 }
  0x94   :  { %7126 = vmatprep.subr.mxu0 %v11373_v3  ;;  %7155 = vmatprep.subr.mxu1 %v11373_v3 }
  0x95   :  { %7127 = vmatpush3.msra.mxu0 %v1270_v53  ;;  %7156 = vmatpush3.msra.mxu1 %v8656_v45  ;;  %v8343_v45 = vmov 3  }
  0x96   :  { %7128 = vmatprep.subr.mxu0 %v11373_v3  ;;  %7157 = vmatprep.subr.mxu1 %v11373_v3 }
  0x97   :  { %7129 = vmatpush3.msra.mxu0 %v1277_v61  ;;  %7158 = vmatpush3.msra.mxu1 %v8668_v50 }
  0x98   :  { %7130 = vmatprep.subr.mxu0 %v11373_v3  ;;  %7159 = vmatprep.subr.mxu1 %v11373_v3 }
  0x99   :  { %7131 = vmatpush3.msra.mxu0 %v1284_v11  ;;  %7132 = vmatprep.mubr.msk.f32.mxu0 %vm8339_vm1, %v11373_v3 }
  0x9a   :  { %7160 = vmatpush3.msra.mxu1 %v8691_v58  ;;  %7133 = vmatmul.mubr.f32.vlgmr.msra.gmra.mxu0 %v8693_v59 }
  0x9b   :  { %7161 = vmatprep.subr.mxu1 %v11373_v3  ;;  %7167 = vmatprep.mubr.msk.f32.mxu1 %vm8339_vm1, %v11373_v3 }
  0x9c   :  { %7162 = vmatpush3.msra.mxu1 %v8708_v4  ;;  %8285 = vset.pattern.permute.xlu0 %v11349_v2 }
  0x9d   :  { %7163 = vmatprep.subr.mxu1 %v11373_v3  ;;  %1802 = vperm.xlu0 %8285, %v8950_v0  }
  0x9e   :  { %7164 = vmatpush3.msra.mxu1 %v8723_v25  ;;  %8286 = vset.pattern.permute.xlu1 %v11349_v2 }
  0x9f   :  { %7165 = vmatprep.subr.mxu1 %v11373_v3  ;;  %1798 = vperm.xlu1 %8286, %v8960_v5  }
  0xa0   :  { %7166 = vmatpush3.msra.mxu1 %v8738_v36 }
  0xa1   :  { %7168 = vmatmul.mubr.f32.vlgmr.msra.gmra.mxu1 %v8693_v59  ;;  %8288 = vset.pattern.permute.xlu0 %v11347_v6 }
  0xa2   :  { %1850 = vperm.xlu0 %8288, %v8950_v0  }
  0xa3   :  { %8287 = vset.pattern.permute.xlu1 %v11353_v7 }
  0xa4   :  { %1822 = vperm.xlu1 %8287, %v8960_v5  }
  0xa6   :  { %8289 = vset.pattern.permute.xlu0 %v11353_v7 }
  0xa7   :  { %1826 = vperm.xlu0 %8289, %v8950_v0  }
  0xa8   :  { %8290 = vset.pattern.permute.xlu1 %v11349_v2 }
  0xa9   :  { %1794 = vperm.xlu1 %8290, %v8979_v9  }
  0xab   :  { %1818 = vperm.xlu0 %8289, %v8979_v9  }
  0xad   :  { %8291 = vset.pattern.permute.xlu1 %v11347_v6 }
  0xae   :  { %1846 = vperm.xlu1 %8291, %v8960_v5  }
  0xaf   :  { %1814 = vperm.xlu0 %8289, %v8987_v10  }
  0xb2   :  { %8292 = vset.pattern.permute.xlu1 %v11349_v2 }
  0xb3   :  { %1790 = vperm.xlu1 %8292, %v8987_v10   ;;  %8294 = vset.pattern.permute.xlu0 %v8343_v45 }
  0xb4   :  { %1878 = vperm.xlu0 %8294, %v8950_v0  }
  0xb7   :  { %8293 = vset.pattern.permute.xlu1 %v11347_v6 }
  0xb8   :  { %1842 = vperm.xlu1 %8293, %v8979_v9   ;;  %1870 = vperm.xlu0 %8294, %v8979_v9  }
  0xbc   :  { %1838 = vperm.xlu1 %8293, %v8987_v10  }
  0xc0   :  { %8295 = vset.pattern.permute.xlu1 %v8343_v45 }
  0xcf   :  { %v172_v12 = vpop.f32.mrf.mxu0 }
  0xd1   :  { %v174_v13 = vpop.f32.mrf.mxu0 }
  0xd2   :  { %v274_v14 = vpop.f32.mrf.mxu1 }
  0xd3   :  { %v275_v16 = vadd.f32 %v274_v14, %v172_v12 }
  0xd4   :  { %v276_v17 = vpop.f32.mrf.mxu1 }
  0xd5   :  { %v277_v19 = vadd.f32 %v276_v17, %v174_v13  ;;  %v359_v22 = vpop.f32.mrf.mxu0 }
  0xd6   :  { %v360_v23 = vadd.f32 %v359_v22, %v275_v16  ;;  %v11345_v16 = vmov 6  }
  0xd7   :  { %v361_v24 = vpop.f32.mrf.mxu0  ;;  %8296 = vset.pattern.permute.xlu0 %v11345_v16 }
  0xd8   :  { %v362_v27 = vadd.f32 %v361_v24, %v277_v19 }
  0xdb   :  { %v439_v28 = vpop.f32.mrf.mxu1 }
  0xdc   :  { %v440_v32 = vadd.f32 %v439_v28, %v360_v23 }
  0xdd   :  { %v441_v33 = vpop.f32.mrf.mxu1  ;;  %v529_v34 = vpop.f32.mrf.mxu0 }
  0xde   :  { %v442_v38 = vadd.f32 %v441_v33, %v362_v27  ;;  %v530_v39 = vadd.f32 %v529_v34, %v440_v32  ;;  %v17_v32 = vlaneseq }
  0xdf   :  { %v531_v40 = vpop.f32.mrf.mxu0 }
  0xe0   :  { %v532_v43 = vadd.f32 %v531_v40, %v442_v38  ;;  %v18_v33 = vand.u32 127, %v17_v32 }
  0xe2   :  { %vm19_vm2 = vcmp.eq.s32.totalorder %v18_v33, 0  ;;  %vm20_vm3 = vcmp.eq.s32.totalorder %v18_v33, 32  ;;  %vm21_vm4 = vcmp.eq.s32.totalorder %v18_v33, 64  ;;  %vm26_vm6 = vcmp.eq.s32.totalorder %v18_v33, 31 }
  0xe3   :  { %v607_v44 = vpop.f32.mrf.mxu1  ;;  %vm23_vm5 = vmor %vm19_vm2, %vm20_vm3  ;;  %vm27_vm7 = vcmp.eq.s32.totalorder %v18_v33, 63  ;;  %vm22_vm8 = vcmp.eq.s32.totalorder %v18_v33, 96  ;;  %vm28_vm10 = vcmp.eq.s32.totalorder %v18_v33, 95  ;;  %vm29_vm13 = vcmp.eq.s32.totalorder %v18_v33, 127 }
  0xe4   :  { %v608_v48 = vadd.f32 %v607_v44, %v530_v39  ;;  %v1762_v39 = vshrl.u32 %v17_v32, 7  ;;  %vm24_vm9 = vmor %vm23_vm5, %vm21_vm4 }
  0xe5   :  { %v609_v49 = vpop.f32.mrf.mxu1  ;;  %v686_v50 = vpop.f32.mrf.mxu0  ;;  %vm30_vm11 = vmor %vm26_vm6, %vm27_vm7 }
  0xe6   :  { %v9000_v55 = vadd.f32 %v609_v49, %v532_v43  ;;  %vm9011_vm12 = vmor %vm24_vm9, %vm22_vm8 }
  0xe7   :  { %v6914_v56 = vpop.f32.mrf.mxu0  ;;  %vm31_vm14 = vmor %vm30_vm11, %vm28_vm10 }
  0xe8   :  { %vm9019_vm15 = vmor %vm31_vm14, %vm29_vm13 }
  0xeb   :  { %v772_v58 = vpop.f32.mrf.mxu1 }
  0xec   :  { %v773_v59 = vadd.f32 %v772_v58, %v686_v50 }
  0xed   :  { %v6923_v62 = vpop.f32.mrf.mxu1  ;;  %v850_v63 = vpop.f32.mrf.mxu0 }
  0xee   :  { %v851_v4 = vadd.f32 %v850_v63, %v773_v59 }
  0xef   :  { %v6932_v15 = vpop.f32.mrf.mxu0 }
  0xf3   :  { %v926_v21 = vpop.f32.mrf.mxu1 }
  0xf4   :  { %v927_v25 = vadd.f32 %v926_v21, %v851_v4 }
  0xf5   :  { %v6941_v26 = vpop.f32.mrf.mxu1  ;;  %v1006_v31 = vpop.f32.mrf.mxu0 }
  0xf6   :  { %v1007_v35 = vadd.f32 %v1006_v31, %v927_v25 }
  0xf7   :  { %v6950_v36 = vpop.f32.mrf.mxu0 }
  0xfb   :  { %v1080_v42 = vpop.f32.mrf.mxu1 }
  0xfc   :  { %v9003_v18 = vadd.f32 %v1080_v42, %v1007_v35 }
  0xfd   :  { %v6959_v46 = vpop.f32.mrf.mxu1 }
 0x116   :  { %v1172_v52 = vpop.f32.mrf.mxu0 }
 0x117   :  { %v1173_v53 = vadd.f32 %v1172_v52, %v608_v48  ;;  %v9015_v48 = vsub.s32 0, %v1762_v39 }
 0x118   :  { %v6994_v54 = vpop.f32.mrf.mxu0  ;;  %v1803_v24 = vpop.permute.xlu0 %1802 }
 0x11a   :  { %v1799_v17 = vpop.permute.xlu1 %1798 }
 0x11d   :  { %v1323_v57 = vpop.f32.mrf.mxu1  ;;  %v1851_v28 = vpop.permute.xlu0 %1850 }
 0x11e   :  { %v1324_v20 = vadd.f32 %v1323_v57, %v1173_v53 }
 0x11f   :  { %v7029_v60 = vpop.f32.mrf.mxu1  ;;  %v1823_v19 = vpop.permute.xlu1 %1822 }
 0x122   :  { %v1827_v38 = vpop.permute.xlu0 %1826 }
 0x124   :  { %v1795_v22 = vpop.permute.xlu1 %1794 }
 0x126   :  { %v1819_v43 = vpop.permute.xlu0 %1818 }
 0x129   :  { %v1847_v23 = vpop.permute.xlu1 %1846 }
 0x12a   :  { %v1815_v50 = vpop.permute.xlu0 %1814 }
 0x12e   :  { %v1791_v27 = vpop.permute.xlu1 %1790 }
 0x12f   :  { %v1879_v25 = vpop.permute.xlu0 %1878 }
 0x133   :  { %v1843_v34 = vpop.permute.xlu1 %1842  ;;  %v1871_v60 = vpop.permute.xlu0 %1870 }
 0x137   :  { %v1839_v40 = vpop.permute.xlu1 %1838 }
 0x138   :  { %v1427_v61 = vpop.f32.mrf.mxu0 }
 0x139   :  { %v1428_v30 = vadd.f32 %v1427_v61, %v1324_v20 }
 0x13a   :  { %v7064_v1 = vpop.f32.mrf.mxu0 }
 0x13f   :  { %v1516_v8 = vpop.f32.mrf.mxu1 }
 0x140   :  { %v1517_v41 = vadd.f32 %v1516_v8, %v1428_v30 }
 0x141   :  { %v7099_v11 = vpop.f32.mrf.mxu1 }
 0x15a   :  { %v1635_v29 = vpop.f32.mrf.mxu0 }
 0x15b   :  { %v1636_v47 = vadd.f32 %v1635_v29, %v1517_v41 }
 0x15c   :  { %v7134_v37 = vpop.f32.mrf.mxu0 }
 0x161   :  { %v1722_v51 = vpop.f32.mrf.mxu1 }
 0x162   :  { %v1723_v12 = vadd.f32 %v1722_v51, %v1636_v47 }
 0x163   :  { %v7169_v13 = vpop.f32.mrf.mxu1 }
 0x164   :  { %v1726_v14 = vmax.f32 %v1723_v12, 0.0 }
 0x166   :  { %1735 = vrot.lane.b32.xlu1 %v1726_v14, %s8344_s20  ;;  %v9024_v59 = vrot.slane %v1726_v14, %v9015_v48 }
 0x168   :  { %v1830_v26 = vmul.f32 %v1819_v43, %v9024_v59  ;;  %v1832_v35 = vmul.f32 %v1827_v38, %v9024_v59  ;;  %v1831_v61 = vmul.f32 %v1823_v19, %v9024_v59  ;;  %v1829_v37 = vmul.f32 %v1815_v50, %v9024_v59 }
 0x169   :  { %v11351_v43 = vmov 5  }
 0x16a   :  { %1738 = vrot.lane.b32.xlu1 %v1726_v14, %s8345_s21 }
 0x16e   :  { %1874 = vperm.xlu1 %8295, %v8960_v5  }
 0x172   :  { %1866 = vperm.xlu1 %8295, %v8987_v10  }
 0x176   :  { %8297 = vset.pattern.permute.xlu1 %v11345_v16 }
 0x1d8   :  { %v1736_v49 = vpop.permute.xlu1 %1735 }
 0x1d9   :  { %v1737_v56 = vsel %vm9011_vm12, 0.0, %v1736_v49 }
 0x1da   :  { %v1808_v62 = vrot.slane %v1737_v56, %v9015_v48 }
 0x1dc   :  { %v1739_v63 = vpop.permute.xlu1 %1738  ;;  %v1812_v4 = vmul.f32 %v1808_v62, %v1803_v24  ;;  %v1810_v15 = vmul.f32 %v1808_v62, %v1795_v22  ;;  %v1811_v57 = vmul.f32 %v1808_v62, %v1799_v17  ;;  %v1809_v30 = vmul.f32 %v1808_v62, %v1791_v27  ;;  %v1731_v24 = vld [vmem:[%s11342_s3 + $0x1a0] sm:$0xff] }
 0x1dd   :  { %v1740_v21 = vsel %vm9019_vm15, 0.0, %v1739_v63 }
 0x1de   :  { %v1856_v31 = vrot.slane %v1740_v21, %v9015_v48  ;;  %v1836_v36 = vadd.f32 %v1832_v35, %v1812_v4  ;;  %v1834_v46 = vadd.f32 %v1830_v26, %v1810_v15  ;;  %v1835_v29 = vadd.f32 %v1831_v61, %v1811_v57 }
 0x1df   :  { %v1833_v14 = vadd.f32 %v1829_v37, %v1809_v30 }
 0x1e0   :  { %v1860_v42 = vmul.f32 %v1856_v31, %v1851_v28  ;;  %v1858_v52 = vmul.f32 %v1856_v31, %v1843_v34  ;;  %v1859_v8 = vmul.f32 %v1856_v31, %v1847_v23  ;;  %v1857_v47 = vmul.f32 %v1856_v31, %v1839_v40 }
 0x1e1   :  { %v1935_v28 = vsel %vm1933_vm0, %v1731_v24, 0  ;;  %v11355_v40 = vmov 4  }
 0x1e2   :  { %v1864_v53 = vadd.f32 %v1860_v42, %v1836_v36  ;;  %v1862_v54 = vadd.f32 %v1858_v52, %v1834_v46  ;;  %v1863_v41 = vadd.f32 %v1859_v8, %v1835_v29  ;;  %v1861_v19 = vadd.f32 %v1857_v47, %v1833_v14 }
 0x1e3   :  { %v9056_v32 = vand.u32 4294901760, %v1935_v28 }
 0x1e4   :  { %v1884_v1 = vadd.f32 %v1879_v25, %v1864_v53  ;;  %v1882_v20 = vadd.f32 %v1871_v60, %v1862_v54  ;;  %v1732_v25 = vld [vmem:[%s11342_s3 + $0x1a8] sm:$0xff] }
 0x1e5   :  { %v9061_v33 = vsub.f32 %v1935_v28, %v9056_v32  ;;  %7224 = vmatprep.mubr.f32.mxu1 %v9056_v32  ;;  %v1938_v60 = vsel %vm1933_vm0, %v1732_v25, 0 }
 0x1e6   :  { %v9033_v11 = vmax.f32 %v1884_v1, 0.0  ;;  %v9038_v12 = vmax.f32 %v1882_v20, 0.0  ;;  %v9167_v47 = vand.u32 4294901760, %v1938_v60 }
 0x1e7   :  { %v2025_v34 = vand.u32 4294901760, %v9061_v33 }
 0x1e8   :  { %1909 = vrot.lane.b32.xlu0 %v9033_v11, %s8345_s21  ;;  %v9131_v46 = vand.u32 4294901760, %v9038_v12 }
 0x1e9   :  { %v1875_v51 = vpop.permute.xlu1 %1874  ;;  %v2026_v38 = vsub.f32 %v9061_v33, %v2025_v34 }
 0x1ea   :  { %v1883_v13 = vadd.f32 %v1875_v51, %v1863_v41  ;;  %v9161_v37 = vsub.f32 %v9038_v12, %v9131_v46 }
 0x1eb   :  { %v2027_v39 = vand.u32 4294901760, %v2026_v38 }
 0x1ec   :  { %v9040_v17 = vmax.f32 %v1883_v13, 0.0  ;;  %1905 = vrot.lane.b32.xlu0 %v9038_v12, %s8345_s21 }
 0x1ed   :  { %v1867_v22 = vpop.permute.xlu1 %1866  ;;  %7194 = vmatprep.mubr.f32.mxu0 %v2027_v39 }
 0x1ee   :  { %v1881_v23 = vadd.f32 %v1867_v22, %v1861_v19  ;;  %1907 = vrot.lane.b32.xlu1 %v9040_v17, %s8345_s21  ;;  %v9112_v15 = vand.u32 4294901760, %v9040_v17 }
 0x1f0   :  { %v9049_v27 = vmax.f32 %v1881_v23, 0.0  ;;  %1895 = vrot.lane.b32.xlu0 %v9033_v11, %s8344_s20  ;;  %v9143_v61 = vsub.f32 %v9040_v17, %v9112_v15 }
 0x1f2   :  { %1903 = vrot.lane.b32.xlu1 %v9049_v27, %s8345_s21  ;;  %v9185_v23 = vand.u32 4294901760, %v9143_v61 }
 0x1f4   :  { %1891 = vrot.lane.b32.xlu0 %v9038_v12, %s8344_s20 }
 0x1f6   :  { %1893 = vrot.lane.b32.xlu1 %v9040_v17, %s8344_s20 }
 0x1f8   :  { %1930 = vperm.xlu0 %8296, %v8950_v0  }
 0x1fa   :  { %1889 = vrot.lane.b32.xlu1 %v9049_v27, %s8344_s20 }
 0x1fc   :  { %1918 = vperm.xlu0 %8296, %v8987_v10  }
 0x1fe   :  { %1926 = vperm.xlu1 %8297, %v8960_v5  }
 0x200   :  { %8299 = vset.pattern.permute.xlu0 %v11355_v40 }
 0x201   :  { %1753 = vperm.xlu0 %8299, %v8960_v5  }
 0x202   :  { %1922 = vperm.xlu1 %8297, %v8979_v9  }
 0x205   :  { %8302 = vset.pattern.permute.xlu0 %v11351_v43 }
 0x206   :  { %1778 = vperm.xlu0 %8302, %v8960_v5   ;;  %8298 = vset.pattern.permute.xlu1 %v11355_v40 }
 0x207   :  { %1758 = vperm.xlu1 %8298, %v8950_v0  }
 0x20a   :  { %1770 = vperm.xlu0 %8302, %v8987_v10  }
 0x20b   :  { %8300 = vset.pattern.permute.xlu1 %v11351_v43 }
 0x20c   :  { %1782 = vperm.xlu1 %8300, %v8950_v0  }
 0x20e   :  { %8305 = vset.pattern.permute.xlu0 %v11347_v6 }
 0x210   :  { %8301 = vset.pattern.permute.xlu1 %v11355_v40 }
 0x211   :  { %1748 = vperm.xlu1 %8301, %v8979_v9  }
 0x215   :  { %1743 = vperm.xlu1 %8301, %v8987_v10   ;;  %v9101_v10 = vand.u32 4294901760, %v9033_v11 }
 0x217   :  { %v9128_v42 = vsub.f32 %v9033_v11, %v9101_v10  ;;  %v9151_v11 = vand.u32 4294901760, %v9049_v27 }
 0x219   :  { %8303 = vset.pattern.permute.xlu1 %v11351_v43  ;;  %v9165_v41 = vand.u32 4294901760, %v9128_v42  ;;  %v9189_v24 = vsub.f32 %v9049_v27, %v9151_v11 }
 0x21a   :  { %1774 = vperm.xlu1 %8303, %v8979_v9  }
 0x21e   :  { %8304 = vset.pattern.permute.xlu1 %v11349_v2 }
 0x25a   :  { %v1910_v5 = vpop.permute.xlu0 %1909 }
 0x25b   :  { %v1916_v49 = vsel %vm9019_vm15, 0.0, %v1910_v5  ;;  %v2103_v5 = vsub.f32 %v9128_v42, %v9165_v41 }
 0x25c   :  { %v9094_v50 = vand.u32 4294901760, %v1916_v49 }
 0x25e   :  { %v9097_v0 = vsub.f32 %v1916_v49, %v9094_v50  ;;  %7170 = vmatprep.subr.mxu0 %v9094_v50  ;;  %v1906_v56 = vpop.permute.xlu0 %1905  ;;  %v9201_v49 = vand.u32 4294901760, %v9161_v37 }
 0x25f   :  { %v1914_v9 = vsel %vm9019_vm15, 0.0, %v1906_v56  ;;  %7171 = vmatpush3.msra.mxu0 %v9094_v50  ;;  %v9204_v56 = vsub.f32 %v1938_v60, %v9167_v47 }
 0x260   :  { %v9106_v62 = vand.u32 4294901760, %v1914_v9  ;;  %v1908_v63 = vpop.permute.xlu1 %1907  ;;  %v9109_v4 = vand.u32 4294901760, %v9097_v0 }
 0x261   :  { %v1915_v21 = vsel %vm9019_vm15, 0.0, %v1908_v63 }
 0x262   :  { %v9120_v26 = vsub.f32 %v1914_v9, %v9106_v62  ;;  %v9122_v31 = vand.u32 4294901760, %v1915_v21  ;;  %v1896_v35 = vpop.permute.xlu0 %1895  ;;  %v2075_v36 = vsub.f32 %v9097_v0, %v9109_v4 }
 0x263   :  { %v1902_v1 = vsel %vm9011_vm12, 0.0, %v1896_v35 }
 0x264   :  { %v9134_v52 = vsub.f32 %v1915_v21, %v9122_v31  ;;  %7172 = vmatprep.subr.mxu0 %v9122_v31  ;;  %v1904_v53 = vpop.permute.xlu1 %1903  ;;  %v2076_v54 = vand.u32 4294901760, %v2075_v36  ;;  %v9138_v57 = vand.u32 4294901760, %v9120_v26  ;;  %v9169_v51 = vand.u32 4294901760, %v1902_v1 }
 0x265   :  { %v1913_v8 = vsel %vm9019_vm15, 0.0, %v1904_v53  ;;  %7173 = vmatpush3.msra.mxu0 %v9122_v31  ;;  %v2110_v36 = vsub.f32 %v9143_v61, %v9185_v23 }
 0x266   :  { %v9153_v20 = vand.u32 4294901760, %v1913_v8  ;;  %7174 = vmatprep.subr.mxu0 %v9106_v62  ;;  %7200 = vmatprep.subr.mxu1 %v2076_v54  ;;  %v1892_v29 = vpop.permute.xlu0 %1891  ;;  %v9157_v30 = vand.u32 4294901760, %v9134_v52  ;;  %v2089_v17 = vsub.f32 %v9120_v26, %v9138_v57  ;;  %v9207_v27 = vsub.f32 %v1902_v1, %v9169_v51 }
 0x267   :  { %7175 = vmatpush3.msra.mxu0 %v9106_v62  ;;  %7201 = vmatpush3.msra.mxu1 %v2076_v54  ;;  %v1900_v19 = vsel %vm9011_vm12, 0.0, %v1892_v29  ;;  %v9226_v1 = vand.u32 4294901760, %v9189_v24 }
 0x268   :  { %v9172_v13 = vsub.f32 %v1913_v8, %v9153_v20  ;;  %7176 = vmatprep.subr.mxu0 %v9153_v20  ;;  %v1894_v14 = vpop.permute.xlu1 %1893  ;;  %v2082_v12 = vsub.f32 %v9134_v52, %v9157_v30  ;;  %v9209_v9 = vand.u32 4294901760, %v1900_v19  ;;  %v2090_v21 = vand.u32 4294901760, %v2089_v17 }
 0x269   :  { %v1901_v22 = vsel %vm9011_vm12, 0.0, %v1894_v14  ;;  %7177 = vmatpush3.msra.mxu0 %v9153_v20  ;;  %v2035_v8 = vand.u32 4294901760, %v9204_v56  ;;  %v2104_v14 = vand.u32 4294901760, %v2103_v5  ;;  %v9237_v17 = vand.u32 4294901760, %v9207_v27 }
 0x26a   :  { %v9191_v28 = vand.u32 4294901760, %v1901_v22  ;;  %7178 = vmatprep.subr.mxu0 %v9101_v10  ;;  %v2083_v38 = vand.u32 4294901760, %v2082_v12  ;;  %v9195_v39 = vand.u32 4294901760, %v9172_v13  ;;  %v9231_v29 = vsub.f32 %v1900_v19, %v9209_v9 }
 0x26b   :  { %7179 = vmatpush3.msra.mxu0 %v9101_v10  ;;  %v2117_v12 = vsub.f32 %v9161_v37, %v9201_v49  ;;  %v2111_v19 = vand.u32 4294901760, %v2110_v36  ;;  %v1733_v36 = vld [vmem:[%s11342_s3 + $0x1b0] sm:$0xff] }
 0x26c   :  { %7180 = vmatprep.subr.mxu0 %v9112_v15  ;;  %7202 = vmatprep.subr.mxu1 %v2083_v38  ;;  %v1890_v63 = vpop.permute.xlu1 %1889  ;;  %v2096_v25 = vsub.f32 %v9172_v13, %v9195_v39  ;;  %v9220_v53 = vsub.f32 %v1901_v22, %v9191_v28 }
 0x26d   :  { %v1899_v35 = vsel %vm9011_vm12, 0.0, %v1890_v63  ;;  %7181 = vmatpush3.msra.mxu0 %v9112_v15  ;;  %7203 = vmatpush3.msra.mxu1 %v2083_v38  ;;  %v2124_v38 = vsub.f32 %v9189_v24, %v9226_v1  ;;  %v2036_v63 = vsub.f32 %v9204_v56, %v2035_v8 }
 0x26e   :  { %v9222_v54 = vand.u32 4294901760, %v1899_v35  ;;  %7182 = vmatprep.subr.mxu0 %v9131_v46  ;;  %7204 = vmatprep.subr.mxu1 %v2090_v21  ;;  %v2097_v60 = vand.u32 4294901760, %v2096_v25  ;;  %v9247_v5 = vand.u32 4294901760, %v9220_v53  ;;  %v2131_v25 = vsub.f32 %v9207_v27, %v9237_v17 }
 0x26f   :  { %7183 = vmatpush3.msra.mxu0 %v9131_v46  ;;  %7205 = vmatpush3.msra.mxu1 %v2090_v21  ;;  %v2118_v21 = vand.u32 4294901760, %v2117_v12  ;;  %v2037_v6 = vand.u32 4294901760, %v2036_v63 }
 0x270   :  { %7184 = vmatprep.subr.mxu0 %v9151_v11  ;;  %7206 = vmatprep.subr.mxu1 %v2097_v60  ;;  %v9241_v22 = vsub.f32 %v1899_v35, %v9222_v54  ;;  %v9257_v35 = vand.u32 4294901760, %v9231_v29  ;;  %v2138_v12 = vsub.f32 %v9220_v53, %v9247_v5  ;;  %v2132_v2 = vand.u32 4294901760, %v2131_v25 }
 0x271   :  { %7185 = vmatpush3.msra.mxu0 %v9151_v11  ;;  %7207 = vmatpush3.msra.mxu1 %v2097_v60  ;;  %v1734_v60 = vld [vmem:[%s11342_s3 + $0x1b8] sm:$0xff] }
 0x272   :  { %7186 = vmatprep.subr.mxu0 %v9169_v51  ;;  %7208 = vmatprep.subr.mxu1 %v2104_v14  ;;  %v9270_v16 = vand.u32 4294901760, %v9241_v22  ;;  %v2145_v43 = vsub.f32 %v9231_v29, %v9257_v35  ;;  %v2139_v7 = vand.u32 4294901760, %v2138_v12 }
 0x273   :  { %7187 = vmatpush3.msra.mxu0 %v9169_v51  ;;  %7209 = vmatpush3.msra.mxu1 %v2104_v14  ;;  %v2125_v14 = vand.u32 4294901760, %v2124_v38  ;;  %v1944_v38 = vsel %vm1933_vm0, %v1734_v60, 0 }
 0x274   :  { %7188 = vmatprep.subr.mxu0 %v9191_v28  ;;  %7210 = vmatprep.subr.mxu1 %v2111_v19  ;;  %v2152_v63 = vsub.f32 %v9241_v22, %v9270_v16  ;;  %v9284_v25 = vand.u32 4294901760, %v1944_v38 }
 0x275   :  { %7189 = vmatpush3.msra.mxu0 %v9191_v28  ;;  %7211 = vmatpush3.msra.mxu1 %v2111_v19  ;;  %v1941_v19 = vsel %vm1933_vm0, %v1733_v36, 0  ;;  %v2146_v36 = vand.u32 4294901760, %v2145_v43 }
 0x276   :  { %7190 = vmatprep.subr.mxu0 %v9209_v9  ;;  %7212 = vmatprep.subr.mxu1 %v2118_v21  ;;  %v2153_v60 = vand.u32 4294901760, %v2152_v63 }
 0x277   :  { %7191 = vmatpush3.msra.mxu0 %v9209_v9  ;;  %7213 = vmatpush3.msra.mxu1 %v2118_v21  ;;  %v9282_v21 = vand.u32 4294901760, %v1941_v19 }
 0x278   :  { %7192 = vmatprep.subr.mxu0 %v9222_v54  ;;  %7214 = vmatprep.subr.mxu1 %v2125_v14 }
 0x279   :  { %7193 = vmatpush3.msra.mxu0 %v9222_v54  ;;  %7215 = vmatpush3.msra.mxu1 %v2125_v14  ;;  %v9290_v14 = vsub.f32 %v1941_v19, %v9282_v21 }
 0x27a   :  { %7216 = vmatprep.subr.mxu1 %v2132_v2  ;;  %7230 = vmatprep.subr.mxu0 %v9097_v0 }
 0x27b   :  { %7195 = vmatmul.mubr.f32.vlgmr.msra.gmra.mxu0 %v2037_v6  ;;  %7217 = vmatpush3.msra.mxu1 %v2132_v2  ;;  %v9294_v2 = vsub.f32 %v1944_v38, %v9284_v25  ;;  %v2045_v6 = vand.u32 4294901760, %v9290_v14 }
 0x27c   :  { %7231 = vmatpush3.msra.mxu0 %v9097_v0  ;;  %7218 = vmatprep.subr.mxu1 %v2139_v7 }
 0x27d   :  { %7232 = vmatprep.subr.mxu0 %v9134_v52  ;;  %7219 = vmatpush3.msra.mxu1 %v2139_v7  ;;  %v2055_v7 = vand.u32 4294901760, %v9294_v2  ;;  %v2046_v43 = vsub.f32 %v9290_v14, %v2045_v6 }
 0x27e   :  { %7233 = vmatpush3.msra.mxu0 %v9134_v52  ;;  %7220 = vmatprep.subr.mxu1 %v2146_v36 }
 0x27f   :  { %7234 = vmatprep.subr.mxu0 %v9120_v26  ;;  %7221 = vmatpush3.msra.mxu1 %v2146_v36  ;;  %v2056_v0 = vsub.f32 %v9294_v2, %v2055_v7 }
 0x280   :  { %7235 = vmatpush3.msra.mxu0 %v9120_v26  ;;  %7222 = vmatprep.subr.mxu1 %v2153_v60  ;;  %v2047_v26 = vand.u32 4294901760, %v2046_v43 }
 0x281   :  { %7236 = vmatprep.subr.mxu0 %v9172_v13  ;;  %7223 = vmatpush3.msra.mxu1 %v2153_v60 }
 0x282   :  { %7237 = vmatpush3.msra.mxu0 %v9172_v13  ;;  %7225 = vmatmul.mubr.f32.vlgmr.msra.gmra.mxu1 %v9167_v47 }
 0x283   :  { %7238 = vmatprep.subr.mxu0 %v9128_v42  ;;  %7260 = vmatprep.subr.mxu1 %v9094_v50 }
 0x284   :  { %7239 = vmatpush3.msra.mxu0 %v9128_v42  ;;  %7261 = vmatpush3.msra.mxu1 %v9094_v50  ;;  %v2057_v42 = vand.u32 4294901760, %v2056_v0 }
 0x285   :  { %7240 = vmatprep.subr.mxu0 %v9143_v61  ;;  %7262 = vmatprep.subr.mxu1 %v9122_v31 }
 0x286   :  { %7241 = vmatpush3.msra.mxu0 %v9143_v61  ;;  %7263 = vmatpush3.msra.mxu1 %v9122_v31  ;;  %v1931_v61 = vpop.permute.xlu0 %1930 }
 0x287   :  { %7242 = vmatprep.subr.mxu0 %v9161_v37  ;;  %7264 = vmatprep.subr.mxu1 %v9106_v62 }
 0x288   :  { %7243 = vmatpush3.msra.mxu0 %v9161_v37  ;;  %7265 = vmatpush3.msra.mxu1 %v9106_v62 }
 0x289   :  { %7244 = vmatprep.subr.mxu0 %v9189_v24  ;;  %7266 = vmatprep.subr.mxu1 %v9153_v20 }
 0x28a   :  { %7245 = vmatpush3.msra.mxu0 %v9189_v24  ;;  %7267 = vmatpush3.msra.mxu1 %v9153_v20  ;;  %v1919_v37 = vpop.permute.xlu0 %1918 }
 0x28b   :  { %7246 = vmatprep.subr.mxu0 %v9207_v27  ;;  %7268 = vmatprep.subr.mxu1 %v9101_v10 }
 0x28c   :  { %7247 = vmatpush3.msra.mxu0 %v9207_v27  ;;  %7269 = vmatpush3.msra.mxu1 %v9101_v10 }
 0x28d   :  { %7248 = vmatprep.subr.mxu0 %v9220_v53  ;;  %7270 = vmatprep.subr.mxu1 %v9112_v15 }
 0x28e   :  { %7197 = vmatprep.mubr.f32.mxu0 %v2047_v26  ;;  %7249 = vmatpush3.msra.mxu0 %v9220_v53 }
 0x28f   :  { %7271 = vmatpush3.msra.mxu1 %v9112_v15  ;;  %7198 = vmatmul.mubr.f32.gmra.mxu0 %v2057_v42 }
 0x290   :  { %7250 = vmatprep.subr.mxu0 %v9231_v29  ;;  %7272 = vmatprep.subr.mxu1 %v9131_v46 }
 0x291   :  { %7251 = vmatpush3.msra.mxu0 %v9231_v29  ;;  %7273 = vmatpush3.msra.mxu1 %v9131_v46 }
 0x292   :  { %7252 = vmatprep.subr.mxu0 %v9241_v22  ;;  %7274 = vmatprep.subr.mxu1 %v9151_v11 }
 0x293   :  { %7253 = vmatpush3.msra.mxu0 %v9241_v22  ;;  %7254 = vmatprep.mubr.f32.mxu0 %v9061_v33 }
 0x294   :  { %7275 = vmatpush3.msra.mxu1 %v9151_v11  ;;  %7255 = vmatmul.mubr.f32.vlgmr.msra.gmra.mxu0 %v9204_v56  ;;  %v1754_v56 = vpop.permute.xlu0 %1753 }
 0x295   :  { %7276 = vmatprep.subr.mxu1 %v9169_v51  ;;  %7290 = vmatprep.subr.mxu0 %v9109_v4  ;;  %v1767_v43 = vmul.f32 %v9024_v59, %v1754_v56  ;;  %v2672_v56 = vld [vmem:[%s11342_s3 + $0x200] sm:$0xff] }
 0x296   :  { %7277 = vmatpush3.msra.mxu1 %v9169_v51  ;;  %7291 = vmatpush3.msra.mxu0 %v9109_v4 }
 0x297   :  { %7227 = vmatprep.mubr.f32.mxu1 %v9282_v21  ;;  %7278 = vmatprep.subr.mxu1 %v9191_v28 }
 0x298   :  { %7292 = vmatprep.subr.mxu0 %v9157_v30  ;;  %7228 = vmatmul.mubr.f32.gmra.mxu1 %v9284_v25  ;;  %v1779_v12 = vpop.permute.xlu0 %1778 }
 0x299   :  { %7279 = vmatpush3.msra.mxu1 %v9191_v28  ;;  %7293 = vmatpush3.msra.mxu0 %v9157_v30 }
 0x29a   :  { %7257 = vmatprep.mubr.f32.mxu0 %v9290_v14  ;;  %7280 = vmatprep.subr.mxu1 %v9209_v9 }
 0x29b   :  { %7294 = vmatprep.subr.mxu0 %v9138_v57  ;;  %7258 = vmatmul.mubr.f32.gmra.mxu0 %v9294_v2 }
 0x29c   :  { %7281 = vmatpush3.msra.mxu1 %v9209_v9  ;;  %7295 = vmatpush3.msra.mxu0 %v9138_v57 }
 0x29d   :  { %7282 = vmatprep.subr.mxu1 %v9222_v54  ;;  %7296 = vmatprep.subr.mxu0 %v9195_v39 }
 0x29e   :  { %7283 = vmatpush3.msra.mxu1 %v9222_v54  ;;  %7284 = vmatprep.mubr.f32.mxu1 %v2025_v34 }
 0x29f   :  { %7297 = vmatpush3.msra.mxu0 %v9195_v39  ;;  %7285 = vmatmul.mubr.f32.vlgmr.msra.gmra.mxu1 %v2035_v8 }
 0x2a0   :  { %7298 = vmatprep.subr.mxu0 %v9165_v41  ;;  %7320 = vmatprep.subr.mxu1 %v9094_v50 }
 0x2a1   :  { %7299 = vmatpush3.msra.mxu0 %v9165_v41  ;;  %7321 = vmatpush3.msra.mxu1 %v9094_v50 }
 0x2a2   :  { %7300 = vmatprep.subr.mxu0 %v9185_v23  ;;  %7322 = vmatprep.subr.mxu1 %v9122_v31 }
 0x2a3   :  { %7287 = vmatprep.mubr.f32.mxu1 %v2045_v6  ;;  %7301 = vmatpush3.msra.mxu0 %v9185_v23 }
 0x2a4   :  { %7323 = vmatpush3.msra.mxu1 %v9122_v31  ;;  %7302 = vmatprep.subr.mxu0 %v9201_v49 }
 0x2a5   :  { %7288 = vmatmul.mubr.f32.gmra.mxu1 %v2055_v7  ;;  %7324 = vmatprep.subr.mxu1 %v9106_v62 }
 0x2a6   :  { %7303 = vmatpush3.msra.mxu0 %v9201_v49  ;;  %7325 = vmatpush3.msra.mxu1 %v9106_v62 }
 0x2a7   :  { %7304 = vmatprep.subr.mxu0 %v9226_v1  ;;  %7326 = vmatprep.subr.mxu1 %v9153_v20 }
 0x2a8   :  { %7305 = vmatpush3.msra.mxu0 %v9226_v1  ;;  %7327 = vmatpush3.msra.mxu1 %v9153_v20 }
 0x2a9   :  { %7306 = vmatprep.subr.mxu0 %v9237_v17  ;;  %7328 = vmatprep.subr.mxu1 %v9101_v10 }
 0x2aa   :  { %7307 = vmatpush3.msra.mxu0 %v9237_v17  ;;  %7329 = vmatpush3.msra.mxu1 %v9101_v10 }
 0x2ab   :  { %7308 = vmatprep.subr.mxu0 %v9247_v5  ;;  %7330 = vmatprep.subr.mxu1 %v9112_v15 }
 0x2ac   :  { %7309 = vmatpush3.msra.mxu0 %v9247_v5  ;;  %7331 = vmatpush3.msra.mxu1 %v9112_v15 }
 0x2ad   :  { %7310 = vmatprep.subr.mxu0 %v9257_v35  ;;  %7332 = vmatprep.subr.mxu1 %v9131_v46 }
 0x2ae   :  { %7311 = vmatpush3.msra.mxu0 %v9257_v35  ;;  %7333 = vmatpush3.msra.mxu1 %v9131_v46 }
 0x2af   :  { %7312 = vmatprep.subr.mxu0 %v9270_v16  ;;  %7334 = vmatprep.subr.mxu1 %v9151_v11 }
 0x2b0   :  { %7313 = vmatpush3.msra.mxu0 %v9270_v16  ;;  %7314 = vmatprep.mubr.f32.mxu0 %v9056_v32 }
 0x2b1   :  { %7335 = vmatpush3.msra.mxu1 %v9151_v11  ;;  %7315 = vmatmul.mubr.f32.vlgmr.msra.gmra.mxu0 %v9167_v47 }
 0x2b2   :  { %7336 = vmatprep.subr.mxu1 %v9169_v51  ;;  %7317 = vmatprep.mubr.f32.mxu0 %v9282_v21 }
 0x2b3   :  { %7337 = vmatpush3.msra.mxu1 %v9169_v51  ;;  %7344 = vmatprep.mubr.f32.mxu1 %v9056_v32  ;;  %v1927_v32 = vpop.permute.xlu1 %1926 }
 0x2b4   :  { %7338 = vmatprep.subr.mxu1 %v9191_v28  ;;  %7350 = vmatprep.subr.mxu0 %v11373_v3 }
 0x2b5   :  { %7339 = vmatpush3.msra.mxu1 %v9191_v28  ;;  %7318 = vmatmul.mubr.f32.gmra.mxu0 %v9284_v25 }
 0x2b6   :  { %7340 = vmatprep.subr.mxu1 %v9209_v9  ;;  %7374 = vmatprep.mubr.msk.f32.mxu0 %vm8339_vm1, %v11373_v3 }
 0x2b7   :  { %7341 = vmatpush3.msra.mxu1 %v9209_v9  ;;  %v1923_v10 = vpop.permute.xlu1 %1922 }
 0x2b8   :  { %7342 = vmatprep.subr.mxu1 %v9222_v54 }
 0x2b9   :  { %7343 = vmatpush3.msra.mxu1 %v9222_v54 }
 0x2ba   :  { %7345 = vmatmul.mubr.f32.vlgmr.msra.gmra.mxu1 %v9167_v47  ;;  %7377 = vmatprep.subr.mxu1 %v11373_v3 }
 0x2bb   :  { %7347 = vmatprep.mubr.f32.mxu1 %v9282_v21  ;;  %v1759_v46 = vpop.permute.xlu1 %1758 }
 0x2be   :  { %7348 = vmatmul.mubr.f32.gmra.mxu1 %v9284_v25  ;;  %v1768_v25 = vmul.f32 %v9024_v59, %v1759_v46 }
 0x2bf   :  { %7401 = vmatprep.mubr.msk.f32.mxu1 %vm8339_vm1, %v11373_v3  ;;  %v1783_v11 = vpop.permute.xlu1 %1782 }
 0x2c0   :  { %v1788_v0 = vadd.f32 %v1783_v11, %v1768_v25 }
 0x2c3   :  { %v1749_v51 = vpop.permute.xlu1 %1748 }
 0x2c4   :  { %v1766_v26 = vmul.f32 %v9024_v59, %v1749_v51  ;;  %v2673_v51 = vld [vmem:[%s11342_s3 + $0x208] sm:$0xff] }
 0x2c7   :  { %v1744_v53 = vpop.permute.xlu1 %1743 }
 0x2c8   :  { %v1765_v42 = vmul.f32 %v9024_v59, %v1744_v53 }
 0x33b   :  { %v7196_v16 = vpop.f32.mrf.mxu0 }
 0x33c   :  { %v2040_v24 = vadd.f32 %v7196_v16, %v1923_v10  ;;  %v1775_v16 = vpop.permute.xlu1 %1774 }
 0x33d   :  { %v2029_v33 = vpop.f32.mrf.mxu0 }
 0x33e   :  { %v2030_v27 = vadd.f32 %v2029_v33, %v1919_v37 }
 0x342   :  { %v7226_v50 = vpop.f32.mrf.mxu1 }
 0x343   :  { %v2197_v54 = vadd.f32 %v7226_v50, %v2040_v24  ;;  %v11392_v24 = vmov 0  }
 0x344   :  { %v2190_v4 = vpop.f32.mrf.mxu1 }
 0x345   :  { %v2191_v17 = vadd.f32 %v2190_v4, %v2030_v27  ;;  %v1771_v4 = vpop.permute.xlu0 %1770 }
 0x34f   :  { %v7199_v34 = vpop.f32.mrf.mxu0 }
 0x350   :  { %v2060_v13 = vadd.f32 %v7199_v34, %v1931_v61  ;;  %v1785_v61 = vadd.f32 %v1771_v4, %v1765_v42 }
 0x351   :  { %v2049_v62 = vpop.f32.mrf.mxu0 }
 0x352   :  { %v2050_v28 = vadd.f32 %v2049_v62, %v1927_v32  ;;  %v1787_v62 = vadd.f32 %v1779_v12, %v1767_v43 }
 0x354   :  { %v7256_v15 = vpop.f32.mrf.mxu0 }
 0x355   :  { %v2312_v22 = vadd.f32 %v7256_v15, %v2197_v54 }
 0x356   :  { %v2304_v52 = vpop.f32.mrf.mxu0 }
 0x357   :  { %v2305_v19 = vadd.f32 %v2304_v52, %v2191_v17  ;;  %v2699_v17 = vsel %vm1933_vm0, %v2672_v56, 0 }
 0x358   :  { %v7229_v31 = vpop.f32.mrf.mxu1 }
 0x359   :  { %v2209_v9 = vadd.f32 %v7229_v31, %v2060_v13  ;;  %v1786_v31 = vadd.f32 %v1775_v16, %v1766_v26  ;;  %v11390_v13 = vmov 1  }
 0x35a   :  { %v2202_v57 = vpop.f32.mrf.mxu1 }
 0x35b   :  { %v7259_v20 = vpop.f32.mrf.mxu0  ;;  %v2203_v1 = vadd.f32 %v2202_v57, %v2050_v28 }
 0x35c   :  { %v2326_v5 = vadd.f32 %v7259_v20, %v2209_v9 }
 0x35d   :  { %v2318_v41 = vpop.f32.mrf.mxu0 }
 0x35e   :  { %v2319_v38 = vadd.f32 %v2318_v41, %v2203_v1 }
 0x35f   :  { %v7286_v30 = vpop.f32.mrf.mxu1 }
 0x360   :  { %v2419_v63 = vadd.f32 %v7286_v30, %v2312_v22 }
 0x361   :  { %v2410_v47 = vpop.f32.mrf.mxu1 }
 0x362   :  { %v2411_v14 = vadd.f32 %v2410_v47, %v2305_v19 }
 0x365   :  { %v7289_v39 = vpop.f32.mrf.mxu1 }
 0x366   :  { %v2435_v21 = vadd.f32 %v7289_v39, %v2326_v5 }
 0x367   :  { %v2426_v8 = vpop.f32.mrf.mxu1 }
 0x368   :  { %v2427_v2 = vadd.f32 %v2426_v8, %v2319_v38 }
 0x371   :  { %v7316_v23 = vpop.f32.mrf.mxu0 }
 0x372   :  { %v2548_v6 = vadd.f32 %v7316_v23, %v2419_v63  ;;  %v11391_v23 = vmov 5  }
 0x373   :  { %v2541_v49 = vpop.f32.mrf.mxu0 }
 0x374   :  { %v2542_v33 = vadd.f32 %v2541_v49, %v2411_v14 }
 0x375   :  { %v7319_v29 = vpop.f32.mrf.mxu0 }
 0x376   :  { %v2560_v7 = vadd.f32 %v7319_v29, %v2435_v21 }
 0x377   :  { %v2553_v36 = vpop.f32.mrf.mxu0 }
 0x378   :  { %v2554_v34 = vadd.f32 %v2553_v36, %v2427_v2 }
 0x37a   :  { %v7346_v35 = vpop.f32.mrf.mxu1 }
 0x37b   :  { %v2649_v50 = vadd.f32 %v7346_v35, %v2548_v6 }
 0x37c   :  { %v2642_v60 = vpop.f32.mrf.mxu1 }
 0x37d   :  { %v2643_v46 = vadd.f32 %v2642_v60, %v2542_v33  ;;  %v2665_v20 = vadd.f32 %v2649_v50, %v1786_v31  ;;  %v9488_v60 = vand.u32 4294901760, %v2699_v17 }
 0x37e   :  { %v7349_v32 = vpop.f32.mrf.mxu1 }
 0x37f   :  { %v2661_v10 = vadd.f32 %v7349_v32, %v2560_v7  ;;  %v2664_v37 = vadd.f32 %v2643_v46, %v1785_v61  ;;  %v2669_v59 = vmax.f32 %v2665_v20, 0.0  ;;  %v9525_v31 = vsub.f32 %v2699_v17, %v9488_v60 }
 0x380   :  { %v2654_v15 = vpop.f32.mrf.mxu1 }
 0x381   :  { %v2667_v52 = vadd.f32 %v2661_v10, %v1788_v0  ;;  %v2655_v57 = vadd.f32 %v2654_v15, %v2554_v34  ;;  %v2668_v47 = vmax.f32 %v2664_v37, 0.0  ;;  %v9468_v5 = vand.u32 4294901760, %v2669_v59 }
 0x383   :  { %v2671_v11 = vmax.f32 %v2667_v52, 0.0  ;;  %v2666_v30 = vadd.f32 %v2655_v57, %v1787_v62  ;;  %v9470_v35 = vand.u32 4294901760, %v2668_v47  ;;  %v9505_v42 = vsub.f32 %v2669_v59, %v9468_v5 }
 0x385   :  { %v2670_v41 = vmax.f32 %v2666_v30, 0.0  ;;  %2692 = vrot.lane.b32.xlu1 %v2671_v11, %s8345_s21  ;;  %v9447_v49 = vand.u32 4294901760, %v2671_v11  ;;  %v9508_v16 = vsub.f32 %v2668_v47, %v9470_v35  ;;  %v2841_v37 = vand.u32 4294901760, %v9505_v42 }
 0x387   :  { %2690 = vrot.lane.b32.xlu0 %v2670_v41, %s8345_s21  ;;  %v9456_v54 = vand.u32 4294901760, %v2670_v41  ;;  %v9473_v12 = vsub.f32 %v2671_v11, %v9447_v49 }
 0x389   :  { %2688 = vrot.lane.b32.xlu1 %v2669_v59, %s8345_s21  ;;  %v9486_v36 = vsub.f32 %v2670_v41, %v9456_v54  ;;  %v2827_v26 = vand.u32 4294901760, %v9473_v12 }
 0x38b   :  { %2686 = vrot.lane.b32.xlu0 %v2668_v47, %s8345_s21  ;;  %v2834_v15 = vand.u32 4294901760, %v9486_v36  ;;  %v2828_v30 = vsub.f32 %v9473_v12, %v2827_v26 }
 0x38d   :  { %2680 = vrot.lane.b32.xlu1 %v2671_v11, %s8344_s20  ;;  %v2835_v56 = vsub.f32 %v9486_v36, %v2834_v15 }
 0x38f   :  { %2678 = vrot.lane.b32.xlu0 %v2670_v41, %s8344_s20 }
 0x391   :  { %2676 = vrot.lane.b32.xlu1 %v2669_v59, %s8344_s20 }
 0x393   :  { %2674 = vrot.lane.b32.xlu0 %v2668_v47, %s8344_s20 }
 0x395   :  { %3292 = vperm.xlu1 %8304, %v2673_v51  }
 0x397   :  { %3310 = vperm.xlu0 %8305, %v2673_v51  }
 0x399   :  { %8306 = vset.pattern.permute.xlu1 %v8343_v45 }
 0x39a   :  { %3315 = vperm.xlu1 %8306, %v2673_v51  }
 0x39b   :  { %8308 = vset.pattern.permute.xlu0 %v11355_v40 }
 0x39c   :  { %3321 = vperm.xlu0 %8308, %v2673_v51  }
 0x39e   :  { %8307 = vset.pattern.permute.xlu1 %v11390_v13 }
 0x39f   :  { %3298 = vperm.xlu1 %8307, %v2673_v51  }
 0x3a0   :  { %8309 = vset.pattern.permute.xlu0 %v11391_v23 }
 0x3a1   :  { %3327 = vperm.xlu0 %8309, %v2673_v51  }
 0x3a3   :  { %8310 = vset.pattern.permute.xlu1 %v11392_v24 }
 0x3a5   :  { %8313 = vset.pattern.permute.xlu0 %v11390_v13 }
 0x3f7   :  { %v2693_v28 = vpop.permute.xlu1 %2692 }
 0x3f8   :  { %v2697_v39 = vsel %vm9019_vm15, 0.0, %v2693_v28 }
 0x3f9   :  { %v9452_v27 = vand.u32 4294901760, %v2697_v39  ;;  %v2691_v9 = vpop.permute.xlu0 %2690 }
 0x3fa   :  { %v2696_v53 = vsel %vm9019_vm15, 0.0, %v2691_v9  ;;  %v2848_v9 = vand.u32 4294901760, %v9508_v16 }
 0x3fb   :  { %v9459_v1 = vsub.f32 %v2697_v39, %v9452_v27  ;;  %v9461_v8 = vand.u32 4294901760, %v2696_v53  ;;  %7351 = vmatpush3.msra.mxu0 %v9452_v27  ;;  %v2689_v29 = vpop.permute.xlu1 %2688 }
 0x3fc   :  { %v2695_v22 = vsel %vm9019_vm15, 0.0, %v2689_v29  ;;  %7352 = vmatprep.subr.mxu0 %v11373_v3 }
 0x3fd   :  { %v2799_v19 = vand.u32 4294901760, %v9459_v1  ;;  %v9477_v38 = vsub.f32 %v2696_v53, %v9461_v8  ;;  %v9479_v63 = vand.u32 4294901760, %v2695_v22  ;;  %7353 = vmatpush3.msra.mxu0 %v9461_v8  ;;  %v2687_v21 = vpop.permute.xlu0 %2686 }
 0x3fe   :  { %v2694_v25 = vsel %vm9019_vm15, 0.0, %v2687_v21  ;;  %7354 = vmatprep.subr.mxu0 %v11373_v3 }
 0x3ff   :  { %v2800_v14 = vsub.f32 %v9459_v1, %v2799_v19  ;;  %v2806_v2 = vand.u32 4294901760, %v9477_v38  ;;  %v9495_v6 = vsub.f32 %v2695_v22, %v9479_v63  ;;  %v9497_v7 = vand.u32 4294901760, %v2694_v25  ;;  %v2681_v43 = vpop.permute.xlu1 %2680  ;;  %7355 = vmatpush3.msra.mxu0 %v9479_v63 }
 0x400   :  { %v2685_v0 = vsel %vm9011_vm12, 0.0, %v2681_v43  ;;  %7356 = vmatprep.subr.mxu0 %v11373_v3  ;;  %v2780_v22 = vand.u32 4294901760, %v9525_v31  ;;  %v2842_v43 = vsub.f32 %v9505_v42, %v2841_v37 }
 0x401   :  { %v2801_v32 = vand.u32 4294901760, %v2800_v14  ;;  %v2807_v33 = vsub.f32 %v9477_v38, %v2806_v2  ;;  %v2813_v34 = vand.u32 4294901760, %v9495_v6  ;;  %v9515_v50 = vsub.f32 %v2694_v25, %v9497_v7  ;;  %7357 = vmatpush3.msra.mxu0 %v9497_v7  ;;  %v2679_v10 = vpop.permute.xlu0 %2678 }
 0x402   :  { %v9518_v62 = vand.u32 4294901760, %v2685_v0  ;;  %v2684_v4 = vsel %vm9011_vm12, 0.0, %v2679_v10  ;;  %7358 = vmatprep.subr.mxu0 %v11373_v3  ;;  %v2829_v14 = vand.u32 4294901760, %v2828_v30  ;;  %v2836_v10 = vand.u32 4294901760, %v2835_v56 }
 0x403   :  { %v2808_v46 = vand.u32 4294901760, %v2807_v33  ;;  %v2814_v52 = vsub.f32 %v9495_v6, %v2813_v34  ;;  %v2820_v57 = vand.u32 4294901760, %v9515_v50  ;;  %v9531_v61 = vand.u32 4294901760, %v2684_v4  ;;  %7378 = vmatpush3.msra.mxu1 %v2801_v32  ;;  %v2677_v20 = vpop.permute.xlu1 %2676  ;;  %7359 = vmatpush3.msra.mxu0 %v9447_v49 }
 0x404   :  { %v2683_v11 = vsel %vm9011_vm12, 0.0, %v2677_v20  ;;  %7360 = vmatprep.subr.mxu0 %v11373_v3  ;;  %7379 = vmatprep.subr.mxu1 %v11373_v3  ;;  %v9546_v47 = vsub.f32 %v2685_v0, %v9518_v62  ;;  %v2849_v0 = vsub.f32 %v9508_v16, %v2848_v9  ;;  %v2843_v20 = vand.u32 4294901760, %v2842_v43 }
 0x405   :  { %v2815_v41 = vand.u32 4294901760, %v2814_v52  ;;  %v2821_v59 = vsub.f32 %v9515_v50, %v2820_v57  ;;  %v9548_v51 = vand.u32 4294901760, %v2683_v11  ;;  %7361 = vmatpush3.msra.mxu0 %v9456_v54  ;;  %7380 = vmatpush3.msra.mxu1 %v2808_v46  ;;  %v2675_v28 = vpop.permute.xlu0 %2674  ;;  %v9560_v29 = vsub.f32 %v2684_v4, %v9531_v61 }
 0x406   :  { %v2682_v39 = vsel %vm9011_vm12, 0.0, %v2675_v28  ;;  %7362 = vmatprep.subr.mxu0 %v11373_v3  ;;  %7381 = vmatprep.subr.mxu1 %v11373_v3  ;;  %v2855_v21 = vand.u32 4294901760, %v9546_v47  ;;  %v2781_v4 = vsub.f32 %v9525_v31, %v2780_v22 }
 0x407   :  { %v2822_v53 = vand.u32 4294901760, %v2821_v59  ;;  %v9562_v17 = vand.u32 4294901760, %v2682_v39  ;;  %7363 = vmatpush3.msra.mxu0 %v9468_v5  ;;  %7382 = vmatpush3.msra.mxu1 %v2815_v41  ;;  %v9570_v25 = vsub.f32 %v2683_v11, %v9548_v51  ;;  %v2862_v32 = vand.u32 4294901760, %v9560_v29 }
 0x408   :  { %7364 = vmatprep.subr.mxu0 %v11373_v3  ;;  %7383 = vmatprep.subr.mxu1 %v11373_v3  ;;  %v2856_v46 = vsub.f32 %v9546_v47, %v2855_v21  ;;  %v2850_v41 = vand.u32 4294901760, %v2849_v0  ;;  %v2782_v59 = vand.u32 4294901760, %v2781_v4 }
 0x409   :  { %7365 = vmatpush3.msra.mxu0 %v9470_v35  ;;  %7384 = vmatpush3.msra.mxu1 %v2822_v53  ;;  %v9583_v33 = vsub.f32 %v2682_v39, %v9562_v17  ;;  %v2869_v52 = vand.u32 4294901760, %v9570_v25  ;;  %v2863_v11 = vsub.f32 %v9560_v29, %v2862_v32 }
 0x40a   :  { %7366 = vmatprep.subr.mxu0 %v11373_v3  ;;  %7385 = vmatprep.subr.mxu1 %v11373_v3  ;;  %v2857_v28 = vand.u32 4294901760, %v2856_v46 }
 0x40b   :  { %7367 = vmatpush3.msra.mxu0 %v9518_v62  ;;  %7386 = vmatpush3.msra.mxu1 %v2829_v14  ;;  %v2876_v30 = vand.u32 4294901760, %v9583_v33  ;;  %v2870_v39 = vsub.f32 %v9570_v25, %v2869_v52  ;;  %v2864_v56 = vand.u32 4294901760, %v2863_v11 }
 0x40c   :  { %7368 = vmatprep.subr.mxu0 %v11373_v3  ;;  %7387 = vmatprep.subr.mxu1 %v11373_v3 }
 0x40d   :  { %7369 = vmatpush3.msra.mxu0 %v9531_v61  ;;  %7388 = vmatpush3.msra.mxu1 %v2836_v10  ;;  %v2877_v53 = vsub.f32 %v9583_v33, %v2876_v30  ;;  %v2871_v14 = vand.u32 4294901760, %v2870_v39 }
 0x40e   :  { %7370 = vmatprep.subr.mxu0 %v11373_v3  ;;  %7389 = vmatprep.subr.mxu1 %v11373_v3 }
 0x40f   :  { %7371 = vmatpush3.msra.mxu0 %v9548_v51  ;;  %7390 = vmatpush3.msra.mxu1 %v2843_v20  ;;  %v2878_v43 = vand.u32 4294901760, %v2877_v53 }
 0x410   :  { %7372 = vmatprep.subr.mxu0 %v11373_v3  ;;  %7391 = vmatprep.subr.mxu1 %v11373_v3 }
 0x411   :  { %7373 = vmatpush3.msra.mxu0 %v9562_v17  ;;  %7392 = vmatpush3.msra.mxu1 %v2850_v41 }
 0x412   :  { %7393 = vmatprep.subr.mxu1 %v11373_v3  ;;  %7404 = vmatprep.subr.mxu0 %v11373_v3 }
 0x413   :  { %7375 = vmatmul.mubr.f32.vlgmr.msra.gmra.mxu0 %v2782_v59  ;;  %7394 = vmatpush3.msra.mxu1 %v2857_v28 }
 0x414   :  { %7405 = vmatpush3.msra.mxu0 %v9459_v1  ;;  %7395 = vmatprep.subr.mxu1 %v11373_v3 }
 0x415   :  { %7406 = vmatprep.subr.mxu0 %v11373_v3  ;;  %7396 = vmatpush3.msra.mxu1 %v2864_v56 }
 0x416   :  { %7407 = vmatpush3.msra.mxu0 %v9477_v38  ;;  %7397 = vmatprep.subr.mxu1 %v11373_v3 }
 0x417   :  { %7408 = vmatprep.subr.mxu0 %v11373_v3  ;;  %7398 = vmatpush3.msra.mxu1 %v2871_v14 }
 0x418   :  { %7409 = vmatpush3.msra.mxu0 %v9495_v6  ;;  %7399 = vmatprep.subr.mxu1 %v11373_v3 }
 0x419   :  { %7410 = vmatprep.subr.mxu0 %v11373_v3  ;;  %7400 = vmatpush3.msra.mxu1 %v2878_v43 }
 0x41a   :  { %7411 = vmatpush3.msra.mxu0 %v9515_v50  ;;  %7402 = vmatmul.mubr.f32.vlgmr.msra.gmra.mxu1 %v9488_v60 }
 0x41b   :  { %7412 = vmatprep.subr.mxu0 %v11373_v3  ;;  %7431 = vmatprep.subr.mxu1 %v11373_v3 }
 0x41c   :  { %7413 = vmatpush3.msra.mxu0 %v9473_v12  ;;  %7432 = vmatpush3.msra.mxu1 %v9452_v27  ;;  %v60_v12 = vld [vmem:[%s11342_s3 + $0xd8] sm:$0xff] }
 0x41d   :  { %7414 = vmatprep.subr.mxu0 %v11373_v3  ;;  %7433 = vmatprep.subr.mxu1 %v11373_v3 }
 0x41e   :  { %7415 = vmatpush3.msra.mxu0 %v9486_v36  ;;  %7434 = vmatpush3.msra.mxu1 %v9461_v8 }
 0x41f   :  { %7416 = vmatprep.subr.mxu0 %v11373_v3  ;;  %7435 = vmatprep.subr.mxu1 %v11373_v3 }
 0x420   :  { %7417 = vmatpush3.msra.mxu0 %v9505_v42  ;;  %7436 = vmatpush3.msra.mxu1 %v9479_v63 }
 0x421   :  { %7418 = vmatprep.subr.mxu0 %v11373_v3  ;;  %7437 = vmatprep.subr.mxu1 %v11373_v3 }
 0x422   :  { %7419 = vmatpush3.msra.mxu0 %v9508_v16  ;;  %7438 = vmatpush3.msra.mxu1 %v9497_v7 }
 0x423   :  { %7420 = vmatprep.subr.mxu0 %v11373_v3  ;;  %7439 = vmatprep.subr.mxu1 %v11373_v3 }
 0x424   :  { %7421 = vmatpush3.msra.mxu0 %v9546_v47  ;;  %7440 = vmatpush3.msra.mxu1 %v9447_v49 }
 0x425   :  { %7422 = vmatprep.subr.mxu0 %v11373_v3  ;;  %7441 = vmatprep.subr.mxu1 %v11373_v3 }
 0x426   :  { %7423 = vmatpush3.msra.mxu0 %v9560_v29  ;;  %7442 = vmatpush3.msra.mxu1 %v9456_v54 }
 0x427   :  { %7424 = vmatprep.subr.mxu0 %v11373_v3  ;;  %7443 = vmatprep.subr.mxu1 %v11373_v3 }
 0x428   :  { %7425 = vmatpush3.msra.mxu0 %v9570_v25  ;;  %7444 = vmatpush3.msra.mxu1 %v9468_v5 }
 0x429   :  { %7426 = vmatprep.subr.mxu0 %v11373_v3  ;;  %7445 = vmatprep.subr.mxu1 %v11373_v3 }
 0x42a   :  { %7427 = vmatpush3.msra.mxu0 %v9583_v33  ;;  %7428 = vmatprep.mubr.msk.f32.mxu0 %vm8339_vm1, %v11373_v3 }
 0x42b   :  { %7446 = vmatpush3.msra.mxu1 %v9470_v35  ;;  %7429 = vmatmul.mubr.f32.vlgmr.msra.gmra.mxu0 %v9525_v31 }
 0x42c   :  { %7447 = vmatprep.subr.mxu1 %v11373_v3  ;;  %7458 = vmatprep.subr.mxu0 %v11373_v3 }
 0x42d   :  { %7448 = vmatpush3.msra.mxu1 %v9518_v62  ;;  %7459 = vmatpush3.msra.mxu0 %v2799_v19  ;;  %v59_v19 = vld [vmem:[%s11342_s3 + $0xd0] sm:$0xff] }
 0x42e   :  { %7449 = vmatprep.subr.mxu1 %v11373_v3  ;;  %7460 = vmatprep.subr.mxu0 %v11373_v3  ;;  %v9772_v36 = vand.u32 4294901760, %v59_v19 }
 0x42f   :  { %7450 = vmatpush3.msra.mxu1 %v9531_v61  ;;  %7461 = vmatpush3.msra.mxu0 %v2806_v2  ;;  %v57_v2 = vld [vmem:[%s11342_s3 + $0xc0] sm:$0xff] }
 0x430   :  { %7451 = vmatprep.subr.mxu1 %v11373_v3  ;;  %7462 = vmatprep.subr.mxu0 %v11373_v3  ;;  %v9800_v50 = vsub.f32 %v59_v19, %v9772_v36  ;;  %v55_v19 = vld [vmem:[%s11342_s3 + $0xb0] sm:$0xff] }
 0x431   :  { %7452 = vmatpush3.msra.mxu1 %v9548_v51  ;;  %7463 = vmatpush3.msra.mxu0 %v2813_v34 }
 0x432   :  { %7453 = vmatprep.subr.mxu1 %v11373_v3  ;;  %7464 = vmatprep.subr.mxu0 %v11373_v3 }
 0x433   :  { %7454 = vmatpush3.msra.mxu1 %v9562_v17  ;;  %7455 = vmatprep.mubr.msk.f32.mxu1 %vm8339_vm1, %v11373_v3 }
 0x434   :  { %7465 = vmatpush3.msra.mxu0 %v2820_v57  ;;  %7456 = vmatmul.mubr.f32.vlgmr.msra.gmra.mxu1 %v2780_v22  ;;  %v9806_v57 = vand.u32 4294901760, %v57_v2 }
 0x435   :  { %7466 = vmatprep.subr.mxu0 %v11373_v3  ;;  %7485 = vmatprep.subr.mxu1 %v11373_v3 }
 0x436   :  { %7467 = vmatpush3.msra.mxu0 %v2827_v26  ;;  %7486 = vmatpush3.msra.mxu1 %v9452_v27  ;;  %v63_v27 = vld [vmem:[%s11342_s3 + $0xf0] sm:$0xff]  ;;  %v9831_v0 = vsub.f32 %v57_v2, %v9806_v57  ;;  %v9875_v2 = vand.u32 4294901760, %v55_v19 }
 0x437   :  { %7468 = vmatprep.subr.mxu0 %v11373_v3  ;;  %7487 = vmatprep.subr.mxu1 %v11373_v3 }
 0x438   :  { %7469 = vmatpush3.msra.mxu0 %v2834_v15  ;;  %7488 = vmatpush3.msra.mxu1 %v9461_v8  ;;  %v9755_v8 = vand.u32 4294901760, %v63_v27 }
 0x439   :  { %7470 = vmatprep.subr.mxu0 %v11373_v3  ;;  %7489 = vmatprep.subr.mxu1 %v11373_v3 }
 0x43a   :  { %7471 = vmatpush3.msra.mxu0 %v2841_v37  ;;  %7490 = vmatpush3.msra.mxu1 %v9479_v63  ;;  %v9770_v63 = vand.u32 4294901760, %v60_v12 }
 0x43b   :  { %7472 = vmatprep.subr.mxu0 %v11373_v3  ;;  %7491 = vmatprep.subr.mxu1 %v11373_v3 }
 0x43c   :  { %7473 = vmatpush3.msra.mxu0 %v2848_v9  ;;  %7492 = vmatpush3.msra.mxu1 %v9497_v7  ;;  %v9784_v7 = vsub.f32 %v63_v27, %v9755_v8  ;;  %v9796_v34 = vsub.f32 %v60_v12, %v9770_v63 }
 0x43d   :  { %7474 = vmatprep.subr.mxu0 %v11373_v3  ;;  %7493 = vmatprep.subr.mxu1 %v11373_v3 }
 0x43e   :  { %7475 = vmatpush3.msra.mxu0 %v2855_v21  ;;  %7494 = vmatpush3.msra.mxu1 %v9447_v49  ;;  %v64_v49 = vld [vmem:[%s11342_s3 + $0xf8] sm:$0xff]  ;;  %v11371_v15 = vand.u32 4294901760, %v9784_v7  ;;  %v11368_v29 = vand.u32 4294901760, %v9796_v34 }
 0x43f   :  { %7476 = vmatprep.subr.mxu0 %v11373_v3  ;;  %7495 = vmatprep.subr.mxu1 %v11373_v3  ;;  %v9753_v1 = vand.u32 4294901760, %v64_v49 }
 0x440   :  { %7477 = vmatpush3.msra.mxu0 %v2862_v32  ;;  %7496 = vmatpush3.msra.mxu1 %v9456_v54  ;;  %v62_v54 = vld [vmem:[%s11342_s3 + $0xe8] sm:$0xff]  ;;  %v3459_v33 = vsub.f32 %v9796_v34, %v11368_v29 }
 0x441   :  { %7478 = vmatprep.subr.mxu0 %v11373_v3  ;;  %7497 = vmatprep.subr.mxu1 %v11373_v3  ;;  %v9781_v6 = vsub.f32 %v64_v49, %v9753_v1 }
 0x442   :  { %7479 = vmatpush3.msra.mxu0 %v2869_v52  ;;  %7498 = vmatpush3.msra.mxu1 %v9468_v5  ;;  %v9757_v5 = vand.u32 4294901760, %v62_v54  ;;  %v11365_v52 = vand.u32 4294901760, %v9831_v0  ;;  %v3460_v20 = vand.u32 4294901760, %v3459_v33 }
 0x443   :  { %7480 = vmatprep.subr.mxu0 %v11373_v3  ;;  %7499 = vmatprep.subr.mxu1 %v11373_v3 }
 0x444   :  { %7481 = vmatpush3.msra.mxu0 %v2876_v30  ;;  %7482 = vmatprep.mubr.msk.f32.mxu0 %vm8339_vm1, %v11373_v3  ;;  %v9787_v26 = vsub.f32 %v62_v54, %v9757_v5  ;;  %v3480_v41 = vsub.f32 %v9831_v0, %v11365_v52 }
 0x445   :  { %7500 = vmatpush3.msra.mxu1 %v9470_v35  ;;  %7483 = vmatmul.mubr.f32.vlgmr.msra.gmra.mxu0 %v9488_v60  ;;  %v61_v35 = vld [vmem:[%s11342_s3 + $0xe0] sm:$0xff] }
 0x446   :  { %7501 = vmatprep.subr.mxu1 %v11373_v3  ;;  %7509 = vmatprep.mubr.msk.f32.mxu1 %vm8339_vm1, %v11373_v3  ;;  %v9768_v38 = vand.u32 4294901760, %v61_v35  ;;  %v11370_v31 = vand.u32 4294901760, %v9787_v26  ;;  %v3481_v28 = vand.u32 4294901760, %v3480_v41 }
 0x447   :  { %7502 = vmatpush3.msra.mxu1 %v9518_v62  ;;  %7512 = vmatprep.subr.mxu0 %v11373_v3  ;;  %v11372_v62 = vand.u32 4294901760, %v9781_v6 }
 0x448   :  { %7503 = vmatprep.subr.mxu1 %v11373_v3  ;;  %7544 = vmatprep.mubr.msk.f32.mxu0 %vm8339_vm1, %v11373_v3  ;;  %v9793_v16 = vsub.f32 %v61_v35, %v9768_v38  ;;  %v3445_v9 = vsub.f32 %v9787_v26, %v11370_v31  ;;  %v56_v35 = vld [vmem:[%s11342_s3 + $0xb8] sm:$0xff] }
 0x449   :  { %7504 = vmatpush3.msra.mxu1 %v9531_v61  ;;  %7513 = vmatpush3.msra.mxu0 %v9753_v1  ;;  %v3431_v47 = vsub.f32 %v9781_v6, %v11372_v62  ;;  %v9867_v12 = vand.u32 4294901760, %v56_v35 }
 0x44a   :  { %7505 = vmatprep.subr.mxu1 %v11373_v3  ;;  %7514 = vmatprep.subr.mxu0 %v11373_v3  ;;  %v11369_v61 = vand.u32 4294901760, %v9793_v16  ;;  %v3446_v32 = vand.u32 4294901760, %v3445_v9  ;;  %v9884_v9 = vsub.f32 %v55_v19, %v9875_v2 }
 0x44b   :  { %7506 = vmatpush3.msra.mxu1 %v9548_v51  ;;  %7515 = vmatpush3.msra.mxu0 %v9755_v8  ;;  %v3438_v51 = vsub.f32 %v9784_v7, %v11371_v15  ;;  %v3432_v22 = vand.u32 4294901760, %v3431_v47  ;;  %v54_v47 = vld [vmem:[%s11342_s3 + $0xa8] sm:$0xff] }
 0x44c   :  { %7507 = vmatprep.subr.mxu1 %v11373_v3  ;;  %7516 = vmatprep.subr.mxu0 %v11373_v3  ;;  %v3452_v25 = vsub.f32 %v9793_v16, %v11369_v61  ;;  %v11363_v33 = vand.u32 4294901760, %v9884_v9 }
 0x44d   :  { %7508 = vmatpush3.msra.mxu1 %v9562_v17  ;;  %7517 = vmatpush3.msra.mxu0 %v9757_v5  ;;  %v11367_v17 = vand.u32 4294901760, %v9800_v50  ;;  %v3439_v21 = vand.u32 4294901760, %v3438_v51 }
 0x44e   :  { %7510 = vmatmul.mubr.f32.vlgmr.msra.gmra.mxu1 %v9488_v60  ;;  %7547 = vmatprep.subr.mxu1 %v11373_v3  ;;  %v58_v60 = vld [vmem:[%s11342_s3 + $0xc8] sm:$0xff]  ;;  %v3453_v4 = vand.u32 4294901760, %v3452_v25 }
 0x44f   :  { %7579 = vmatprep.mubr.msk.f32.mxu1 %vm8339_vm1, %v11373_v3  ;;  %v9790_v42 = vand.u32 4294901760, %v58_v60  ;;  %7518 = vmatprep.subr.mxu0 %v11373_v3  ;;  %v3466_v46 = vsub.f32 %v9800_v50, %v11367_v17 }
 0x450   :  { %7519 = vmatpush3.msra.mxu0 %v9768_v38  ;;  %7548 = vmatpush3.msra.mxu1 %v3432_v22  ;;  %v9886_v22 = vand.u32 4294901760, %v54_v47 }
 0x451   :  { %v9811_v37 = vsub.f32 %v58_v60, %v9790_v42  ;;  %7520 = vmatprep.subr.mxu0 %v11373_v3  ;;  %7549 = vmatprep.subr.mxu1 %v11373_v3  ;;  %v3467_v30 = vand.u32 4294901760, %v3466_v46  ;;  %v9873_v60 = vsub.f32 %v56_v35, %v9867_v12 }
 0x452   :  { %7521 = vmatpush3.msra.mxu0 %v9770_v63  ;;  %7550 = vmatpush3.msra.mxu1 %v3439_v21  ;;  %v53_v21 = vld [vmem:[%s11342_s3 + $0xa0] sm:$0xff] }
 0x453   :  { %v11366_v10 = vand.u32 4294901760, %v9811_v37  ;;  %7522 = vmatprep.subr.mxu0 %v11373_v3  ;;  %7551 = vmatprep.subr.mxu1 %v11373_v3  ;;  %v11364_v51 = vand.u32 4294901760, %v9873_v60  ;;  %v9900_v46 = vand.u32 4294901760, %v53_v21 }
 0x454   :  { %7523 = vmatpush3.msra.mxu0 %v9772_v36  ;;  %7552 = vmatpush3.msra.mxu1 %v3446_v32 }
 0x455   :  { %7524 = vmatprep.subr.mxu0 %v11373_v3  ;;  %v3473_v11 = vsub.f32 %v9811_v37, %v11366_v10  ;;  %7553 = vmatprep.subr.mxu1 %v11373_v3  ;;  %v3487_v32 = vsub.f32 %v9873_v60, %v11364_v51 }
 0x456   :  { %7525 = vmatpush3.msra.mxu0 %v9790_v42  ;;  %7554 = vmatpush3.msra.mxu1 %v3453_v4  ;;  %v9898_v4 = vsub.f32 %v54_v47, %v9886_v22 }
 0x457   :  { %7526 = vmatprep.subr.mxu0 %v11373_v3  ;;  %7555 = vmatprep.subr.mxu1 %v11373_v3  ;;  %v3474_v59 = vand.u32 4294901760, %v3473_v11  ;;  %v52_v11 = vld [vmem:[%s11342_s3 + $0x98] sm:$0xff]  ;;  %v3488_v41 = vand.u32 4294901760, %v3487_v32 }
 0x458   :  { %7527 = vmatpush3.msra.mxu0 %v9806_v57  ;;  %7556 = vmatpush3.msra.mxu1 %v3460_v20 }
 0x459   :  { %7528 = vmatprep.subr.mxu0 %v11373_v3  ;;  %7557 = vmatprep.subr.mxu1 %v11373_v3 }
 0x45a   :  { %7558 = vmatpush3.msra.mxu1 %v3467_v30  ;;  %7529 = vmatpush3.msra.mxu0 %v9867_v12 }
 0x45b   :  { %7559 = vmatprep.subr.mxu1 %v11373_v3  ;;  %7530 = vmatprep.subr.mxu0 %v11373_v3 }
 0x45c   :  { %7560 = vmatpush3.msra.mxu1 %v3474_v59  ;;  %7531 = vmatpush3.msra.mxu0 %v9875_v2  ;;  %v3494_v59 = vsub.f32 %v9884_v9, %v11363_v33 }
 0x45d   :  { %7561 = vmatprep.subr.mxu1 %v11373_v3  ;;  %7532 = vmatprep.subr.mxu0 %v11373_v3 }
 0x45e   :  { %7562 = vmatpush3.msra.mxu1 %v3481_v28  ;;  %7533 = vmatpush3.msra.mxu0 %v9886_v22  ;;  %v11358_v28 = vand.u32 4294901760, %v9898_v4 }
 0x45f   :  { %7563 = vmatprep.subr.mxu1 %v11373_v3  ;;  %7534 = vmatprep.subr.mxu0 %v11373_v3 }
 0x460   :  { %7535 = vmatpush3.msra.mxu0 %v9900_v46  ;;  %7564 = vmatpush3.msra.mxu1 %v3488_v41 }
 0x461   :  { %7536 = vmatprep.subr.mxu0 %v11373_v3  ;;  %7565 = vmatprep.subr.mxu1 %v11373_v3 }
 0x4d3   :  { %v2784_v39 = vpop.f32.mrf.mxu0 }
 0x4d5   :  { %v7376_v56 = vpop.f32.mrf.mxu0 }
 0x4d6   :  { %v9912_v56 = vsub.f32 %v53_v21, %v9900_v46  ;;  %v50_v21 = vld [vmem:[%s11342_s3 + $0x88] sm:$0xff] }
 0x4d8   :  { %v11357_v35 = vand.u32 4294901760, %v9912_v56 }
 0x4da   :  { %v2915_v53 = vpop.f32.mrf.mxu1 }
 0x4db   :  { %v2916_v20 = vadd.f32 %v2915_v53, %v2784_v39  ;;  %v9915_v53 = vand.u32 4294901760, %v52_v11 }
 0x4dc   :  { %v7403_v14 = vpop.f32.mrf.mxu1 }
 0x4dd   :  { %v51_v14 = vld [vmem:[%s11342_s3 + $0x90] sm:$0xff]  ;;  %7537 = vmatpush3.msra.mxu0 %v9915_v53 }
 0x4de   :  { %v9925_v19 = vand.u32 4294901760, %v51_v14  ;;  %7538 = vmatprep.subr.mxu0 %v11373_v3 }
 0x4e0   :  { %7539 = vmatpush3.msra.mxu0 %v9925_v19 }
 0x4e1   :  { %7540 = vmatprep.subr.mxu0 %v11373_v3 }
 0x4eb   :  { %v3011_v43 = vpop.f32.mrf.mxu0 }
 0x4ec   :  { %v3012_v39 = vadd.f32 %v3011_v43, %v2916_v20  ;;  %v9929_v43 = vsub.f32 %v52_v11, %v9915_v53  ;;  %v3508_v20 = vsub.f32 %v9912_v56, %v11357_v35  ;;  %v3293_v35 = vpop.permute.xlu1 %3292 }
 0x4ed   :  { %v7430_v49 = vpop.f32.mrf.mxu0 }
 0x4ee   :  { %v3495_v49 = vand.u32 4294901760, %v3494_v59  ;;  %v11359_v41 = vand.u32 4294901760, %v9929_v43  ;;  %v49_v59 = vld [vmem:[%s11342_s3 + $0x80] sm:$0xff] }
 0x4f0   :  { %7566 = vmatpush3.msra.mxu1 %v3495_v49 }
 0x4f1   :  { %7567 = vmatprep.subr.mxu1 %v11373_v3 }
 0x4f4   :  { %v3096_v27 = vpop.f32.mrf.mxu1 }
 0x4f5   :  { %v3097_v47 = vadd.f32 %v3096_v27, %v3012_v39  ;;  %v9941_v27 = vand.u32 4294901760, %v50_v21  ;;  %v3509_v39 = vand.u32 4294901760, %v3508_v20 }
 0x4f6   :  { %v7457_v54 = vpop.f32.mrf.mxu1 }
 0x4f7   :  { %v3501_v54 = vsub.f32 %v9898_v4, %v11358_v28  ;;  %v9952_v49 = vsub.f32 %v50_v21, %v9941_v27  ;;  %7541 = vmatpush3.msra.mxu0 %v9941_v27 }
 0x4f8   :  { %7542 = vmatprep.subr.mxu0 %v11373_v3 }
 0x4f9   :  { %v3502_v32 = vand.u32 4294901760, %v3501_v54  ;;  %v9954_v54 = vand.u32 4294901760, %v49_v59  ;;  %v11362_v20 = vand.u32 4294901760, %v9952_v49 }
 0x4fb   :  { %7568 = vmatpush3.msra.mxu1 %v3502_v32  ;;  %v9969_v40 = vsub.f32 %v49_v59, %v9954_v54  ;;  %7543 = vmatpush3.msra.mxu0 %v9954_v54 }
 0x4fc   :  { %7569 = vmatprep.subr.mxu1 %v11373_v3  ;;  %7582 = vmatprep.subr.mxu0 %v11373_v3 }
 0x4fd   :  { %7570 = vmatpush3.msra.mxu1 %v3509_v39  ;;  %v11361_v59 = vand.u32 4294901760, %v9969_v40 }
 0x4fe   :  { %7571 = vmatprep.subr.mxu1 %v11373_v3 }
 0x505   :  { %v3203_v25 = vpop.f32.mrf.mxu0 }
 0x506   :  { %v3204_v11 = vadd.f32 %v3203_v25, %v3097_v47  ;;  %v3515_v47 = vsub.f32 %v9929_v43, %v11359_v41 }
 0x507   :  { %v7484_v30 = vpop.f32.mrf.mxu0 }
 0x508   :  { %v9939_v30 = vsub.f32 %v51_v14, %v9925_v19  ;;  %v3516_v41 = vand.u32 4294901760, %v3515_v47  ;;  %v3536_v47 = vsub.f32 %v9969_v40, %v11361_v59 }
 0x50a   :  { %v11360_v14 = vand.u32 4294901760, %v9939_v30  ;;  %7572 = vmatpush3.msra.mxu1 %v3516_v41  ;;  %v9992_v41 = vld [vmem:[%s11342_s3 + $0x1d8] sm:$0xff] }
 0x50b   :  { %7573 = vmatprep.subr.mxu1 %v11373_v3 }
 0x50c   :  { %v3522_v21 = vsub.f32 %v9939_v30, %v11360_v14 }
 0x50e   :  { %v3286_v25 = vpop.f32.mrf.mxu1  ;;  %v3523_v39 = vand.u32 4294901760, %v3522_v21  ;;  %v9997_v21 = vld [vmem:[%s11342_s3 + $0x1d0] sm:$0xff] }
 0x50f   :  { %v9962_v32 = vadd.f32 %v3286_v25, %v3204_v11  ;;  %v3529_v25 = vsub.f32 %v9952_v49, %v11362_v20  ;;  %4073 = vperm.xlu0 %8313, %v9997_v21  }
 0x510   :  { %v7511_v28 = vpop.f32.mrf.mxu1  ;;  %7574 = vmatpush3.msra.mxu1 %v3523_v39  ;;  %v10013_v39 = vld [vmem:[%s11342_s3 + $0x1c0] sm:$0xff] }
 0x511   :  { %v3295_v11 = vadd.f32 %v3293_v35, %v9962_v32  ;;  %v3530_v28 = vand.u32 4294901760, %v3529_v25  ;;  %7575 = vmatprep.subr.mxu1 %v11373_v3  ;;  %v3537_v35 = vand.u32 4294901760, %v3536_v47  ;;  %v11393_v25 = vmov 2   ;;  %v3311_v47 = vpop.permute.xlu0 %3310 }
 0x513   :  { %v3296_v14 = vmax.f32 %v3295_v11, 0.0  ;;  %7576 = vmatpush3.msra.mxu1 %v3530_v28  ;;  %v10005_v11 = vld [vmem:[%s11342_s3 + $0x1c8] sm:$0xff]  ;;  %8315 = vset.pattern.permute.xlu0 %v11392_v24  ;;  %v3316_v28 = vpop.permute.xlu1 %3315 }
 0x514   :  { %7577 = vmatprep.subr.mxu1 %v11373_v3  ;;  %4045 = vperm.xlu0 %8315, %v10005_v11  }
 0x515   :  { %3303 = vrot.lane.b32.xlu1 %v3296_v14, %s8344_s20  ;;  %7578 = vmatpush3.msra.mxu1 %v3537_v35  ;;  %v3322_v33 = vpop.permute.xlu0 %3321  ;;  %v3318_v10 = vmul.f32 %v3316_v28, %v3296_v14 }
 0x516   :  { %7617 = vmatprep.subr.mxu1 %v11373_v3 }
 0x517   :  { %v3299_v35 = vpop.permute.xlu1 %3298 }
 0x518   :  { %4041 = vperm.xlu0 %8315, %v10013_v39   ;;  %v3300_v51 = vrot.slane %v3299_v35, 7 }
 0x519   :  { %3306 = vrot.lane.b32.xlu1 %v3296_v14, %s8345_s21  ;;  %v3328_v62 = vpop.permute.xlu0 %3327 }
 0x51a   :  { %v3302_v61 = vadd.f32 %v3300_v51, %v9962_v32 }
 0x51c   :  { %8319 = vset.pattern.permute.xlu0 %v11393_v25 }
 0x51d   :  { %4053 = vperm.xlu1 %8310, %v9992_v41  }
 0x521   :  { %8311 = vset.pattern.permute.xlu1 %v11390_v13 }
 0x522   :  { %4077 = vperm.xlu1 %8311, %v9992_v41  }
 0x526   :  { %8312 = vset.pattern.permute.xlu1 %v11392_v24 }
 0x527   :  { %4049 = vperm.xlu1 %8312, %v9997_v21  }
 0x52b   :  { %8314 = vset.pattern.permute.xlu1 %v11393_v25 }
 0x52c   :  { %4101 = vperm.xlu1 %8314, %v9992_v41  }
 0x530   :  { %8316 = vset.pattern.permute.xlu1 %v11390_v13 }
 0x531   :  { %4069 = vperm.xlu1 %8316, %v10005_v11  }
 0x535   :  { %8317 = vset.pattern.permute.xlu1 %v11393_v25 }
 0x536   :  { %4097 = vperm.xlu1 %8317, %v9997_v21  }
 0x53a   :  { %8318 = vset.pattern.permute.xlu1 %v11390_v13 }
 0x53b   :  { %4065 = vperm.xlu1 %8318, %v10013_v39  }
 0x53f   :  { %8320 = vset.pattern.permute.xlu1 %v8343_v45 }
 0x540   :  { %4129 = vperm.xlu1 %8320, %v9992_v41  }
 0x544   :  { %8321 = vset.pattern.permute.xlu1 %v11393_v25 }
 0x545   :  { %4089 = vperm.xlu1 %8321, %v10013_v39  }
 0x549   :  { %8323 = vset.pattern.permute.xlu1 %v8343_v45 }
 0x587   :  { %v3304_v59 = vpop.permute.xlu1 %3303 }
 0x588   :  { %v3305_v20 = vsel %vm9011_vm12, 0.0, %v3304_v59  ;;  %v3332_v59 = vrot.slane %v3302_v61, 1  ;;  %v11410_v61 = vand.u32 4294901760, %v9969_v40 }
 0x589   :  { %v3313_v52 = vmul.f32 %v3311_v47, %v3305_v20 }
 0x58b   :  { %v3307_v17 = vpop.permute.xlu1 %3306  ;;  %v3319_v31 = vadd.f32 %v3318_v10, %v3313_v52 }
 0x58c   :  { %v3308_v29 = vsel %vm9019_vm15, 0.0, %v3307_v17  ;;  %v11394_v17 = vmov 0.0  }
 0x58d   :  { %v3324_v15 = vmul.f32 %v3322_v33, %v3308_v29 }
 0x58f   :  { %v3325_v3 = vadd.f32 %v3324_v15, %v3319_v31  ;;  %v11408_v31 = vand.u32 4294901760, %v9939_v30 }
 0x591   :  { %v3330_v35 = vadd.f32 %v3328_v62, %v3325_v3 }
 0x593   :  { %v3334_v20 = vadd.f32 %v3332_v59, %v3330_v35  ;;  %v4074_v35 = vpop.permute.xlu0 %4073 }
 0x595   :  { %v3335_v14 = vmax.f32 %v3334_v20, 0.0 }
 0x597   :  { %v10037_v28 = vand.u32 4294901760, %v3335_v14 }
 0x599   :  { %v10040_v47 = vsub.f32 %v3335_v14, %v10037_v28  ;;  %7580 = vmatmul.mubr.f32.vlgmr.msra.gmra.mxu1 %v10037_v28  ;;  %v4046_v14 = vpop.permute.xlu0 %4045 }
 0x59a   :  { %7618 = vmatpush3.msra.mxu1 %v9753_v1  ;;  %7649 = vmatprep.mubr.msk.f32.mxu1 %vm8339_vm1, %v11394_v17 }
 0x59b   :  { %v3419_v15 = vand.u32 4294901760, %v10040_v47  ;;  %7619 = vmatprep.subr.mxu1 %v11394_v17 }
 0x59c   :  { %7620 = vmatpush3.msra.mxu1 %v9755_v8 }
 0x59d   :  { %7621 = vmatprep.subr.mxu1 %v11394_v17  ;;  %v3420_v3 = vsub.f32 %v10040_v47, %v3419_v15 }
 0x59e   :  { %7622 = vmatpush3.msra.mxu1 %v9757_v5 }
 0x59f   :  { %7623 = vmatprep.subr.mxu1 %v11394_v17  ;;  %v3421_v62 = vand.u32 4294901760, %v3420_v3 }
 0x5a0   :  { %7624 = vmatpush3.msra.mxu1 %v9768_v38 }
 0x5a1   :  { %7625 = vmatprep.subr.mxu1 %v11394_v17  ;;  %7545 = vmatmul.mubr.f32.vlgmr.msra.gmra.mxu0 %v3421_v62 }
 0x5a2   :  { %7583 = vmatpush3.msra.mxu0 %v9781_v6  ;;  %7626 = vmatpush3.msra.mxu1 %v9770_v63 }
 0x5a3   :  { %7584 = vmatprep.subr.mxu0 %v11394_v17  ;;  %7627 = vmatprep.subr.mxu1 %v11394_v17 }
 0x5a4   :  { %7585 = vmatpush3.msra.mxu0 %v9784_v7  ;;  %7628 = vmatpush3.msra.mxu1 %v9772_v36 }
 0x5a5   :  { %7586 = vmatprep.subr.mxu0 %v11394_v17  ;;  %7629 = vmatprep.subr.mxu1 %v11394_v17 }
 0x5a6   :  { %7587 = vmatpush3.msra.mxu0 %v9787_v26  ;;  %7630 = vmatpush3.msra.mxu1 %v9790_v42 }
 0x5a7   :  { %7588 = vmatprep.subr.mxu0 %v11394_v17  ;;  %7631 = vmatprep.subr.mxu1 %v11394_v17 }
 0x5a8   :  { %7589 = vmatpush3.msra.mxu0 %v9793_v16  ;;  %7632 = vmatpush3.msra.mxu1 %v9806_v57 }
 0x5a9   :  { %7590 = vmatprep.subr.mxu0 %v11394_v17  ;;  %7633 = vmatprep.subr.mxu1 %v11394_v17 }
 0x5aa   :  { %7591 = vmatpush3.msra.mxu0 %v9796_v34  ;;  %7634 = vmatpush3.msra.mxu1 %v9867_v12 }
 0x5ab   :  { %7592 = vmatprep.subr.mxu0 %v11394_v17  ;;  %7635 = vmatprep.subr.mxu1 %v11394_v17 }
 0x5ac   :  { %7593 = vmatpush3.msra.mxu0 %v9800_v50  ;;  %7636 = vmatpush3.msra.mxu1 %v9875_v2 }
 0x5ad   :  { %7594 = vmatprep.subr.mxu0 %v11394_v17  ;;  %7637 = vmatprep.subr.mxu1 %v11394_v17 }
 0x5ae   :  { %7595 = vmatpush3.msra.mxu0 %v9811_v37  ;;  %7638 = vmatpush3.msra.mxu1 %v9886_v22 }
 0x5af   :  { %7596 = vmatprep.subr.mxu0 %v11394_v17  ;;  %7639 = vmatprep.subr.mxu1 %v11394_v17 }
 0x5b0   :  { %7597 = vmatpush3.msra.mxu0 %v9831_v0  ;;  %7640 = vmatpush3.msra.mxu1 %v9900_v46 }
 0x5b1   :  { %7598 = vmatprep.subr.mxu0 %v11394_v17  ;;  %7641 = vmatprep.subr.mxu1 %v11394_v17 }
 0x5b2   :  { %7599 = vmatpush3.msra.mxu0 %v9873_v60  ;;  %7642 = vmatpush3.msra.mxu1 %v9915_v53 }
 0x5b3   :  { %7600 = vmatprep.subr.mxu0 %v11394_v17  ;;  %7643 = vmatprep.subr.mxu1 %v11394_v17 }
 0x5b4   :  { %7601 = vmatpush3.msra.mxu0 %v9884_v9  ;;  %7644 = vmatpush3.msra.mxu1 %v9925_v19 }
 0x5b5   :  { %7602 = vmatprep.subr.mxu0 %v11394_v17  ;;  %7645 = vmatprep.subr.mxu1 %v11394_v17 }
 0x5b6   :  { %7603 = vmatpush3.msra.mxu0 %v9898_v4  ;;  %7646 = vmatpush3.msra.mxu1 %v9941_v27 }
 0x5b7   :  { %7604 = vmatprep.subr.mxu0 %v11394_v17  ;;  %7647 = vmatprep.subr.mxu1 %v11394_v17 }
 0x5b8   :  { %7605 = vmatpush3.msra.mxu0 %v9912_v56  ;;  %7648 = vmatpush3.msra.mxu1 %v9954_v54 }
 0x5b9   :  { %7606 = vmatprep.subr.mxu0 %v11394_v17  ;;  %7650 = vmatmul.mubr.f32.vlgmr.msra.gmra.mxu1 %v3419_v15 }
 0x5ba   :  { %7687 = vmatprep.subr.mxu1 %v11394_v17  ;;  %7607 = vmatpush3.msra.mxu0 %v9929_v43 }
 0x5bb   :  { %7688 = vmatpush3.msra.mxu1 %v9753_v1  ;;  %7608 = vmatprep.subr.mxu0 %v11394_v17  ;;  %v11395_v1 = vand.u32 4294901760, %v9781_v6  ;;  %v11401_v6 = vand.u32 4294901760, %v9811_v37 }
 0x5bc   :  { %7689 = vmatprep.subr.mxu1 %v11394_v17  ;;  %7609 = vmatpush3.msra.mxu0 %v9939_v30  ;;  %v4054_v30 = vpop.permute.xlu1 %4053 }
 0x5bd   :  { %7690 = vmatpush3.msra.mxu1 %v9755_v8  ;;  %7610 = vmatprep.subr.mxu0 %v11394_v17  ;;  %v11396_v8 = vand.u32 4294901760, %v9784_v7  ;;  %v11402_v7 = vand.u32 4294901760, %v9831_v0 }
 0x5be   :  { %7691 = vmatprep.subr.mxu1 %v11394_v17  ;;  %7611 = vmatpush3.msra.mxu0 %v9952_v49 }
 0x5bf   :  { %7692 = vmatpush3.msra.mxu1 %v9757_v5  ;;  %7612 = vmatprep.subr.mxu0 %v11394_v17  ;;  %v11397_v5 = vand.u32 4294901760, %v9787_v26  ;;  %v11403_v26 = vand.u32 4294901760, %v9873_v60 }
 0x5c0   :  { %7693 = vmatprep.subr.mxu1 %v11394_v17  ;;  %7613 = vmatpush3.msra.mxu0 %v9969_v40 }
 0x5c1   :  { %7614 = vmatprep.mubr.msk.f32.mxu0 %vm8339_vm1, %v11394_v17  ;;  %7694 = vmatpush3.msra.mxu1 %v9768_v38  ;;  %v11398_v38 = vand.u32 4294901760, %v9793_v16  ;;  %v11405_v16 = vand.u32 4294901760, %v9898_v4 }
 0x5c2   :  { %7615 = vmatmul.mubr.f32.vlgmr.msra.gmra.mxu0 %v10040_v47  ;;  %7652 = vmatprep.subr.mxu0 %v11394_v17  ;;  %v4042_v47 = vpop.permute.xlu0 %4041 }
 0x5c3   :  { %7695 = vmatprep.subr.mxu1 %v11394_v17  ;;  %7653 = vmatpush3.msra.mxu0 %v11395_v1 }
 0x5c4   :  { %7696 = vmatpush3.msra.mxu1 %v9770_v63  ;;  %7654 = vmatprep.subr.mxu0 %v11394_v17  ;;  %v11399_v63 = vand.u32 4294901760, %v9796_v34  ;;  %v11406_v34 = vand.u32 4294901760, %v9912_v56 }
 0x5c5   :  { %7697 = vmatprep.subr.mxu1 %v11394_v17  ;;  %7655 = vmatpush3.msra.mxu0 %v11396_v8 }
 0x5c6   :  { %7698 = vmatpush3.msra.mxu1 %v9772_v36  ;;  %7656 = vmatprep.subr.mxu0 %v11394_v17  ;;  %v11400_v36 = vand.u32 4294901760, %v9800_v50  ;;  %v11407_v50 = vand.u32 4294901760, %v9929_v43 }
 0x5c7   :  { %7699 = vmatprep.subr.mxu1 %v11394_v17  ;;  %7657 = vmatpush3.msra.mxu0 %v11397_v5 }
 0x5c8   :  { %7700 = vmatpush3.msra.mxu1 %v9790_v42  ;;  %7658 = vmatprep.subr.mxu0 %v11394_v17  ;;  %v11404_v42 = vand.u32 4294901760, %v9884_v9 }
 0x5c9   :  { %7701 = vmatprep.subr.mxu1 %v11394_v17  ;;  %7659 = vmatpush3.msra.mxu0 %v11398_v38 }
 0x5ca   :  { %7702 = vmatpush3.msra.mxu1 %v9806_v57  ;;  %7660 = vmatprep.subr.mxu0 %v11394_v17  ;;  %v11409_v57 = vand.u32 4294901760, %v9952_v49 }
 0x5cb   :  { %7703 = vmatprep.subr.mxu1 %v11394_v17  ;;  %7661 = vmatpush3.msra.mxu0 %v11399_v63 }
 0x5cc   :  { %7704 = vmatpush3.msra.mxu1 %v9867_v12  ;;  %7662 = vmatprep.subr.mxu0 %v11394_v17 }
 0x5cd   :  { %7705 = vmatprep.subr.mxu1 %v11394_v17  ;;  %7663 = vmatpush3.msra.mxu0 %v11400_v36 }
 0x5ce   :  { %7706 = vmatpush3.msra.mxu1 %v9875_v2  ;;  %7664 = vmatprep.subr.mxu0 %v11394_v17 }
 0x5cf   :  { %7707 = vmatprep.subr.mxu1 %v11394_v17  ;;  %7665 = vmatpush3.msra.mxu0 %v11401_v6 }
 0x5d0   :  { %7708 = vmatpush3.msra.mxu1 %v9886_v22  ;;  %7666 = vmatprep.subr.mxu0 %v11394_v17 }
 0x5d1   :  { %7709 = vmatprep.subr.mxu1 %v11394_v17  ;;  %7667 = vmatpush3.msra.mxu0 %v11402_v7 }
 0x5d2   :  { %7710 = vmatpush3.msra.mxu1 %v9900_v46  ;;  %7668 = vmatprep.subr.mxu0 %v11394_v17 }
 0x5d3   :  { %7711 = vmatprep.subr.mxu1 %v11394_v17  ;;  %7669 = vmatpush3.msra.mxu0 %v11403_v26 }
 0x5d4   :  { %7712 = vmatpush3.msra.mxu1 %v9915_v53  ;;  %7670 = vmatprep.subr.mxu0 %v11394_v17 }
 0x5d5   :  { %7713 = vmatprep.subr.mxu1 %v11394_v17  ;;  %7671 = vmatpush3.msra.mxu0 %v11404_v42 }
 0x5d6   :  { %7714 = vmatpush3.msra.mxu1 %v9925_v19  ;;  %7672 = vmatprep.subr.mxu0 %v11394_v17 }
 0x5d7   :  { %7715 = vmatprep.subr.mxu1 %v11394_v17  ;;  %7673 = vmatpush3.msra.mxu0 %v11405_v16 }
 0x5d8   :  { %7716 = vmatpush3.msra.mxu1 %v9941_v27  ;;  %7674 = vmatprep.subr.mxu0 %v11394_v17  ;;  %v4078_v27 = vpop.permute.xlu1 %4077 }
 0x5d9   :  { %7717 = vmatprep.subr.mxu1 %v11394_v17  ;;  %7675 = vmatpush3.msra.mxu0 %v11406_v34 }
 0x5da   :  { %7718 = vmatpush3.msra.mxu1 %v9954_v54  ;;  %7719 = vmatprep.mubr.msk.f32.mxu1 %vm8339_vm1, %v11394_v17 }
 0x5db   :  { %7676 = vmatprep.subr.mxu0 %v11394_v17  ;;  %7720 = vmatmul.mubr.f32.vlgmr.msra.gmra.mxu1 %v10037_v28 }
 0x5dc   :  { %7677 = vmatpush3.msra.mxu0 %v11407_v50  ;;  %7684 = vmatprep.mubr.msk.f32.mxu0 %vm8339_vm1, %v11394_v17  ;;  %v4050_v49 = vpop.permute.xlu1 %4049 }
 0x5dd   :  { %7678 = vmatprep.subr.mxu0 %v11394_v17 }
 0x5de   :  { %7679 = vmatpush3.msra.mxu0 %v11408_v31 }
 0x5df   :  { %7680 = vmatprep.subr.mxu0 %v11394_v17 }
 0x5e0   :  { %7681 = vmatpush3.msra.mxu0 %v11409_v57  ;;  %v4102_v54 = vpop.permute.xlu1 %4101 }
 0x5e1   :  { %7682 = vmatprep.subr.mxu0 %v11394_v17 }
 0x5e2   :  { %7683 = vmatpush3.msra.mxu0 %v11410_v61 }
 0x5e3   :  { %7685 = vmatmul.mubr.f32.vlgmr.msra.gmra.mxu0 %v10037_v28 }
 0x5e4   :  { %v4070_v32 = vpop.permute.xlu1 %4069 }
 0x5e8   :  { %v4098_v59 = vpop.permute.xlu1 %4097 }
 0x5ec   :  { %v4066_v20 = vpop.permute.xlu1 %4065 }
 0x5f0   :  { %v4130_v28 = vpop.permute.xlu1 %4129 }
 0x5f4   :  { %v4090_v15 = vpop.permute.xlu1 %4089 }
 0x659   :  { %v3574_v37 = vpop.f32.mrf.mxu1 }
 0x65b   :  { %v7581_v29 = vpop.f32.mrf.mxu1 }
 0x661   :  { %v3423_v0 = vpop.f32.mrf.mxu0 }
 0x662   :  { %v3424_v10 = vadd.f32 %v3423_v0, %v9000_v55  ;;  %v11411_v55 = vmov 6  }
 0x663   :  { %v7546_v52 = vpop.f32.mrf.mxu0 }
 0x664   :  { %v3575_v12 = vadd.f32 %v3574_v37, %v3424_v10 }
 0x679   :  { %v3767_v60 = vpop.f32.mrf.mxu1 }
 0x67b   :  { %v7651_v2 = vpop.f32.mrf.mxu1 }
 0x682   :  { %v3678_v51 = vpop.f32.mrf.mxu0 }
 0x683   :  { %v3679_v4 = vadd.f32 %v3678_v51, %v3575_v12 }
 0x684   :  { %v7616_v9 = vpop.f32.mrf.mxu0 }
 0x685   :  { %v3768_v46 = vadd.f32 %v3767_v60, %v3679_v4 }
 0x69b   :  { %v3973_v22 = vpop.f32.mrf.mxu1 }
 0x69d   :  { %v7721_v33 = vpop.f32.mrf.mxu1 }
 0x6a3   :  { %v3886_v56 = vpop.f32.mrf.mxu0 }
 0x6a4   :  { %v3887_v40 = vadd.f32 %v3886_v56, %v3768_v46 }
 0x6a5   :  { %v7686_v53 = vpop.f32.mrf.mxu0 }
 0x6a6   :  { %v3974_v19 = vadd.f32 %v3973_v22, %v3887_v40 }
 0x6a8   :  { %v3977_v43 = vmax.f32 %v3974_v19, 0.0 }
 0x6aa   :  { %3989 = vrot.lane.b32.xlu1 %v3977_v43, %s8345_s21  ;;  %3986 = vrot.lane.b32.xlu0 %v3977_v43, %s8344_s20  ;;  %v10209_v3 = vrot.slane %v3977_v43, %v9015_v48 }
 0x6ac   :  { %v4083_v6 = vmul.f32 %v4078_v27, %v10209_v3  ;;  %v4082_v31 = vmul.f32 %v4074_v35, %v10209_v3  ;;  %v4081_v61 = vmul.f32 %v4070_v32, %v10209_v3  ;;  %v4080_v29 = vmul.f32 %v4066_v20, %v10209_v3 }
 0x6ad   :  { %v11412_v20 = vmov 4  }
 0x6ae   :  { %4121 = vperm.xlu1 %8323, %v10005_v11   ;;  %4093 = vperm.xlu0 %8319, %v10005_v11  }
 0x6b2   :  { %4117 = vperm.xlu1 %8323, %v10013_v39   ;;  %8322 = vset.pattern.permute.xlu0 %v8343_v45 }
 0x6b3   :  { %4125 = vperm.xlu0 %8322, %v9997_v21  }
 0x6b6   :  { %8325 = vset.pattern.permute.xlu1 %v11411_v55 }
 0x6b7   :  { %8324 = vset.pattern.permute.xlu0 %v11411_v55  ;;  %v3982_v55 = vld [vmem:[%s11342_s3 + $0x1e0] sm:$0xff] }
 0x6b8   :  { %v4181_v27 = vsel %vm1933_vm0, %v3982_v55, 0 }
 0x71c   :  { %v3990_v62 = vpop.permute.xlu1 %3989  ;;  %v3987_v1 = vpop.permute.xlu0 %3986 }
 0x71d   :  { %v3991_v8 = vsel %vm9019_vm15, 0.0, %v3990_v62  ;;  %v3988_v5 = vsel %vm9011_vm12, 0.0, %v3987_v1 }
 0x71e   :  { %v4107_v38 = vrot.slane %v3991_v8, %v9015_v48  ;;  %v4059_v63 = vrot.slane %v3988_v5, %v9015_v48  ;;  %v3983_v5 = vld [vmem:[%s11342_s3 + $0x1e8] sm:$0xff] }
 0x720   :  { %v4063_v36 = vmul.f32 %v4059_v63, %v4054_v30  ;;  %v4111_v7 = vmul.f32 %v4107_v38, %v4102_v54  ;;  %v4062_v16 = vmul.f32 %v4059_v63, %v4050_v49  ;;  %v4061_v34 = vmul.f32 %v4059_v63, %v4046_v14 }
 0x721   :  { %v4060_v57 = vmul.f32 %v4059_v63, %v4042_v47  ;;  %v4110_v2 = vmul.f32 %v4107_v38, %v4098_v59  ;;  %v4108_v9 = vmul.f32 %v4107_v38, %v4090_v15  ;;  %v10241_v49 = vand.u32 4294901760, %v4181_v27 }
 0x722   :  { %v4087_v26 = vadd.f32 %v4083_v6, %v4063_v36  ;;  %v4086_v10 = vadd.f32 %v4082_v31, %v4062_v16  ;;  %v4085_v52 = vadd.f32 %v4081_v61, %v4061_v34  ;;  %v4184_v34 = vsel %vm1933_vm0, %v3983_v5, 0 }
 0x723   :  { %v4084_v60 = vadd.f32 %v4080_v29, %v4060_v57  ;;  %v10246_v54 = vsub.f32 %v4181_v27, %v10241_v49  ;;  %7776 = vmatprep.mubr.f32.mxu1 %v10241_v49 }
 0x724   :  { %v4115_v42 = vadd.f32 %v4111_v7, %v4087_v26  ;;  %v4114_v22 = vadd.f32 %v4110_v2, %v4086_v10 }
 0x725   :  { %v4112_v56 = vadd.f32 %v4108_v9, %v4084_v60  ;;  %v4271_v32 = vand.u32 4294901760, %v10246_v54 }
 0x726   :  { %v4135_v50 = vadd.f32 %v4130_v28, %v4115_v42 }
 0x727   :  { %v4272_v59 = vsub.f32 %v10246_v54, %v4271_v32 }
 0x728   :  { %v10220_v37 = vmax.f32 %v4135_v50, 0.0 }
 0x729   :  { %v4122_v0 = vpop.permute.xlu1 %4121  ;;  %v4094_v48 = vpop.permute.xlu0 %4093  ;;  %v4273_v35 = vand.u32 4294901760, %v4272_v59 }
 0x72a   :  { %v4109_v12 = vmul.f32 %v4107_v38, %v4094_v48  ;;  %4158 = vrot.lane.b32.xlu0 %v10220_v37, %s8345_s21 }
 0x72b   :  { %7746 = vmatprep.mubr.f32.mxu0 %v4273_v35 }
 0x72c   :  { %v4113_v51 = vadd.f32 %v4109_v12, %v4085_v52  ;;  %v10354_v12 = vand.u32 4294901760, %v4184_v34 }
 0x72d   :  { %v4118_v4 = vpop.permute.xlu1 %4117 }
 0x72e   :  { %v4133_v33 = vadd.f32 %v4122_v0, %v4113_v51  ;;  %v4126_v46 = vpop.permute.xlu0 %4125  ;;  %v4132_v19 = vadd.f32 %v4118_v4, %v4112_v56 }
 0x72f   :  { %v4134_v40 = vadd.f32 %v4126_v46, %v4114_v22 }
 0x730   :  { %v10225_v53 = vmax.f32 %v4133_v33, 0.0  ;;  %v10236_v30 = vmax.f32 %v4132_v19, 0.0 }
 0x731   :  { %v10227_v43 = vmax.f32 %v4134_v40, 0.0 }
 0x732   :  { %4154 = vrot.lane.b32.xlu0 %v10225_v53, %s8345_s21  ;;  %v10311_v36 = vand.u32 4294901760, %v10225_v53  ;;  %v10326_v50 = vand.u32 4294901760, %v10236_v30 }
 0x733   :  { %4156 = vrot.lane.b32.xlu1 %v10227_v43, %s8345_s21  ;;  %v10306_v38 = vand.u32 4294901760, %v10227_v43 }
 0x734   :  { %v10352_v52 = vsub.f32 %v10225_v53, %v10311_v36  ;;  %v10368_v33 = vsub.f32 %v10236_v30, %v10326_v50 }
 0x736   :  { %4146 = vrot.lane.b32.xlu0 %v10220_v37, %s8344_s20  ;;  %v10388_v55 = vand.u32 4294901760, %v10352_v52 }
 0x737   :  { %4152 = vrot.lane.b32.xlu1 %v10236_v30, %s8345_s21 }
 0x73a   :  { %4142 = vrot.lane.b32.xlu0 %v10225_v53, %s8344_s20 }
 0x73b   :  { %4144 = vrot.lane.b32.xlu1 %v10227_v43, %s8344_s20 }
 0x73e   :  { %4177 = vperm.xlu0 %8324, %v9992_v41  }
 0x73f   :  { %4140 = vrot.lane.b32.xlu1 %v10236_v30, %s8344_s20  ;;  %v10391_v30 = vsub.f32 %v4184_v34, %v10354_v12  ;;  %v4363_v34 = vsub.f32 %v10352_v52, %v10388_v55 }
 0x741   :  { %v4281_v5 = vand.u32 4294901760, %v10391_v30 }
 0x742   :  { %4165 = vperm.xlu0 %8324, %v10013_v39  }
 0x743   :  { %4173 = vperm.xlu1 %8325, %v9997_v21  }
 0x746   :  { %8327 = vset.pattern.permute.xlu0 %v11412_v20 }
 0x747   :  { %4004 = vperm.xlu0 %8327, %v9997_v21   ;;  %4169 = vperm.xlu1 %8325, %v10005_v11  }
 0x74b   :  { %8330 = vset.pattern.permute.xlu0 %v11391_v23  ;;  %8326 = vset.pattern.permute.xlu1 %v11412_v20 }
 0x74c   :  { %4029 = vperm.xlu0 %8330, %v9997_v21   ;;  %4009 = vperm.xlu1 %8326, %v9992_v41  }
 0x750   :  { %8328 = vset.pattern.permute.xlu1 %v11391_v23  ;;  %4021 = vperm.xlu0 %8330, %v10013_v39  }
 0x751   :  { %4033 = vperm.xlu1 %8328, %v9992_v41  }
 0x754   :  { %8333 = vset.pattern.permute.xlu0 %v11393_v25 }
 0x755   :  { %8329 = vset.pattern.permute.xlu1 %v11412_v20 }
 0x756   :  { %3999 = vperm.xlu1 %8329, %v10005_v11  }
 0x75a   :  { %3994 = vperm.xlu1 %8329, %v10013_v39  }
 0x75e   :  { %8331 = vset.pattern.permute.xlu1 %v11391_v23 }
 0x75f   :  { %4025 = vperm.xlu1 %8331, %v10005_v11   ;;  %v10292_v11 = vand.u32 4294901760, %v10220_v37 }
 0x761   :  { %v10318_v26 = vsub.f32 %v10220_v37, %v10292_v11  ;;  %v10338_v37 = vsub.f32 %v10227_v43, %v10306_v38 }
 0x763   :  { %8332 = vset.pattern.permute.xlu1 %v11392_v24  ;;  %v10348_v10 = vand.u32 4294901760, %v10318_v26  ;;  %v10382_v19 = vand.u32 4294901760, %v10338_v37 }
 0x765   :  { %v4349_v43 = vsub.f32 %v10318_v26, %v10348_v10 }
 0x79c   :  { %v4159_v21 = vpop.permute.xlu0 %4158 }
 0x79d   :  { %v4163_v14 = vsel %vm9019_vm15, 0.0, %v4159_v21 }
 0x79e   :  { %v10281_v28 = vand.u32 4294901760, %v4163_v14 }
 0x7a0   :  { %v10284_v41 = vsub.f32 %v4163_v14, %v10281_v28  ;;  %7722 = vmatprep.subr.mxu0 %v10281_v28 }
 0x7a1   :  { %7723 = vmatpush3.msra.mxu0 %v10281_v28 }
 0x7a2   :  { %v10289_v39 = vand.u32 4294901760, %v10284_v41 }
 0x7a4   :  { %v4155_v24 = vpop.permute.xlu0 %4154  ;;  %v4321_v25 = vsub.f32 %v10284_v41, %v10289_v39 }
 0x7a5   :  { %v4161_v47 = vsel %vm9019_vm15, 0.0, %v4155_v24  ;;  %v4157_v15 = vpop.permute.xlu1 %4156 }
 0x7a6   :  { %v10298_v62 = vand.u32 4294901760, %v4161_v47  ;;  %v4162_v1 = vsel %vm9019_vm15, 0.0, %v4157_v15  ;;  %v4322_v8 = vand.u32 4294901760, %v4321_v25  ;;  %v10405_v25 = vand.u32 4294901760, %v10368_v33 }
 0x7a7   :  { %v10308_v63 = vand.u32 4294901760, %v4162_v1 }
 0x7a8   :  { %v10314_v6 = vsub.f32 %v4161_v47, %v10298_v62  ;;  %7752 = vmatprep.subr.mxu1 %v4322_v8  ;;  %v4147_v7 = vpop.permute.xlu0 %4146 }
 0x7a9   :  { %v10321_v42 = vsub.f32 %v4162_v1, %v10308_v63  ;;  %7724 = vmatprep.subr.mxu0 %v10308_v63  ;;  %7753 = vmatpush3.msra.mxu1 %v4322_v8  ;;  %v4153_v16 = vpop.permute.xlu1 %4152  ;;  %v4151_v31 = vsel %vm9011_vm12, 0.0, %v4147_v7  ;;  %v4356_v8 = vsub.f32 %v10338_v37, %v10382_v19 }
 0x7aa   :  { %v4160_v57 = vsel %vm9019_vm15, 0.0, %v4153_v16  ;;  %7725 = vmatpush3.msra.mxu0 %v10308_v63  ;;  %v10334_v61 = vand.u32 4294901760, %v10314_v6  ;;  %v10356_v60 = vand.u32 4294901760, %v4151_v31  ;;  %v4350_v16 = vand.u32 4294901760, %v4349_v43  ;;  %v3984_v43 = vld [vmem:[%s11342_s3 + $0x1f0] sm:$0xff] }
 0x7ab   :  { %v10340_v29 = vand.u32 4294901760, %v4160_v57  ;;  %7726 = vmatprep.subr.mxu0 %v10298_v62  ;;  %v10344_v0 = vand.u32 4294901760, %v10321_v42 }
 0x7ac   :  { %7727 = vmatpush3.msra.mxu0 %v10298_v62  ;;  %v4143_v48 = vpop.permute.xlu0 %4142  ;;  %v4335_v22 = vsub.f32 %v10314_v6, %v10334_v61  ;;  %v10394_v27 = vsub.f32 %v4151_v31, %v10356_v60 }
 0x7ad   :  { %v10359_v2 = vsub.f32 %v4160_v57, %v10340_v29  ;;  %7728 = vmatprep.subr.mxu0 %v10340_v29  ;;  %v4145_v51 = vpop.permute.xlu1 %4144  ;;  %v4328_v9 = vsub.f32 %v10321_v42, %v10344_v0  ;;  %v4149_v4 = vsel %vm9011_vm12, 0.0, %v4143_v48  ;;  %v4357_v48 = vand.u32 4294901760, %v4356_v8 }
 0x7ae   :  { %v4150_v46 = vsel %vm9011_vm12, 0.0, %v4145_v51  ;;  %7729 = vmatpush3.msra.mxu0 %v10340_v29  ;;  %v10396_v59 = vand.u32 4294901760, %v4149_v4  ;;  %v4336_v21 = vand.u32 4294901760, %v4335_v22  ;;  %v10424_v31 = vand.u32 4294901760, %v10394_v27 }
 0x7af   :  { %v10375_v56 = vand.u32 4294901760, %v4150_v46  ;;  %7730 = vmatprep.subr.mxu0 %v10292_v11  ;;  %v4329_v40 = vand.u32 4294901760, %v4328_v9  ;;  %v10379_v53 = vand.u32 4294901760, %v10359_v2  ;;  %v4370_v51 = vsub.f32 %v10368_v33, %v10405_v25 }
 0x7b0   :  { %7731 = vmatpush3.msra.mxu0 %v10292_v11  ;;  %v10418_v7 = vsub.f32 %v4149_v4, %v10396_v59  ;;  %v4282_v22 = vsub.f32 %v10391_v30, %v4281_v5  ;;  %v4364_v4 = vand.u32 4294901760, %v4363_v34  ;;  %v4187_v8 = vsel %vm1933_vm0, %v3984_v43, 0 }
 0x7b1   :  { %7732 = vmatprep.subr.mxu0 %v10306_v38  ;;  %7754 = vmatprep.subr.mxu1 %v4329_v40  ;;  %v4141_v35 = vpop.permute.xlu1 %4140  ;;  %v4342_v14 = vsub.f32 %v10359_v2, %v10379_v53  ;;  %v10408_v47 = vsub.f32 %v4150_v46, %v10375_v56  ;;  %v4377_v46 = vsub.f32 %v10394_v27, %v10424_v31 }
 0x7b2   :  { %v4148_v24 = vsel %vm9011_vm12, 0.0, %v4141_v35  ;;  %7733 = vmatpush3.msra.mxu0 %v10306_v38  ;;  %7755 = vmatpush3.msra.mxu1 %v4329_v40  ;;  %v10444_v40 = vand.u32 4294901760, %v10418_v7  ;;  %v3985_v35 = vld [vmem:[%s11342_s3 + $0x1f8] sm:$0xff] }
 0x7b3   :  { %v10410_v15 = vand.u32 4294901760, %v4148_v24  ;;  %7734 = vmatprep.subr.mxu0 %v10311_v36  ;;  %7756 = vmatprep.subr.mxu1 %v4336_v21  ;;  %v4343_v1 = vand.u32 4294901760, %v4342_v14  ;;  %v10434_v9 = vand.u32 4294901760, %v10408_v47 }
 0x7b4   :  { %7735 = vmatpush3.msra.mxu0 %v10311_v36  ;;  %7757 = vmatpush3.msra.mxu1 %v4336_v21  ;;  %v4371_v21 = vand.u32 4294901760, %v4370_v51  ;;  %v4391_v34 = vsub.f32 %v10418_v7, %v10444_v40 }
 0x7b5   :  { %7736 = vmatprep.subr.mxu0 %v10326_v50  ;;  %7758 = vmatprep.subr.mxu1 %v4343_v1  ;;  %v10428_v57 = vsub.f32 %v4148_v24, %v10410_v15  ;;  %v4384_v14 = vsub.f32 %v10408_v47, %v10434_v9 }
 0x7b6   :  { %7737 = vmatpush3.msra.mxu0 %v10326_v50  ;;  %7759 = vmatpush3.msra.mxu1 %v4343_v1  ;;  %v4283_v1 = vand.u32 4294901760, %v4282_v22  ;;  %v4392_v43 = vand.u32 4294901760, %v4391_v34 }
 0x7b7   :  { %7738 = vmatprep.subr.mxu0 %v10356_v60  ;;  %7760 = vmatprep.subr.mxu1 %v4350_v16  ;;  %v10457_v24 = vand.u32 4294901760, %v10428_v57  ;;  %v4385_v51 = vand.u32 4294901760, %v4384_v14 }
 0x7b8   :  { %7739 = vmatpush3.msra.mxu0 %v10356_v60  ;;  %7761 = vmatpush3.msra.mxu1 %v4350_v16  ;;  %v4378_v16 = vand.u32 4294901760, %v4377_v46 }
 0x7b9   :  { %7740 = vmatprep.subr.mxu0 %v10375_v56  ;;  %7762 = vmatprep.subr.mxu1 %v4357_v48  ;;  %v4398_v22 = vsub.f32 %v10428_v57, %v10457_v24 }
 0x7ba   :  { %7741 = vmatpush3.msra.mxu0 %v10375_v56  ;;  %7763 = vmatpush3.msra.mxu1 %v4357_v48  ;;  %v4190_v48 = vsel %vm1933_vm0, %v3985_v35, 0 }
 0x7bb   :  { %7742 = vmatprep.subr.mxu0 %v10396_v59  ;;  %7764 = vmatprep.subr.mxu1 %v4364_v4  ;;  %v10471_v46 = vand.u32 4294901760, %v4190_v48  ;;  %v4399_v35 = vand.u32 4294901760, %v4398_v22 }
 0x7bc   :  { %7743 = vmatpush3.msra.mxu0 %v10396_v59  ;;  %7765 = vmatpush3.msra.mxu1 %v4364_v4  ;;  %v10469_v4 = vand.u32 4294901760, %v4187_v8 }
 0x7bd   :  { %7744 = vmatprep.subr.mxu0 %v10410_v15  ;;  %7766 = vmatprep.subr.mxu1 %v4371_v21  ;;  %v10481_v14 = vsub.f32 %v4190_v48, %v10471_v46 }
 0x7be   :  { %7745 = vmatpush3.msra.mxu0 %v10410_v15  ;;  %7767 = vmatpush3.msra.mxu1 %v4371_v21  ;;  %v10477_v21 = vsub.f32 %v4187_v8, %v10469_v4 }
 0x7bf   :  { %7768 = vmatprep.subr.mxu1 %v4378_v16  ;;  %7782 = vmatprep.subr.mxu0 %v10284_v41 }
 0x7c0   :  { %7747 = vmatmul.mubr.f32.vlgmr.msra.gmra.mxu0 %v4283_v1  ;;  %7769 = vmatpush3.msra.mxu1 %v4378_v16 }
 0x7c1   :  { %7783 = vmatpush3.msra.mxu0 %v10284_v41  ;;  %7770 = vmatprep.subr.mxu1 %v4385_v51  ;;  %v4291_v41 = vand.u32 4294901760, %v10477_v21 }
 0x7c2   :  { %7784 = vmatprep.subr.mxu0 %v10321_v42  ;;  %7771 = vmatpush3.msra.mxu1 %v4385_v51 }
 0x7c3   :  { %7785 = vmatpush3.msra.mxu0 %v10321_v42  ;;  %7772 = vmatprep.subr.mxu1 %v4392_v43  ;;  %v4301_v42 = vand.u32 4294901760, %v10481_v14 }
 0x7c4   :  { %7786 = vmatprep.subr.mxu0 %v10314_v6  ;;  %7773 = vmatpush3.msra.mxu1 %v4392_v43 }
 0x7c5   :  { %7787 = vmatpush3.msra.mxu0 %v10314_v6  ;;  %7774 = vmatprep.subr.mxu1 %v4399_v35  ;;  %v4292_v6 = vsub.f32 %v10477_v21, %v4291_v41 }
 0x7c6   :  { %7788 = vmatprep.subr.mxu0 %v10359_v2  ;;  %7775 = vmatpush3.msra.mxu1 %v4399_v35 }
 0x7c7   :  { %7789 = vmatpush3.msra.mxu0 %v10359_v2  ;;  %7777 = vmatmul.mubr.f32.vlgmr.msra.gmra.mxu1 %v10354_v12 }
 0x7c8   :  { %7790 = vmatprep.subr.mxu0 %v10318_v26  ;;  %7812 = vmatprep.subr.mxu1 %v10281_v28 }
 0x7c9   :  { %7791 = vmatpush3.msra.mxu0 %v10318_v26  ;;  %7813 = vmatpush3.msra.mxu1 %v10281_v28  ;;  %v4302_v26 = vsub.f32 %v10481_v14, %v4301_v42 }
 0x7ca   :  { %7792 = vmatprep.subr.mxu0 %v10338_v37  ;;  %7814 = vmatprep.subr.mxu1 %v10308_v63 }
 0x7cb   :  { %7793 = vmatpush3.msra.mxu0 %v10338_v37  ;;  %7815 = vmatpush3.msra.mxu1 %v10308_v63  ;;  %v4293_v37 = vand.u32 4294901760, %v4292_v6  ;;  %v4303_v2 = vand.u32 4294901760, %v4302_v26 }
 0x7cc   :  { %7794 = vmatprep.subr.mxu0 %v10352_v52  ;;  %7816 = vmatprep.subr.mxu1 %v10298_v62 }
 0x7cd   :  { %7795 = vmatpush3.msra.mxu0 %v10352_v52  ;;  %7817 = vmatpush3.msra.mxu1 %v10298_v62 }
 0x7ce   :  { %7796 = vmatprep.subr.mxu0 %v10368_v33  ;;  %7818 = vmatprep.subr.mxu1 %v10340_v29 }
 0x7cf   :  { %7797 = vmatpush3.msra.mxu0 %v10368_v33  ;;  %7819 = vmatpush3.msra.mxu1 %v10340_v29 }
 0x7d0   :  { %7798 = vmatprep.subr.mxu0 %v10394_v27  ;;  %7820 = vmatprep.subr.mxu1 %v10292_v11 }
 0x7d1   :  { %7799 = vmatpush3.msra.mxu0 %v10394_v27  ;;  %7821 = vmatpush3.msra.mxu1 %v10292_v11 }
 0x7d2   :  { %7800 = vmatprep.subr.mxu0 %v10408_v47  ;;  %7822 = vmatprep.subr.mxu1 %v10306_v38 }
 0x7d3   :  { %7749 = vmatprep.mubr.f32.mxu0 %v4293_v37  ;;  %7801 = vmatpush3.msra.mxu0 %v10408_v47 }
 0x7d4   :  { %7823 = vmatpush3.msra.mxu1 %v10306_v38  ;;  %7750 = vmatmul.mubr.f32.gmra.mxu0 %v4303_v2 }
 0x7d5   :  { %7802 = vmatprep.subr.mxu0 %v10418_v7  ;;  %7824 = vmatprep.subr.mxu1 %v10311_v36 }
 0x7d6   :  { %7803 = vmatpush3.msra.mxu0 %v10418_v7  ;;  %7825 = vmatpush3.msra.mxu1 %v10311_v36 }
 0x7d7   :  { %7804 = vmatprep.subr.mxu0 %v10428_v57  ;;  %7826 = vmatprep.subr.mxu1 %v10326_v50 }
 0x7d8   :  { %7805 = vmatpush3.msra.mxu0 %v10428_v57  ;;  %7806 = vmatprep.mubr.f32.mxu0 %v10246_v54  ;;  %v4174_v54 = vpop.permute.xlu1 %4173 }
 0x7d9   :  { %7827 = vmatpush3.msra.mxu1 %v10326_v50  ;;  %7807 = vmatmul.mubr.f32.vlgmr.msra.gmra.mxu0 %v10391_v30 }
 0x7da   :  { %7828 = vmatprep.subr.mxu1 %v10356_v60  ;;  %7842 = vmatprep.subr.mxu0 %v10289_v39 }
 0x7db   :  { %7829 = vmatpush3.msra.mxu1 %v10356_v60  ;;  %7843 = vmatpush3.msra.mxu0 %v10289_v39 }
 0x7dc   :  { %7779 = vmatprep.mubr.f32.mxu1 %v10469_v4  ;;  %7830 = vmatprep.subr.mxu1 %v10375_v56 }
 0x7dd   :  { %7844 = vmatprep.subr.mxu0 %v10344_v0  ;;  %7780 = vmatmul.mubr.f32.gmra.mxu1 %v10471_v46 }
 0x7de   :  { %7831 = vmatpush3.msra.mxu1 %v10375_v56  ;;  %7845 = vmatpush3.msra.mxu0 %v10344_v0  ;;  %v4178_v0 = vpop.permute.xlu0 %4177 }
 0x7df   :  { %7809 = vmatprep.mubr.f32.mxu0 %v10477_v21  ;;  %7832 = vmatprep.subr.mxu1 %v10396_v59 }
 0x7e0   :  { %7846 = vmatprep.subr.mxu0 %v10334_v61  ;;  %7810 = vmatmul.mubr.f32.gmra.mxu0 %v10481_v14 }
 0x7e1   :  { %7833 = vmatpush3.msra.mxu1 %v10396_v59  ;;  %7847 = vmatpush3.msra.mxu0 %v10334_v61 }
 0x7e2   :  { %7834 = vmatprep.subr.mxu1 %v10410_v15  ;;  %7848 = vmatprep.subr.mxu0 %v10379_v53 }
 0x7e3   :  { %7835 = vmatpush3.msra.mxu1 %v10410_v15  ;;  %7836 = vmatprep.mubr.f32.mxu1 %v4271_v32 }
 0x7e4   :  { %7849 = vmatpush3.msra.mxu0 %v10379_v53  ;;  %7837 = vmatmul.mubr.f32.vlgmr.msra.gmra.mxu1 %v4281_v5 }
 0x7e5   :  { %7850 = vmatprep.subr.mxu0 %v10348_v10  ;;  %7872 = vmatprep.subr.mxu1 %v10281_v28 }
 0x7e6   :  { %7851 = vmatpush3.msra.mxu0 %v10348_v10  ;;  %7873 = vmatpush3.msra.mxu1 %v10281_v28 }
 0x7e7   :  { %7852 = vmatprep.subr.mxu0 %v10382_v19  ;;  %7874 = vmatprep.subr.mxu1 %v10308_v63 }
 0x7e8   :  { %7839 = vmatprep.mubr.f32.mxu1 %v4291_v41  ;;  %7853 = vmatpush3.msra.mxu0 %v10382_v19 }
 0x7e9   :  { %7875 = vmatpush3.msra.mxu1 %v10308_v63  ;;  %7854 = vmatprep.subr.mxu0 %v10388_v55 }
 0x7ea   :  { %7840 = vmatmul.mubr.f32.gmra.mxu1 %v4301_v42  ;;  %7876 = vmatprep.subr.mxu1 %v10298_v62 }
 0x7eb   :  { %7855 = vmatpush3.msra.mxu0 %v10388_v55  ;;  %7877 = vmatpush3.msra.mxu1 %v10298_v62 }
 0x7ec   :  { %7856 = vmatprep.subr.mxu0 %v10405_v25  ;;  %7878 = vmatprep.subr.mxu1 %v10340_v29 }
 0x7ed   :  { %7857 = vmatpush3.msra.mxu0 %v10405_v25  ;;  %7879 = vmatpush3.msra.mxu1 %v10340_v29 }
 0x7ee   :  { %7858 = vmatprep.subr.mxu0 %v10424_v31  ;;  %7880 = vmatprep.subr.mxu1 %v10292_v11 }
 0x7ef   :  { %7859 = vmatpush3.msra.mxu0 %v10424_v31  ;;  %7881 = vmatpush3.msra.mxu1 %v10292_v11  ;;  %v4170_v11 = vpop.permute.xlu1 %4169 }
 0x7f0   :  { %7860 = vmatprep.subr.mxu0 %v10434_v9  ;;  %7882 = vmatprep.subr.mxu1 %v10306_v38 }
 0x7f1   :  { %7861 = vmatpush3.msra.mxu0 %v10434_v9  ;;  %7883 = vmatpush3.msra.mxu1 %v10306_v38 }
 0x7f2   :  { %7862 = vmatprep.subr.mxu0 %v10444_v40  ;;  %7884 = vmatprep.subr.mxu1 %v10311_v36 }
 0x7f3   :  { %7863 = vmatpush3.msra.mxu0 %v10444_v40  ;;  %7885 = vmatpush3.msra.mxu1 %v10311_v36 }
 0x7f4   :  { %7864 = vmatprep.subr.mxu0 %v10457_v24  ;;  %7886 = vmatprep.subr.mxu1 %v10326_v50 }
 0x7f5   :  { %7865 = vmatpush3.msra.mxu0 %v10457_v24  ;;  %7866 = vmatprep.mubr.f32.mxu0 %v10241_v49 }
 0x7f6   :  { %7887 = vmatpush3.msra.mxu1 %v10326_v50  ;;  %7867 = vmatmul.mubr.f32.vlgmr.msra.gmra.mxu0 %v10354_v12  ;;  %v4010_v50 = vpop.permute.xlu1 %4009 }
 0x7f7   :  { %7888 = vmatprep.subr.mxu1 %v10356_v60  ;;  %7869 = vmatprep.mubr.f32.mxu0 %v10469_v4 }
 0x7f8   :  { %7889 = vmatpush3.msra.mxu1 %v10356_v60  ;;  %7896 = vmatprep.mubr.f32.mxu1 %v10241_v49  ;;  %v4166_v60 = vpop.permute.xlu0 %4165 }
 0x7f9   :  { %7890 = vmatprep.subr.mxu1 %v10375_v56  ;;  %7902 = vmatprep.subr.mxu0 %v11394_v17 }
 0x7fa   :  { %7891 = vmatpush3.msra.mxu1 %v10375_v56  ;;  %7870 = vmatmul.mubr.f32.gmra.mxu0 %v10471_v46  ;;  %v4034_v10 = vpop.permute.xlu1 %4033 }
 0x7fb   :  { %7892 = vmatprep.subr.mxu1 %v10396_v59  ;;  %7926 = vmatprep.mubr.msk.f32.mxu0 %vm8339_vm1, %v11394_v17 }
 0x7fc   :  { %7893 = vmatpush3.msra.mxu1 %v10396_v59  ;;  %v4005_v47 = vpop.permute.xlu0 %4004 }
 0x7fd   :  { %7894 = vmatprep.subr.mxu1 %v10410_v15  ;;  %v4018_v6 = vmul.f32 %v10209_v3, %v4005_v47 }
 0x7fe   :  { %7895 = vmatpush3.msra.mxu1 %v10410_v15  ;;  %v4000_v53 = vpop.permute.xlu1 %3999 }
 0x7ff   :  { %7897 = vmatmul.mubr.f32.vlgmr.msra.gmra.mxu1 %v10354_v12  ;;  %7929 = vmatprep.subr.mxu1 %v11394_v17  ;;  %v4017_v37 = vmul.f32 %v10209_v3, %v4000_v53  ;;  %v4919_v53 = vld [vmem:[%s11342_s3 + $0x218] sm:$0xff] }
 0x800   :  { %7899 = vmatprep.mubr.f32.mxu1 %v10469_v4  ;;  %v4030_v34 = vpop.permute.xlu0 %4029 }
 0x802   :  { %v3995_v7 = vpop.permute.xlu1 %3994 }
 0x803   :  { %7900 = vmatmul.mubr.f32.gmra.mxu1 %v10471_v46  ;;  %v4019_v46 = vmul.f32 %v10209_v3, %v4010_v50  ;;  %v4016_v2 = vmul.f32 %v10209_v3, %v3995_v7 }
 0x804   :  { %7953 = vmatprep.mubr.msk.f32.mxu1 %vm8339_vm1, %v11394_v17 }
 0x805   :  { %v4039_v26 = vadd.f32 %v4034_v10, %v4019_v46 }
 0x880   :  { %v7748_v49 = vpop.f32.mrf.mxu0 }
 0x881   :  { %v4286_v30 = vadd.f32 %v7748_v49, %v4170_v11  ;;  %v4026_v49 = vpop.permute.xlu1 %4025 }
 0x882   :  { %v4275_v32 = vpop.f32.mrf.mxu0 }
 0x883   :  { %v4276_v15 = vadd.f32 %v4275_v32, %v4166_v60 }
 0x887   :  { %v7778_v39 = vpop.f32.mrf.mxu1 }
 0x888   :  { %v4443_v31 = vadd.f32 %v7778_v39, %v4286_v30 }
 0x889   :  { %v4436_v38 = vpop.f32.mrf.mxu1 }
 0x88a   :  { %v4437_v24 = vadd.f32 %v4436_v38, %v4276_v15  ;;  %v4022_v38 = vpop.permute.xlu0 %4021 }
 0x894   :  { %v7751_v28 = vpop.f32.mrf.mxu0 }
 0x895   :  { %v4306_v19 = vadd.f32 %v7751_v28, %v4178_v0  ;;  %v4036_v0 = vadd.f32 %v4022_v38, %v4016_v2 }
 0x896   :  { %v4295_v62 = vpop.f32.mrf.mxu0 }
 0x897   :  { %v4296_v27 = vadd.f32 %v4295_v62, %v4174_v54  ;;  %v4038_v62 = vadd.f32 %v4030_v34, %v4018_v6 }
 0x899   :  { %v7808_v63 = vpop.f32.mrf.mxu0 }
 0x89a   :  { %v4558_v1 = vadd.f32 %v7808_v63, %v4443_v31 }
 0x89b   :  { %v4550_v61 = vpop.f32.mrf.mxu0 }
 0x89c   :  { %v4551_v48 = vadd.f32 %v4550_v61, %v4437_v24 }
 0x89d   :  { %v7781_v36 = vpop.f32.mrf.mxu1 }
 0x89e   :  { %v4455_v5 = vadd.f32 %v7781_v36, %v4306_v19  ;;  %v4037_v36 = vadd.f32 %v4026_v49, %v4017_v37 }
 0x89f   :  { %v4448_v29 = vpop.f32.mrf.mxu1 }
 0x8a0   :  { %v7811_v52 = vpop.f32.mrf.mxu0  ;;  %v4449_v57 = vadd.f32 %v4448_v29, %v4296_v27 }
 0x8a1   :  { %v4572_v8 = vadd.f32 %v7811_v52, %v4455_v5 }
 0x8a2   :  { %v4564_v33 = vpop.f32.mrf.mxu0 }
 0x8a3   :  { %v4565_v51 = vadd.f32 %v4564_v33, %v4449_v57 }
 0x8a4   :  { %v7838_v12 = vpop.f32.mrf.mxu1 }
 0x8a5   :  { %v4665_v22 = vadd.f32 %v7838_v12, %v4558_v1 }
 0x8a6   :  { %v4656_v56 = vpop.f32.mrf.mxu1 }
 0x8a7   :  { %v4657_v21 = vadd.f32 %v4656_v56, %v4551_v48 }
 0x8aa   :  { %v7841_v59 = vpop.f32.mrf.mxu1 }
 0x8ab   :  { %v4681_v4 = vadd.f32 %v7841_v59, %v4572_v8 }
 0x8ac   :  { %v4672_v9 = vpop.f32.mrf.mxu1 }
 0x8ad   :  { %v4673_v14 = vadd.f32 %v4672_v9, %v4565_v51 }
 0x8b6   :  { %v7868_v55 = vpop.f32.mrf.mxu0 }
 0x8b7   :  { %v4794_v41 = vadd.f32 %v7868_v55, %v4665_v22 }
 0x8b8   :  { %v4787_v25 = vpop.f32.mrf.mxu0 }
 0x8b9   :  { %v4788_v32 = vadd.f32 %v4787_v25, %v4657_v21 }
 0x8ba   :  { %v7871_v40 = vpop.f32.mrf.mxu0 }
 0x8bb   :  { %v4806_v42 = vadd.f32 %v7871_v40, %v4681_v4 }
 0x8bc   :  { %v4799_v43 = vpop.f32.mrf.mxu0 }
 0x8bd   :  { %v4800_v28 = vadd.f32 %v4799_v43, %v4673_v14 }
 0x8bf   :  { %v7898_v16 = vpop.f32.mrf.mxu1 }
 0x8c0   :  { %v4895_v39 = vadd.f32 %v7898_v16, %v4794_v41 }
 0x8c1   :  { %v4888_v35 = vpop.f32.mrf.mxu1 }
 0x8c2   :  { %v4889_v50 = vadd.f32 %v4888_v35, %v4788_v32  ;;  %v4911_v52 = vadd.f32 %v4895_v39, %v4037_v36 }
 0x8c3   :  { %v7901_v54 = vpop.f32.mrf.mxu1 }
 0x8c4   :  { %v4907_v11 = vadd.f32 %v7901_v54, %v4806_v42  ;;  %v4910_v60 = vadd.f32 %v4889_v50, %v4036_v0  ;;  %v4915_v3 = vmax.f32 %v4911_v52, 0.0 }
 0x8c5   :  { %v4900_v63 = vpop.f32.mrf.mxu1 }
 0x8c6   :  { %v4913_v61 = vadd.f32 %v4907_v11, %v4039_v26  ;;  %v4901_v29 = vadd.f32 %v4900_v63, %v4800_v28  ;;  %v4914_v56 = vmax.f32 %v4910_v60, 0.0  ;;  %v10653_v7 = vand.u32 4294901760, %v4915_v3 }
 0x8c8   :  { %v4917_v10 = vmax.f32 %v4913_v61, 0.0  ;;  %v4912_v12 = vadd.f32 %v4901_v29, %v4038_v62  ;;  %v10655_v31 = vand.u32 4294901760, %v4914_v56  ;;  %v10690_v21 = vsub.f32 %v4915_v3, %v10653_v7 }
 0x8ca   :  { %v4916_v33 = vmax.f32 %v4912_v12, 0.0  ;;  %4938 = vrot.lane.b32.xlu1 %v4917_v10, %s8345_s21  ;;  %v10632_v30 = vand.u32 4294901760, %v4917_v10  ;;  %v10693_v14 = vsub.f32 %v4914_v56, %v10655_v31  ;;  %v5087_v50 = vand.u32 4294901760, %v10690_v21 }
 0x8cc   :  { %4936 = vrot.lane.b32.xlu0 %v4916_v33, %s8345_s21  ;;  %v10641_v59 = vand.u32 4294901760, %v4916_v33  ;;  %v10658_v57 = vsub.f32 %v4917_v10, %v10632_v30 }
 0x8ce   :  { %4934 = vrot.lane.b32.xlu1 %v4915_v3, %s8345_s21  ;;  %v10671_v16 = vsub.f32 %v4916_v33, %v10641_v59  ;;  %v5073_v35 = vand.u32 4294901760, %v10658_v57 }
 0x8d0   :  { %4932 = vrot.lane.b32.xlu0 %v4914_v56, %s8345_s21  ;;  %v5080_v54 = vand.u32 4294901760, %v10671_v16  ;;  %v5074_v36 = vsub.f32 %v10658_v57, %v5073_v35 }
 0x8d2   :  { %4926 = vrot.lane.b32.xlu1 %v4917_v10, %s8344_s20  ;;  %v5081_v60 = vsub.f32 %v10671_v16, %v5080_v54 }
 0x8d4   :  { %4924 = vrot.lane.b32.xlu0 %v4916_v33, %s8344_s20  ;;  %v5094_v33 = vand.u32 4294901760, %v10693_v14 }
 0x8d6   :  { %4922 = vrot.lane.b32.xlu1 %v4915_v3, %s8344_s20 }
 0x8d8   :  { %4920 = vrot.lane.b32.xlu0 %v4914_v56, %s8344_s20 }
 0x8da   :  { %5538 = vperm.xlu1 %8332, %v4919_v53  }
 0x8dc   :  { %5556 = vperm.xlu0 %8333, %v4919_v53  }
 0x8de   :  { %8334 = vset.pattern.permute.xlu1 %v8343_v45  ;;  %v4918_v45 = vld [vmem:[%s11342_s3 + $0x210] sm:$0xff] }
 0x8df   :  { %5561 = vperm.xlu1 %8334, %v4919_v53   ;;  %v4945_v15 = vsel %vm1933_vm0, %v4918_v45, 0 }
 0x8e0   :  { %8336 = vset.pattern.permute.xlu0 %v11412_v20  ;;  %v10673_v34 = vand.u32 4294901760, %v4945_v15 }
 0x8e1   :  { %5567 = vperm.xlu0 %8336, %v4919_v53  }
 0x8e2   :  { %v10710_v32 = vsub.f32 %v4945_v15, %v10673_v34 }
 0x8e3   :  { %8335 = vset.pattern.permute.xlu1 %v11390_v13 }
 0x8e4   :  { %5544 = vperm.xlu1 %8335, %v4919_v53  }
 0x8e5   :  { %8337 = vset.pattern.permute.xlu0 %v11391_v23 }
 0x8e6   :  { %5573 = vperm.xlu0 %8337, %v4919_v53  }
 0x93c   :  { %v4939_v19 = vpop.permute.xlu1 %4938 }
 0x93d   :  { %v4943_v55 = vsel %vm9019_vm15, 0.0, %v4939_v19  ;;  %v5026_v19 = vand.u32 4294901760, %v10710_v32 }
 0x93e   :  { %v10637_v27 = vand.u32 4294901760, %v4943_v55  ;;  %v4937_v20 = vpop.permute.xlu0 %4936 }
 0x93f   :  { %v4942_v13 = vsel %vm9019_vm15, 0.0, %v4937_v20  ;;  %v5075_v20 = vand.u32 4294901760, %v5074_v36 }
 0x940   :  { %v10644_v23 = vsub.f32 %v4943_v55, %v10637_v27  ;;  %v10646_v25 = vand.u32 4294901760, %v4942_v13  ;;  %7903 = vmatpush3.msra.mxu0 %v10637_v27  ;;  %v4935_v47 = vpop.permute.xlu1 %4934 }
 0x941   :  { %v4941_v5 = vsel %vm9019_vm15, 0.0, %v4935_v47  ;;  %7904 = vmatprep.subr.mxu0 %v11394_v17  ;;  %v5095_v47 = vsub.f32 %v10693_v14, %v5094_v33 }
 0x942   :  { %v5045_v9 = vand.u32 4294901760, %v10644_v23  ;;  %v10662_v40 = vsub.f32 %v4942_v13, %v10646_v25  ;;  %v10664_v24 = vand.u32 4294901760, %v4941_v5  ;;  %7905 = vmatpush3.msra.mxu0 %v10646_v25  ;;  %v4933_v1 = vpop.permute.xlu0 %4932  ;;  %v5088_v13 = vsub.f32 %v10690_v21, %v5087_v50 }
 0x943   :  { %v4940_v8 = vsel %vm9019_vm15, 0.0, %v4933_v1  ;;  %7906 = vmatprep.subr.mxu0 %v11394_v17  ;;  %v5082_v1 = vand.u32 4294901760, %v5081_v60 }
 0x944   :  { %v5046_v48 = vsub.f32 %v10644_v23, %v5045_v9  ;;  %v5052_v51 = vand.u32 4294901760, %v10662_v40  ;;  %v10680_v22 = vsub.f32 %v4941_v5, %v10664_v24  ;;  %v10682_v4 = vand.u32 4294901760, %v4940_v8  ;;  %v4927_v46 = vpop.permute.xlu1 %4926  ;;  %7907 = vmatpush3.msra.mxu0 %v10664_v24 }
 0x945   :  { %v4931_v43 = vsel %vm9011_vm12, 0.0, %v4927_v46  ;;  %7908 = vmatprep.subr.mxu0 %v11394_v17 }
 0x946   :  { %v5047_v41 = vand.u32 4294901760, %v5046_v48  ;;  %v5053_v42 = vsub.f32 %v10662_v40, %v5052_v51  ;;  %v5059_v6 = vand.u32 4294901760, %v10680_v22  ;;  %v10700_v26 = vsub.f32 %v4940_v8, %v10682_v4  ;;  %7909 = vmatpush3.msra.mxu0 %v10682_v4  ;;  %v4925_v37 = vpop.permute.xlu0 %4924 }
 0x947   :  { %v10703_v2 = vand.u32 4294901760, %v4931_v43  ;;  %v4930_v49 = vsel %vm9011_vm12, 0.0, %v4925_v37  ;;  %7910 = vmatprep.subr.mxu0 %v11394_v17  ;;  %v5027_v8 = vsub.f32 %v10710_v32, %v5026_v19  ;;  %v5096_v37 = vand.u32 4294901760, %v5095_v47 }
 0x948   :  { %v5054_v28 = vand.u32 4294901760, %v5053_v42  ;;  %v5060_v39 = vsub.f32 %v10680_v22, %v5059_v6  ;;  %v5066_v11 = vand.u32 4294901760, %v10700_v26  ;;  %v10716_v62 = vand.u32 4294901760, %v4930_v49  ;;  %7930 = vmatpush3.msra.mxu1 %v5047_v41  ;;  %v4923_v38 = vpop.permute.xlu1 %4922  ;;  %7911 = vmatpush3.msra.mxu0 %v10632_v30 }
 0x949   :  { %v4929_v63 = vsel %vm9011_vm12, 0.0, %v4923_v38  ;;  %7912 = vmatprep.subr.mxu0 %v11394_v17  ;;  %7931 = vmatprep.subr.mxu1 %v11394_v17  ;;  %v10731_v0 = vsub.f32 %v4931_v43, %v10703_v2  ;;  %v5089_v43 = vand.u32 4294901760, %v5088_v13 }
 0x94a   :  { %v5061_v61 = vand.u32 4294901760, %v5060_v39  ;;  %v5067_v29 = vsub.f32 %v10700_v26, %v5066_v11  ;;  %v10733_v52 = vand.u32 4294901760, %v4929_v63  ;;  %7913 = vmatpush3.msra.mxu0 %v10641_v59  ;;  %7932 = vmatpush3.msra.mxu1 %v5054_v28  ;;  %v4921_v10 = vpop.permute.xlu0 %4920  ;;  %v10745_v56 = vsub.f32 %v4930_v49, %v10716_v62 }
 0x94b   :  { %v4928_v12 = vsel %vm9011_vm12, 0.0, %v4921_v10  ;;  %7914 = vmatprep.subr.mxu0 %v11394_v17  ;;  %7933 = vmatprep.subr.mxu1 %v11394_v17  ;;  %v5101_v55 = vand.u32 4294901760, %v10731_v0  ;;  %v5028_v49 = vand.u32 4294901760, %v5027_v8 }
 0x94c   :  { %v5068_v3 = vand.u32 4294901760, %v5067_v29  ;;  %v10747_v53 = vand.u32 4294901760, %v4928_v12  ;;  %7915 = vmatpush3.msra.mxu0 %v10653_v7  ;;  %7934 = vmatpush3.msra.mxu1 %v5061_v61  ;;  %v10755_v45 = vsub.f32 %v4929_v63, %v10733_v52  ;;  %v5108_v15 = vand.u32 4294901760, %v10745_v56 }
 0x94d   :  { %7916 = vmatprep.subr.mxu0 %v11394_v17  ;;  %7935 = vmatprep.subr.mxu1 %v11394_v17  ;;  %v5102_v48 = vsub.f32 %v10731_v0, %v5101_v55 }
 0x94e   :  { %7917 = vmatpush3.msra.mxu0 %v10655_v31  ;;  %7936 = vmatpush3.msra.mxu1 %v5068_v3  ;;  %v10768_v5 = vsub.f32 %v4928_v12, %v10747_v53  ;;  %v5115_v46 = vand.u32 4294901760, %v10755_v45  ;;  %v5109_v41 = vsub.f32 %v10745_v56, %v5108_v15 }
 0x94f   :  { %7918 = vmatprep.subr.mxu0 %v11394_v17  ;;  %7937 = vmatprep.subr.mxu1 %v11394_v17  ;;  %v5103_v28 = vand.u32 4294901760, %v5102_v48 }
 0x950   :  { %7919 = vmatpush3.msra.mxu0 %v10703_v2  ;;  %7938 = vmatpush3.msra.mxu1 %v5075_v20  ;;  %v5122_v42 = vand.u32 4294901760, %v10768_v5  ;;  %v5116_v39 = vsub.f32 %v10755_v45, %v5115_v46  ;;  %v5110_v38 = vand.u32 4294901760, %v5109_v41 }
 0x951   :  { %7920 = vmatprep.subr.mxu0 %v11394_v17  ;;  %7939 = vmatprep.subr.mxu1 %v11394_v17 }
 0x952   :  { %7921 = vmatpush3.msra.mxu0 %v10716_v62  ;;  %7940 = vmatpush3.msra.mxu1 %v5082_v1  ;;  %v5123_v63 = vsub.f32 %v10768_v5, %v5122_v42  ;;  %v5117_v36 = vand.u32 4294901760, %v5116_v39 }
 0x953   :  { %7922 = vmatprep.subr.mxu0 %v11394_v17  ;;  %7941 = vmatprep.subr.mxu1 %v11394_v17 }
 0x954   :  { %7923 = vmatpush3.msra.mxu0 %v10733_v52  ;;  %7942 = vmatpush3.msra.mxu1 %v5089_v43  ;;  %v5124_v61 = vand.u32 4294901760, %v5123_v63 }
 0x955   :  { %7924 = vmatprep.subr.mxu0 %v11394_v17  ;;  %7943 = vmatprep.subr.mxu1 %v11394_v17 }
 0x956   :  { %7925 = vmatpush3.msra.mxu0 %v10747_v53  ;;  %7944 = vmatpush3.msra.mxu1 %v5096_v37 }
 0x957   :  { %7945 = vmatprep.subr.mxu1 %v11394_v17  ;;  %7956 = vmatprep.subr.mxu0 %v11394_v17 }
 0x958   :  { %7927 = vmatmul.mubr.f32.vlgmr.msra.gmra.mxu0 %v5028_v49  ;;  %7946 = vmatpush3.msra.mxu1 %v5103_v28 }
 0x959   :  { %7957 = vmatpush3.msra.mxu0 %v10644_v23  ;;  %7947 = vmatprep.subr.mxu1 %v11394_v17 }
 0x95a   :  { %7958 = vmatprep.subr.mxu0 %v11394_v17  ;;  %7948 = vmatpush3.msra.mxu1 %v5110_v38  ;;  %v72_v38 = vld [vmem:[%s11342_s3 + $0x138] sm:$0xff] }
 0x95b   :  { %7959 = vmatpush3.msra.mxu0 %v10662_v40  ;;  %7949 = vmatprep.subr.mxu1 %v11394_v17  ;;  %v11052_v63 = vand.u32 4294901760, %v72_v38 }
 0x95c   :  { %7960 = vmatprep.subr.mxu0 %v11394_v17  ;;  %7950 = vmatpush3.msra.mxu1 %v5117_v36  ;;  %v71_v36 = vld [vmem:[%s11342_s3 + $0x130] sm:$0xff] }
 0x95d   :  { %7961 = vmatpush3.msra.mxu0 %v10680_v22  ;;  %7951 = vmatprep.subr.mxu1 %v11394_v17 }
 0x95e   :  { %7962 = vmatprep.subr.mxu0 %v11394_v17  ;;  %7952 = vmatpush3.msra.mxu1 %v5124_v61  ;;  %v11058_v61 = vsub.f32 %v72_v38, %v11052_v63 }
 0x95f   :  { %7963 = vmatpush3.msra.mxu0 %v10700_v26  ;;  %7954 = vmatmul.mubr.f32.vlgmr.msra.gmra.mxu1 %v10673_v34 }
 0x960   :  { %7964 = vmatprep.subr.mxu0 %v11394_v17  ;;  %7983 = vmatprep.subr.mxu1 %v11394_v17 }
 0x961   :  { %7965 = vmatpush3.msra.mxu0 %v10658_v57  ;;  %7984 = vmatpush3.msra.mxu1 %v10637_v27  ;;  %v76_v57 = vld [vmem:[%s11342_s3 + $0x158] sm:$0xff] }
 0x962   :  { %7966 = vmatprep.subr.mxu0 %v11394_v17  ;;  %7985 = vmatprep.subr.mxu1 %v11394_v17 }
 0x963   :  { %7967 = vmatpush3.msra.mxu0 %v10671_v16  ;;  %7986 = vmatpush3.msra.mxu1 %v10646_v25 }
 0x964   :  { %7968 = vmatprep.subr.mxu0 %v11394_v17  ;;  %7987 = vmatprep.subr.mxu1 %v11394_v17 }
 0x965   :  { %7969 = vmatpush3.msra.mxu0 %v10690_v21  ;;  %7988 = vmatpush3.msra.mxu1 %v10664_v24 }
 0x966   :  { %7970 = vmatprep.subr.mxu0 %v11394_v17  ;;  %7989 = vmatprep.subr.mxu1 %v11394_v17 }
 0x967   :  { %7971 = vmatpush3.msra.mxu0 %v10693_v14  ;;  %7990 = vmatpush3.msra.mxu1 %v10682_v4 }
 0x968   :  { %7972 = vmatprep.subr.mxu0 %v11394_v17  ;;  %7991 = vmatprep.subr.mxu1 %v11394_v17 }
 0x969   :  { %7973 = vmatpush3.msra.mxu0 %v10731_v0  ;;  %7992 = vmatpush3.msra.mxu1 %v10632_v30 }
 0x96a   :  { %7974 = vmatprep.subr.mxu0 %v11394_v17  ;;  %7993 = vmatprep.subr.mxu1 %v11394_v17 }
 0x96b   :  { %7975 = vmatpush3.msra.mxu0 %v10745_v56  ;;  %7994 = vmatpush3.msra.mxu1 %v10641_v59 }
 0x96c   :  { %7976 = vmatprep.subr.mxu0 %v11394_v17  ;;  %7995 = vmatprep.subr.mxu1 %v11394_v17 }
 0x96d   :  { %7977 = vmatpush3.msra.mxu0 %v10755_v45  ;;  %7996 = vmatpush3.msra.mxu1 %v10653_v7 }
 0x96e   :  { %7978 = vmatprep.subr.mxu0 %v11394_v17  ;;  %7997 = vmatprep.subr.mxu1 %v11394_v17 }
 0x96f   :  { %7979 = vmatpush3.msra.mxu0 %v10768_v5  ;;  %7980 = vmatprep.mubr.msk.f32.mxu0 %vm8339_vm1, %v11394_v17 }
 0x970   :  { %7998 = vmatpush3.msra.mxu1 %v10655_v31  ;;  %7981 = vmatmul.mubr.f32.vlgmr.msra.gmra.mxu0 %v10710_v32 }
 0x971   :  { %7999 = vmatprep.subr.mxu1 %v11394_v17  ;;  %8010 = vmatprep.subr.mxu0 %v11394_v17 }
 0x972   :  { %8000 = vmatpush3.msra.mxu1 %v10703_v2  ;;  %8011 = vmatpush3.msra.mxu0 %v5045_v9  ;;  %v75_v9 = vld [vmem:[%s11342_s3 + $0x150] sm:$0xff] }
 0x973   :  { %8001 = vmatprep.subr.mxu1 %v11394_v17  ;;  %8012 = vmatprep.subr.mxu0 %v11394_v17  ;;  %v10957_v16 = vand.u32 4294901760, %v75_v9 }
 0x974   :  { %8002 = vmatpush3.msra.mxu1 %v10716_v62  ;;  %8013 = vmatpush3.msra.mxu0 %v5052_v51  ;;  %v73_v51 = vld [vmem:[%s11342_s3 + $0x140] sm:$0xff] }
 0x975   :  { %8003 = vmatprep.subr.mxu1 %v11394_v17  ;;  %8014 = vmatprep.subr.mxu0 %v11394_v17  ;;  %v10985_v26 = vsub.f32 %v75_v9, %v10957_v16  ;;  %v69_v9 = vld [vmem:[%s11342_s3 + $0x120] sm:$0xff] }
 0x976   :  { %8004 = vmatpush3.msra.mxu1 %v10733_v52  ;;  %8015 = vmatpush3.msra.mxu0 %v5059_v6 }
 0x977   :  { %8005 = vmatprep.subr.mxu1 %v11394_v17  ;;  %8016 = vmatprep.subr.mxu0 %v11394_v17  ;;  %v11385_v12 = vand.u32 4294901760, %v10985_v26 }
 0x978   :  { %8006 = vmatpush3.msra.mxu1 %v10747_v53  ;;  %8007 = vmatprep.mubr.msk.f32.mxu1 %vm8339_vm1, %v11394_v17 }
 0x979   :  { %8017 = vmatpush3.msra.mxu0 %v5066_v11  ;;  %8008 = vmatmul.mubr.f32.vlgmr.msra.gmra.mxu1 %v5026_v19  ;;  %v10991_v11 = vand.u32 4294901760, %v73_v51  ;;  %v5712_v20 = vsub.f32 %v10985_v26, %v11385_v12 }
 0x97a   :  { %8018 = vmatprep.subr.mxu0 %v11394_v17  ;;  %8037 = vmatprep.subr.mxu1 %v11394_v17 }
 0x97b   :  { %8019 = vmatpush3.msra.mxu0 %v5073_v35  ;;  %8038 = vmatpush3.msra.mxu1 %v10637_v27  ;;  %v79_v27 = vld [vmem:[%s11342_s3 + $0x170] sm:$0xff]  ;;  %v11016_v56 = vsub.f32 %v73_v51, %v10991_v11  ;;  %v5713_v5 = vand.u32 4294901760, %v5712_v20 }
 0x97c   :  { %8020 = vmatprep.subr.mxu0 %v11394_v17  ;;  %8039 = vmatprep.subr.mxu1 %v11394_v17 }
 0x97d   :  { %8021 = vmatpush3.msra.mxu0 %v5080_v54  ;;  %8040 = vmatpush3.msra.mxu1 %v10646_v25  ;;  %v10940_v25 = vand.u32 4294901760, %v79_v27  ;;  %v11383_v13 = vand.u32 4294901760, %v11016_v56 }
 0x97e   :  { %8022 = vmatprep.subr.mxu0 %v11394_v17  ;;  %8041 = vmatprep.subr.mxu1 %v11394_v17 }
 0x97f   :  { %8023 = vmatpush3.msra.mxu0 %v5087_v50  ;;  %8042 = vmatpush3.msra.mxu1 %v10664_v24  ;;  %v10955_v24 = vand.u32 4294901760, %v76_v57  ;;  %v5726_v1 = vsub.f32 %v11016_v56, %v11383_v13 }
 0x980   :  { %8024 = vmatprep.subr.mxu0 %v11394_v17  ;;  %8043 = vmatprep.subr.mxu1 %v11394_v17 }
 0x981   :  { %8025 = vmatpush3.msra.mxu0 %v5094_v33  ;;  %8044 = vmatpush3.msra.mxu1 %v10682_v4  ;;  %v10969_v4 = vsub.f32 %v79_v27, %v10940_v25  ;;  %v10981_v6 = vsub.f32 %v76_v57, %v10955_v24  ;;  %v5727_v48 = vand.u32 4294901760, %v5726_v1  ;;  %v70_v27 = vld [vmem:[%s11342_s3 + $0x128] sm:$0xff] }
 0x982   :  { %8026 = vmatprep.subr.mxu0 %v11394_v17  ;;  %8045 = vmatprep.subr.mxu1 %v11394_v17  ;;  %v11071_v57 = vand.u32 4294901760, %v70_v27 }
 0x983   :  { %8027 = vmatpush3.msra.mxu0 %v5101_v55  ;;  %8046 = vmatpush3.msra.mxu1 %v10632_v30  ;;  %v80_v30 = vld [vmem:[%s11342_s3 + $0x178] sm:$0xff]  ;;  %v5683_v54 = vand.u32 4294901760, %v10969_v4  ;;  %v5704_v10 = vand.u32 4294901760, %v10981_v6 }
 0x984   :  { %8028 = vmatprep.subr.mxu0 %v11394_v17  ;;  %8047 = vmatprep.subr.mxu1 %v11394_v17  ;;  %v10938_v23 = vand.u32 4294901760, %v80_v30 }
 0x985   :  { %8029 = vmatpush3.msra.mxu0 %v5108_v15  ;;  %8048 = vmatpush3.msra.mxu1 %v10641_v59  ;;  %v78_v59 = vld [vmem:[%s11342_s3 + $0x168] sm:$0xff]  ;;  %v5684_v0 = vsub.f32 %v10969_v4, %v5683_v54  ;;  %v5705_v19 = vsub.f32 %v10981_v6, %v5704_v10 }
 0x986   :  { %8030 = vmatprep.subr.mxu0 %v11394_v17  ;;  %8049 = vmatprep.subr.mxu1 %v11394_v17  ;;  %v10966_v22 = vsub.f32 %v80_v30, %v10938_v23  ;;  %v11060_v30 = vand.u32 4294901760, %v71_v36 }
 0x987   :  { %8031 = vmatpush3.msra.mxu0 %v5115_v46  ;;  %8050 = vmatpush3.msra.mxu1 %v10653_v7  ;;  %v10942_v7 = vand.u32 4294901760, %v78_v59  ;;  %v5685_v33 = vand.u32 4294901760, %v5684_v0  ;;  %v5706_v47 = vand.u32 4294901760, %v5705_v19  ;;  %v11083_v0 = vsub.f32 %v70_v27, %v11071_v57  ;;  %v65_v27 = vld [vmem:[%s11342_s3 + $0x100] sm:$0xff] }
 0x988   :  { %8032 = vmatprep.subr.mxu0 %v11394_v17  ;;  %8051 = vmatprep.subr.mxu1 %v11394_v17 }
 0x989   :  { %8033 = vmatpush3.msra.mxu0 %v5122_v42  ;;  %8034 = vmatprep.mubr.msk.f32.mxu0 %vm8339_vm1, %v11394_v17  ;;  %v10972_v35 = vsub.f32 %v78_v59, %v10942_v7  ;;  %v11382_v59 = vand.u32 4294901760, %v11058_v61 }
 0x98a   :  { %8052 = vmatpush3.msra.mxu1 %v10655_v31  ;;  %8035 = vmatmul.mubr.f32.vlgmr.msra.gmra.mxu0 %v10673_v34  ;;  %v77_v31 = vld [vmem:[%s11342_s3 + $0x160] sm:$0xff] }
 0x98b   :  { %8053 = vmatprep.subr.mxu1 %v11394_v17  ;;  %8061 = vmatprep.mubr.msk.f32.mxu1 %vm8339_vm1, %v11394_v17  ;;  %v10953_v40 = vand.u32 4294901760, %v77_v31  ;;  %v5690_v32 = vand.u32 4294901760, %v10972_v35  ;;  %v5733_v51 = vsub.f32 %v11058_v61, %v11382_v59 }
 0x98c   :  { %8054 = vmatpush3.msra.mxu1 %v10703_v2  ;;  %8064 = vmatprep.subr.mxu0 %v11394_v17  ;;  %v5676_v2 = vand.u32 4294901760, %v10966_v22 }
 0x98d   :  { %8055 = vmatprep.subr.mxu1 %v11394_v17  ;;  %8096 = vmatprep.mubr.msk.f32.mxu0 %vm8339_vm1, %v11394_v17  ;;  %v10978_v14 = vsub.f32 %v77_v31, %v10953_v40  ;;  %v11069_v31 = vsub.f32 %v71_v36, %v11060_v30 }
 0x98e   :  { %8056 = vmatpush3.msra.mxu1 %v10716_v62  ;;  %8065 = vmatpush3.msra.mxu0 %v10938_v23  ;;  %v5677_v29 = vsub.f32 %v10966_v22, %v5676_v2 }
 0x98f   :  { %8057 = vmatprep.subr.mxu1 %v11394_v17  ;;  %8066 = vmatprep.subr.mxu0 %v11394_v17  ;;  %v5697_v62 = vand.u32 4294901760, %v10978_v14 }
 0x990   :  { %8058 = vmatpush3.msra.mxu1 %v10733_v52  ;;  %8067 = vmatpush3.msra.mxu0 %v10940_v25  ;;  %v5691_v52 = vsub.f32 %v10972_v35, %v5690_v32  ;;  %v5678_v60 = vand.u32 4294901760, %v5677_v29  ;;  %v11381_v29 = vand.u32 4294901760, %v11069_v31 }
 0x991   :  { %8059 = vmatprep.subr.mxu1 %v11394_v17  ;;  %8068 = vmatprep.subr.mxu0 %v11394_v17  ;;  %v5698_v3 = vsub.f32 %v10978_v14, %v5697_v62 }
 0x992   :  { %8060 = vmatpush3.msra.mxu1 %v10747_v53  ;;  %8069 = vmatpush3.msra.mxu0 %v10942_v7  ;;  %v5692_v53 = vand.u32 4294901760, %v5691_v52  ;;  %v11085_v52 = vand.u32 4294901760, %v69_v9  ;;  %v5740_v19 = vsub.f32 %v11069_v31, %v11381_v29 }
 0x993   :  { %8062 = vmatmul.mubr.f32.vlgmr.msra.gmra.mxu1 %v10673_v34  ;;  %8099 = vmatprep.subr.mxu1 %v11394_v17  ;;  %v74_v34 = vld [vmem:[%s11342_s3 + $0x148] sm:$0xff]  ;;  %v5699_v45 = vand.u32 4294901760, %v5698_v3 }
 0x994   :  { %8131 = vmatprep.mubr.msk.f32.mxu1 %vm8339_vm1, %v11394_v17  ;;  %v10975_v21 = vand.u32 4294901760, %v74_v34  ;;  %8070 = vmatprep.subr.mxu0 %v11394_v17  ;;  %v11097_v20 = vsub.f32 %v69_v9, %v11085_v52  ;;  %v5741_v1 = vand.u32 4294901760, %v5740_v19 }
 0x995   :  { %8071 = vmatpush3.msra.mxu0 %v10953_v40  ;;  %8100 = vmatpush3.msra.mxu1 %v5678_v60 }
 0x996   :  { %v10996_v50 = vsub.f32 %v74_v34, %v10975_v21  ;;  %8072 = vmatprep.subr.mxu0 %v11394_v17  ;;  %8101 = vmatprep.subr.mxu1 %v11394_v17 }
 0x997   :  { %8073 = vmatpush3.msra.mxu0 %v10955_v24  ;;  %8102 = vmatpush3.msra.mxu1 %v5685_v33  ;;  %v68_v33 = vld [vmem:[%s11342_s3 + $0x118] sm:$0xff] }
 0x998   :  { %v11384_v55 = vand.u32 4294901760, %v10996_v50  ;;  %8074 = vmatprep.subr.mxu0 %v11394_v17  ;;  %8103 = vmatprep.subr.mxu1 %v11394_v17 }
 0x999   :  { %8075 = vmatpush3.msra.mxu0 %v10957_v16  ;;  %8104 = vmatpush3.msra.mxu1 %v5692_v53  ;;  %v5734_v53 = vand.u32 4294901760, %v5733_v51 }
 0x99a   :  { %8076 = vmatprep.subr.mxu0 %v11394_v17  ;;  %v5719_v15 = vsub.f32 %v10996_v50, %v11384_v55  ;;  %8105 = vmatprep.subr.mxu1 %v11394_v17 }
 0x99b   :  { %8077 = vmatpush3.msra.mxu0 %v10975_v21  ;;  %8106 = vmatpush3.msra.mxu1 %v5699_v45  ;;  %v11380_v45 = vand.u32 4294901760, %v11083_v0 }
 0x99c   :  { %8078 = vmatprep.subr.mxu0 %v11394_v17  ;;  %8107 = vmatprep.subr.mxu1 %v11394_v17  ;;  %v5720_v8 = vand.u32 4294901760, %v5719_v15  ;;  %v11100_v15 = vand.u32 4294901760, %v68_v33 }
 0x99d   :  { %8079 = vmatpush3.msra.mxu0 %v10991_v11  ;;  %8108 = vmatpush3.msra.mxu1 %v5706_v47 }
 0x99e   :  { %8080 = vmatprep.subr.mxu0 %v11394_v17  ;;  %8109 = vmatprep.subr.mxu1 %v11394_v17 }
 0x99f   :  { %8110 = vmatpush3.msra.mxu1 %v5713_v5  ;;  %8081 = vmatpush3.msra.mxu0 %v11052_v63  ;;  %v67_v5 = vld [vmem:[%s11342_s3 + $0x110] sm:$0xff] }
 0x9a0   :  { %8111 = vmatprep.subr.mxu1 %v11394_v17  ;;  %8082 = vmatprep.subr.mxu0 %v11394_v17 }
 0x9a1   :  { %8112 = vmatpush3.msra.mxu1 %v5720_v8  ;;  %8083 = vmatpush3.msra.mxu0 %v11060_v30  ;;  %v5747_v8 = vsub.f32 %v11083_v0, %v11380_v45 }
 0x9a2   :  { %8113 = vmatprep.subr.mxu1 %v11394_v17  ;;  %8084 = vmatprep.subr.mxu0 %v11394_v17 }
 0x9a3   :  { %8114 = vmatpush3.msra.mxu1 %v5727_v48  ;;  %8085 = vmatpush3.msra.mxu0 %v11071_v57  ;;  %v11379_v48 = vand.u32 4294901760, %v11097_v20 }
 0x9a4   :  { %8115 = vmatprep.subr.mxu1 %v11394_v17  ;;  %8086 = vmatprep.subr.mxu0 %v11394_v17 }
 0x9a5   :  { %8087 = vmatpush3.msra.mxu0 %v11085_v52  ;;  %8116 = vmatpush3.msra.mxu1 %v5734_v53 }
 0x9a6   :  { %8088 = vmatprep.subr.mxu0 %v11394_v17  ;;  %8117 = vmatprep.subr.mxu1 %v11394_v17 }
 0x9a7   :  { %8089 = vmatpush3.msra.mxu0 %v11100_v15  ;;  %8118 = vmatpush3.msra.mxu1 %v5741_v1  ;;  %v5539_v1 = vpop.permute.xlu1 %5538 }
 0x9a8   :  { %8090 = vmatprep.subr.mxu0 %v11394_v17  ;;  %8119 = vmatprep.subr.mxu1 %v11394_v17 }
 0xa18   :  { %v5030_v46 = vpop.f32.mrf.mxu0 }
 0xa1a   :  { %v7928_v43 = vpop.f32.mrf.mxu0 }
 0xa1f   :  { %v5161_v41 = vpop.f32.mrf.mxu1 }
 0xa20   :  { %v5162_v60 = vadd.f32 %v5161_v41, %v5030_v46  ;;  %v11110_v46 = vand.u32 4294901760, %v67_v5  ;;  %v11114_v41 = vsub.f32 %v68_v33, %v11100_v15  ;;  %v11139_v33 = vand.u32 4294901760, %v65_v27 }
 0xa21   :  { %v7955_v42 = vpop.f32.mrf.mxu1 }
 0xa22   :  { %v66_v42 = vld [vmem:[%s11342_s3 + $0x108] sm:$0xff]  ;;  %v11378_v36 = vand.u32 4294901760, %v11114_v41  ;;  %8091 = vmatpush3.msra.mxu0 %v11110_v46 }
 0xa23   :  { %8092 = vmatprep.subr.mxu0 %v11394_v17 }
 0xa30   :  { %v5257_v37 = vpop.f32.mrf.mxu0 }
 0xa31   :  { %v5258_v47 = vadd.f32 %v5257_v37, %v5162_v60  ;;  %v5748_v37 = vand.u32 4294901760, %v5747_v8 }
 0xa32   :  { %v7982_v49 = vpop.f32.mrf.mxu0 }
 0xa33   :  { %v5754_v49 = vsub.f32 %v11097_v20, %v11379_v48  ;;  %8120 = vmatpush3.msra.mxu1 %v5748_v37 }
 0xa34   :  { %8121 = vmatprep.subr.mxu1 %v11394_v17 }
 0xa35   :  { %v5755_v9 = vand.u32 4294901760, %v5754_v49 }
 0xa37   :  { %8122 = vmatpush3.msra.mxu1 %v5755_v9 }
 0xa38   :  { %8123 = vmatprep.subr.mxu1 %v11394_v17 }
 0xa39   :  { %v5342_v28 = vpop.f32.mrf.mxu1 }
 0xa3a   :  { %v5343_v43 = vadd.f32 %v5342_v28, %v5258_v47  ;;  %v11126_v28 = vand.u32 4294901760, %v66_v42 }
 0xa3b   :  { %v8009_v39 = vpop.f32.mrf.mxu1 }
 0xa3c   :  { %v11124_v39 = vsub.f32 %v67_v5, %v11110_v46  ;;  %v11137_v60 = vsub.f32 %v66_v42, %v11126_v28  ;;  %8093 = vmatpush3.msra.mxu0 %v11126_v28  ;;  %v11152_v5 = vsub.f32 %v65_v27, %v11139_v33 }
 0xa3d   :  { %8094 = vmatprep.subr.mxu0 %v11394_v17 }
 0xa3e   :  { %v11377_v51 = vand.u32 4294901760, %v11124_v39  ;;  %v11376_v47 = vand.u32 4294901760, %v11137_v60  ;;  %8095 = vmatpush3.msra.mxu0 %v11139_v33 }
 0xa3f   :  { %8134 = vmatprep.subr.mxu0 %v11394_v17 }
 0xa40   :  { %v5768_v19 = vsub.f32 %v11124_v39, %v11377_v51  ;;  %v5775_v49 = vsub.f32 %v11137_v60, %v11376_v47 }
 0xa42   :  { %v5769_v37 = vand.u32 4294901760, %v5768_v19  ;;  %v5776_v9 = vand.u32 4294901760, %v5775_v49  ;;  %v5562_v19 = vpop.permute.xlu1 %5561 }
 0xa4a   :  { %v5449_v34 = vpop.f32.mrf.mxu0 }
 0xa4b   :  { %v5450_v38 = vadd.f32 %v5449_v34, %v5343_v43 }
 0xa4c   :  { %v8036_v3 = vpop.f32.mrf.mxu0 }
 0xa4d   :  { %v5761_v3 = vsub.f32 %v11114_v41, %v11378_v36 }
 0xa4f   :  { %v5762_v43 = vand.u32 4294901760, %v5761_v3 }
 0xa51   :  { %8124 = vmatpush3.msra.mxu1 %v5762_v43 }
 0xa52   :  { %8125 = vmatprep.subr.mxu1 %v11394_v17 }
 0xa53   :  { %v5532_v34 = vpop.f32.mrf.mxu1  ;;  %8126 = vmatpush3.msra.mxu1 %v5769_v37 }
 0xa54   :  { %v5533_v53 = vadd.f32 %v5532_v34, %v5450_v38  ;;  %v11375_v38 = vand.u32 4294901760, %v11152_v5  ;;  %8127 = vmatprep.subr.mxu1 %v11394_v17 }
 0xa55   :  { %v8063_v8 = vpop.f32.mrf.mxu1  ;;  %8128 = vmatpush3.msra.mxu1 %v5776_v9 }
 0xa56   :  { %v5541_v42 = vadd.f32 %v5539_v1, %v5533_v53  ;;  %v5782_v34 = vsub.f32 %v11152_v5, %v11375_v38  ;;  %8129 = vmatprep.subr.mxu1 %v11394_v17  ;;  %v5557_v1 = vpop.permute.xlu0 %5556  ;;  %v5545_v8 = vpop.permute.xlu1 %5544 }
 0xa57   :  { %v5546_v49 = vrot.slane %v5545_v8, 7 }
 0xa58   :  { %v5542_v27 = vmax.f32 %v5541_v42, 0.0  ;;  %v5783_v3 = vand.u32 4294901760, %v5782_v34 }
 0xa5a   :  { %5549 = vrot.lane.b32.xlu1 %v5542_v27, %s8344_s20  ;;  %8130 = vmatpush3.msra.mxu1 %v5783_v3  ;;  %v5568_v37 = vpop.permute.xlu0 %5567  ;;  %v5564_v47 = vmul.f32 %v5562_v19, %v5542_v27  ;;  %v5548_v3 = vadd.f32 %v5546_v49, %v5533_v53 }
 0xa5b   :  { %8169 = vmatprep.subr.mxu1 %v11394_v17 }
 0xa5c   :  { %v5578_v29 = vrot.slane %v5548_v3, 1 }
 0xa5e   :  { %5552 = vrot.lane.b32.xlu1 %v5542_v27, %s8345_s21  ;;  %v5574_v48 = vpop.permute.xlu0 %5573 }
 0xacc   :  { %v5550_v43 = vpop.permute.xlu1 %5549 }
 0xacd   :  { %v5551_v42 = vsel %vm9011_vm12, 0.0, %v5550_v43 }
 0xace   :  { %v5559_v38 = vmul.f32 %v5557_v1, %v5551_v42 }
 0xad0   :  { %v5553_v9 = vpop.permute.xlu1 %5552  ;;  %v5565_v51 = vadd.f32 %v5564_v47, %v5559_v38 }
 0xad1   :  { %v5554_v34 = vsel %vm9019_vm15, 0.0, %v5553_v9 }
 0xad2   :  { %v5570_v36 = vmul.f32 %v5568_v37, %v5554_v34 }
 0xad4   :  { %v5571_v45 = vadd.f32 %v5570_v36, %v5565_v51 }
 0xad6   :  { %v5576_v59 = vadd.f32 %v5574_v48, %v5571_v45 }
 0xad8   :  { %v5580_v13 = vadd.f32 %v5578_v29, %v5576_v59 }
 0xada   :  { %v5581_v55 = vmax.f32 %v5580_v13, 0.0 }
 0xadc   :  { %v11175_v12 = vand.u32 4294901760, %v5581_v55 }
 0xade   :  { %v11178_v44 = vsub.f32 %v5581_v55, %v11175_v12  ;;  %8132 = vmatmul.mubr.f32.vlgmr.msra.gmra.mxu1 %v11175_v12 }
 0xadf   :  { %8170 = vmatpush3.msra.mxu1 %v10938_v23  ;;  %8201 = vmatprep.mubr.msk.f32.mxu1 %vm8339_vm1, %v11394_v17 }
 0xae0   :  { %v5665_v58 = vand.u32 4294901760, %v11178_v44  ;;  %8171 = vmatprep.subr.mxu1 %v11394_v17 }
 0xae1   :  { %8172 = vmatpush3.msra.mxu1 %v10940_v25 }
 0xae2   :  { %8173 = vmatprep.subr.mxu1 %v11394_v17  ;;  %v5666_v13 = vsub.f32 %v11178_v44, %v5665_v58 }
 0xae3   :  { %8174 = vmatpush3.msra.mxu1 %v10942_v7 }
 0xae4   :  { %8175 = vmatprep.subr.mxu1 %v11394_v17  ;;  %v5667_v55 = vand.u32 4294901760, %v5666_v13 }
 0xae5   :  { %8176 = vmatpush3.msra.mxu1 %v10953_v40 }
 0xae6   :  { %8177 = vmatprep.subr.mxu1 %v11394_v17  ;;  %8097 = vmatmul.mubr.f32.vlgmr.msra.gmra.mxu0 %v5667_v55 }
 0xae7   :  { %8135 = vmatpush3.msra.mxu0 %v10966_v22  ;;  %8178 = vmatpush3.msra.mxu1 %v10955_v24  ;;  %v11419_v22 = vand.u32 4294901760, %v11097_v20 }
 0xae8   :  { %8136 = vmatprep.subr.mxu0 %v11394_v17  ;;  %8179 = vmatprep.subr.mxu1 %v11394_v17 }
 0xae9   :  { %8137 = vmatpush3.msra.mxu0 %v10969_v4  ;;  %8180 = vmatpush3.msra.mxu1 %v10957_v16  ;;  %v11420_v4 = vand.u32 4294901760, %v11114_v41 }
 0xaea   :  { %8138 = vmatprep.subr.mxu0 %v11394_v17  ;;  %8181 = vmatprep.subr.mxu1 %v11394_v17 }
 0xaeb   :  { %8139 = vmatpush3.msra.mxu0 %v10972_v35  ;;  %8182 = vmatpush3.msra.mxu1 %v10975_v21  ;;  %v11421_v35 = vand.u32 4294901760, %v11124_v39 }
 0xaec   :  { %8140 = vmatprep.subr.mxu0 %v11394_v17  ;;  %8183 = vmatprep.subr.mxu1 %v11394_v17 }
 0xaed   :  { %8141 = vmatpush3.msra.mxu0 %v10978_v14  ;;  %8184 = vmatpush3.msra.mxu1 %v10991_v11  ;;  %v11423_v14 = vand.u32 4294901760, %v11152_v5 }
 0xaee   :  { %8142 = vmatprep.subr.mxu0 %v11394_v17  ;;  %8185 = vmatprep.subr.mxu1 %v11394_v17 }
 0xaef   :  { %8143 = vmatpush3.msra.mxu0 %v10981_v6  ;;  %8186 = vmatpush3.msra.mxu1 %v11052_v63 }
 0xaf0   :  { %8144 = vmatprep.subr.mxu0 %v11394_v17  ;;  %8187 = vmatprep.subr.mxu1 %v11394_v17 }
 0xaf1   :  { %8145 = vmatpush3.msra.mxu0 %v10985_v26  ;;  %8188 = vmatpush3.msra.mxu1 %v11060_v30 }
 0xaf2   :  { %8146 = vmatprep.subr.mxu0 %v11394_v17  ;;  %8189 = vmatprep.subr.mxu1 %v11394_v17 }
 0xaf3   :  { %8147 = vmatpush3.msra.mxu0 %v10996_v50  ;;  %8190 = vmatpush3.msra.mxu1 %v11071_v57 }
 0xaf4   :  { %8148 = vmatprep.subr.mxu0 %v11394_v17  ;;  %8191 = vmatprep.subr.mxu1 %v11394_v17 }
 0xaf5   :  { %8149 = vmatpush3.msra.mxu0 %v11016_v56  ;;  %8192 = vmatpush3.msra.mxu1 %v11085_v52 }
 0xaf6   :  { %8150 = vmatprep.subr.mxu0 %v11394_v17  ;;  %8193 = vmatprep.subr.mxu1 %v11394_v17 }
 0xaf7   :  { %8151 = vmatpush3.msra.mxu0 %v11058_v61  ;;  %8194 = vmatpush3.msra.mxu1 %v11100_v15 }
 0xaf8   :  { %8152 = vmatprep.subr.mxu0 %v11394_v17  ;;  %8195 = vmatprep.subr.mxu1 %v11394_v17 }
 0xaf9   :  { %8153 = vmatpush3.msra.mxu0 %v11069_v31  ;;  %8196 = vmatpush3.msra.mxu1 %v11110_v46 }
 0xafa   :  { %8154 = vmatprep.subr.mxu0 %v11394_v17  ;;  %8197 = vmatprep.subr.mxu1 %v11394_v17 }
 0xafb   :  { %8155 = vmatpush3.msra.mxu0 %v11083_v0  ;;  %8198 = vmatpush3.msra.mxu1 %v11126_v28 }
 0xafc   :  { %8156 = vmatprep.subr.mxu0 %v11394_v17  ;;  %8199 = vmatprep.subr.mxu1 %v11394_v17 }
 0xafd   :  { %8157 = vmatpush3.msra.mxu0 %v11097_v20  ;;  %8200 = vmatpush3.msra.mxu1 %v11139_v33 }
 0xafe   :  { %8158 = vmatprep.subr.mxu0 %v11394_v17  ;;  %8202 = vmatmul.mubr.f32.vlgmr.msra.gmra.mxu1 %v5665_v58 }
 0xaff   :  { %8239 = vmatprep.subr.mxu1 %v11394_v17  ;;  %8159 = vmatpush3.msra.mxu0 %v11114_v41 }
 0xb00   :  { %8240 = vmatpush3.msra.mxu1 %v10938_v23  ;;  %8160 = vmatprep.subr.mxu0 %v11394_v17  ;;  %v11413_v23 = vand.u32 4294901760, %v10985_v26 }
 0xb01   :  { %8241 = vmatprep.subr.mxu1 %v11394_v17  ;;  %8161 = vmatpush3.msra.mxu0 %v11124_v39 }
 0xb02   :  { %8242 = vmatpush3.msra.mxu1 %v10940_v25  ;;  %8162 = vmatprep.subr.mxu0 %v11394_v17  ;;  %v11414_v25 = vand.u32 4294901760, %v10996_v50 }
 0xb03   :  { %8243 = vmatprep.subr.mxu1 %v11394_v17  ;;  %8163 = vmatpush3.msra.mxu0 %v11137_v60 }
 0xb04   :  { %8244 = vmatpush3.msra.mxu1 %v10942_v7  ;;  %8164 = vmatprep.subr.mxu0 %v11394_v17  ;;  %v11415_v7 = vand.u32 4294901760, %v11016_v56 }
 0xb05   :  { %8245 = vmatprep.subr.mxu1 %v11394_v17  ;;  %8165 = vmatpush3.msra.mxu0 %v11152_v5 }
 0xb06   :  { %8166 = vmatprep.mubr.msk.f32.mxu0 %vm8339_vm1, %v11394_v17  ;;  %8246 = vmatpush3.msra.mxu1 %v10953_v40  ;;  %v11416_v40 = vand.u32 4294901760, %v11058_v61 }
 0xb07   :  { %8167 = vmatmul.mubr.f32.vlgmr.msra.gmra.mxu0 %v11178_v44  ;;  %8204 = vmatprep.subr.mxu0 %v11394_v17 }
 0xb08   :  { %8247 = vmatprep.subr.mxu1 %v11394_v17  ;;  %8205 = vmatpush3.msra.mxu0 %v5676_v2 }
 0xb09   :  { %8248 = vmatpush3.msra.mxu1 %v10955_v24  ;;  %8206 = vmatprep.subr.mxu0 %v11394_v17  ;;  %v11417_v24 = vand.u32 4294901760, %v11069_v31 }
 0xb0a   :  { %8249 = vmatprep.subr.mxu1 %v11394_v17  ;;  %8207 = vmatpush3.msra.mxu0 %v5683_v54 }
 0xb0b   :  { %8250 = vmatpush3.msra.mxu1 %v10957_v16  ;;  %8208 = vmatprep.subr.mxu0 %v11394_v17  ;;  %v11418_v16 = vand.u32 4294901760, %v11083_v0 }
 0xb0c   :  { %8251 = vmatprep.subr.mxu1 %v11394_v17  ;;  %8209 = vmatpush3.msra.mxu0 %v5690_v32 }
 0xb0d   :  { %8252 = vmatpush3.msra.mxu1 %v10975_v21  ;;  %8210 = vmatprep.subr.mxu0 %v11394_v17  ;;  %v11422_v21 = vand.u32 4294901760, %v11137_v60 }
 0xb0e   :  { %8253 = vmatprep.subr.mxu1 %v11394_v17  ;;  %8211 = vmatpush3.msra.mxu0 %v5697_v62 }
 0xb0f   :  { %8254 = vmatpush3.msra.mxu1 %v10991_v11  ;;  %8212 = vmatprep.subr.mxu0 %v11394_v17 }
 0xb10   :  { %8255 = vmatprep.subr.mxu1 %v11394_v17  ;;  %8213 = vmatpush3.msra.mxu0 %v5704_v10 }
 0xb11   :  { %8256 = vmatpush3.msra.mxu1 %v11052_v63  ;;  %8214 = vmatprep.subr.mxu0 %v11394_v17 }
 0xb12   :  { %8257 = vmatprep.subr.mxu1 %v11394_v17  ;;  %8215 = vmatpush3.msra.mxu0 %v11413_v23 }
 0xb13   :  { %8258 = vmatpush3.msra.mxu1 %v11060_v30  ;;  %8216 = vmatprep.subr.mxu0 %v11394_v17 }
 0xb14   :  { %8259 = vmatprep.subr.mxu1 %v11394_v17  ;;  %8217 = vmatpush3.msra.mxu0 %v11414_v25 }
 0xb15   :  { %8260 = vmatpush3.msra.mxu1 %v11071_v57  ;;  %8218 = vmatprep.subr.mxu0 %v11394_v17 }
 0xb16   :  { %8261 = vmatprep.subr.mxu1 %v11394_v17  ;;  %8219 = vmatpush3.msra.mxu0 %v11415_v7 }
 0xb17   :  { %8262 = vmatpush3.msra.mxu1 %v11085_v52  ;;  %8220 = vmatprep.subr.mxu0 %v11394_v17 }
 0xb18   :  { %8263 = vmatprep.subr.mxu1 %v11394_v17  ;;  %8221 = vmatpush3.msra.mxu0 %v11416_v40 }
 0xb19   :  { %8264 = vmatpush3.msra.mxu1 %v11100_v15  ;;  %8222 = vmatprep.subr.mxu0 %v11394_v17 }
 0xb1a   :  { %8265 = vmatprep.subr.mxu1 %v11394_v17  ;;  %8223 = vmatpush3.msra.mxu0 %v11417_v24 }
 0xb1b   :  { %8266 = vmatpush3.msra.mxu1 %v11110_v46  ;;  %8224 = vmatprep.subr.mxu0 %v11394_v17 }
 0xb1c   :  { %8267 = vmatprep.subr.mxu1 %v11394_v17  ;;  %8225 = vmatpush3.msra.mxu0 %v11418_v16 }
 0xb1d   :  { %8268 = vmatpush3.msra.mxu1 %v11126_v28  ;;  %8226 = vmatprep.subr.mxu0 %v11394_v17 }
 0xb1e   :  { %8269 = vmatprep.subr.mxu1 %v11394_v17  ;;  %8227 = vmatpush3.msra.mxu0 %v11419_v22 }
 0xb1f   :  { %8270 = vmatpush3.msra.mxu1 %v11139_v33  ;;  %8271 = vmatprep.mubr.msk.f32.mxu1 %vm8339_vm1, %v11394_v17 }
 0xb20   :  { %8228 = vmatprep.subr.mxu0 %v11394_v17  ;;  %8272 = vmatmul.mubr.f32.vlgmr.msra.gmra.mxu1 %v11175_v12 }
 0xb21   :  { %8229 = vmatpush3.msra.mxu0 %v11420_v4  ;;  %8236 = vmatprep.mubr.msk.f32.mxu0 %vm8339_vm1, %v11394_v17 }
 0xb22   :  { %8230 = vmatprep.subr.mxu0 %v11394_v17 }
 0xb23   :  { %8231 = vmatpush3.msra.mxu0 %v11421_v35 }
 0xb24   :  { %8232 = vmatprep.subr.mxu0 %v11394_v17 }
 0xb25   :  { %8233 = vmatpush3.msra.mxu0 %v11422_v21 }
 0xb26   :  { %8234 = vmatprep.subr.mxu0 %v11394_v17 }
 0xb27   :  { %8235 = vmatpush3.msra.mxu0 %v11423_v14 }
 0xb28   :  { %8237 = vmatmul.mubr.f32.vlgmr.msra.gmra.mxu0 %v11175_v12 }
 0xb9e   :  { %v5820_v6 = vpop.f32.mrf.mxu1 }
 0xba0   :  { %v8133_v26 = vpop.f32.mrf.mxu1 }
 0xba6   :  { %v5669_v2 = vpop.f32.mrf.mxu0 }
 0xba7   :  { %v5670_v54 = vadd.f32 %v5669_v2, %v9003_v18 }
 0xba8   :  { %v8098_v32 = vpop.f32.mrf.mxu0 }
 0xba9   :  { %v5821_v11 = vadd.f32 %v5820_v6, %v5670_v54 }
 0xbbe   :  { %v6013_v62 = vpop.f32.mrf.mxu1 }
 0xbc0   :  { %v8203_v50 = vpop.f32.mrf.mxu1 }
 0xbc7   :  { %v5924_v10 = vpop.f32.mrf.mxu0 }
 0xbc8   :  { %v5925_v30 = vadd.f32 %v5924_v10, %v5821_v11 }
 0xbc9   :  { %v8168_v56 = vpop.f32.mrf.mxu0 }
 0xbca   :  { %v6014_v17 = vadd.f32 %v6013_v62, %v5925_v30 }
 0xbe0   :  { %v6219_v63 = vpop.f32.mrf.mxu1 }
 0xbe2   :  { %v8273_v61 = vpop.f32.mrf.mxu1 }
 0xbe8   :  { %v6132_v59 = vpop.f32.mrf.mxu0 }
 0xbe9   :  { %v6133_v31 = vadd.f32 %v6132_v59, %v6014_v17 }
 0xbea   :  { %v8238_v57 = vpop.f32.mrf.mxu0 }
 0xbeb   :  { %v6220_v29 = vadd.f32 %v6219_v63, %v6133_v31 }
 0xbed   :  { %6223 = vst [vmem:[%s11344_s4] sm:$0x1] %v6220_v29 }

</bundles_post_ra>
